<compile_context>
chip_gen: v6e
topology: v6e:2x2x1
jax: 0.10.0
libtpu: 0.0.40
codegen_flags: <defaults>
</compile_context>

<pallas_src>
import functools

import jax
import jax.numpy as jnp
from jax.experimental import pallas as pl
from jax.experimental.pallas import tpu as pltpu


def _round_up(x, m):
    return (x + m - 1) // m * m


# --------------------------------------------------------------------------------------
# Fast path: stride == 1, implicit im2col (k*k shifted matmuls over a flat padded slab).
# --------------------------------------------------------------------------------------
def _make_conv_s1_kernel(offs, tm):
    # offs: static python ints (dy*Wp + dx row shifts), tm: output rows per tile.
    def kernel(x_cur_ref, x_halo_ref, w_ref, b_ref, o_ref):
        # x_cur_ref : (TM, Cin)        bf16   rows [i*TM, (i+1)*TM) of the flat padded image
        # x_halo_ref: (TH, Cin)        bf16   rows [(i+1)*TM, (i+1)*TM + TH)  (shift halo)
        # w_ref     : (k*k, Cin, Np)   bf16   VMEM-resident, BN scale pre-folded
        # b_ref     : (1, Np)          f32    folded BN bias
        # o_ref     : (TM, Np)         out_dtype
        slab = jnp.concatenate([x_cur_ref[...], x_halo_ref[...]], axis=0)  # (TM+TH, Cin)

        acc = jnp.dot(slab[offs[0]:offs[0] + tm, :], w_ref[0],
                      preferred_element_type=jnp.float32)
        for idx in range(1, len(offs)):
            off = offs[idx]
            acc = acc + jnp.dot(slab[off:off + tm, :], w_ref[idx],
                                preferred_element_type=jnp.float32)

        y = acc + b_ref[...]
        # LeakyReLU(0.1): for y < 0, 0.1*y > y, so max() is exact.
        o_ref[...] = jnp.maximum(y, 0.1 * y).astype(o_ref.dtype)

    return kernel


def _conv_s1_implicit(x_bf16, w_khwc, bias_p, k, pad, Np, Cout, H_out, W_out, out_dtype):
    N, H, W, Cin = x_bf16.shape
    Hp, Wp = H + 2 * pad, W + 2 * pad

    xp = jnp.pad(x_bf16, ((0, 0), (pad, pad), (pad, pad), (0, 0)))     # (N, Hp, Wp, Cin)
    x_flat = xp.reshape(N * Hp * Wp, Cin)                              # flat padded image

    # Output is computed for every padded position (valid rows/cols sliced out afterwards).
    M_out = N * Hp * Wp
    halo = (k - 1) * (Wp + 1)                   # largest flat row shift (dy=dx=k-1)
    TH = max(16, _round_up(halo, 16))           # halo block (bf16-packing aligned)
    TM = _round_up(512, TH)                     # output rows per tile; multiple of TH
    ratio = TM // TH
    Mp = _round_up(M_out, TM)

    # Rows needed: Mp for the output tiles plus one TH halo block past the last tile.
    x_flat = jnp.pad(x_flat, ((0, Mp + TH - M_out), (0, 0)))

    # Weights: (kh, kw, Cin, Cout) -> (k*k, Cin, Np), VMEM-resident.
    w_mat = jnp.pad(w_khwc.reshape(k * k, Cin, Cout), ((0, 0), (0, 0), (0, Np - Cout)))

    offs = tuple(dy * Wp + dx for dy in range(k) for dx in range(k))
    kernel = _make_conv_s1_kernel(offs, TM)

    grid = (Mp // TM,)
    cost = pl.CostEstimate(
        flops=2 * Mp * (k * k * Cin) * Np,
        transcendentals=0,
        bytes_accessed=(Mp + Mp // ratio) * Cin * 2          # input tile + halo reads
        + k * k * Cin * Np * 2                               # resident weights (once)
        + Mp * Np * jnp.dtype(out_dtype).itemsize,           # output writeback
    )

    out_pad = pl.pallas_call(
        kernel,
        out_shape=jax.ShapeDtypeStruct((Mp, Np), out_dtype),
        grid_spec=pltpu.PrefetchScalarGridSpec(
            num_scalar_prefetch=0,
            grid=grid,
            in_specs=[
                pl.BlockSpec((TM, Cin), lambda i: (i, 0)),                  # current rows
                pl.BlockSpec((TH, Cin), lambda i: ((i + 1) * ratio, 0)),    # halo rows
                pl.BlockSpec((k * k, Cin, Np), lambda i: (0, 0, 0)),        # resident W
                pl.BlockSpec((1, Np), lambda i: (0, 0)),                    # resident bias
            ],
            out_specs=pl.BlockSpec((TM, Np), lambda i: (i, 0)),
        ),
        compiler_params=pltpu.CompilerParams(
            dimension_semantics=("parallel",),               # independent M tiles (megacore)
            vmem_limit_bytes=48 * 1024 * 1024,               # fits v7x (64 MiB) with headroom
        ),
        cost_estimate=cost,
    )(x_flat, x_flat, w_mat, bias_p)

    out = out_pad[:M_out, :Cout].reshape(N, Hp, Wp, Cout)[:, :H_out, :W_out, :]
    return out                                               # NHWC


# --------------------------------------------------------------------------------------
# Fallback path: stride != 1, explicit im2col + single-dot GEMM (resident weights).
# --------------------------------------------------------------------------------------
def _gemm_bn_act_kernel(p_ref, w_ref, b_ref, o_ref):
    # p_ref: (TM, K) bf16   w_ref: (K, Np) bf16 (resident)   b_ref: (1, Np) f32
    y = jnp.dot(p_ref[...], w_ref[...], preferred_element_type=jnp.float32) + b_ref[...]
    o_ref[...] = jnp.maximum(y, 0.1 * y).astype(o_ref.dtype)


def _conv_im2col(x_bf16, w_khwc, bias_p, k, pad, stride, Np, Cout, H_out, W_out, out_dtype):
    # TODO(synk): extend the implicit-im2col path to stride>1 (strided-row DMA) and drop this.
    N, H, W, Cin = x_bf16.shape
    xp = jnp.pad(x_bf16, ((0, 0), (pad, pad), (pad, pad), (0, 0)))
    cols = []
    for dy in range(k):
        for dx in range(k):
            cols.append(xp[:, dy:dy + stride * H_out:stride,
                           dx:dx + stride * W_out:stride, :])
    patches = jnp.concatenate(cols, axis=-1).reshape(N * H_out * W_out, k * k * Cin)
    M, K = patches.shape

    w_mat = jnp.pad(w_khwc.reshape(K, Cout), ((0, 0), (0, Np - Cout)))   # (K, Np), resident

    TM = min(512, _round_up(M, 16))
    Mp = _round_up(M, TM)
    patches = jnp.pad(patches, ((0, Mp - M), (0, 0)))

    out_pad = pl.pallas_call(
        _gemm_bn_act_kernel,
        out_shape=jax.ShapeDtypeStruct((Mp, Np), out_dtype),
        grid_spec=pltpu.PrefetchScalarGridSpec(
            num_scalar_prefetch=0,
            grid=(Mp // TM,),
            in_specs=[
                pl.BlockSpec((TM, K), lambda i: (i, 0)),
                pl.BlockSpec((K, Np), lambda i: (0, 0)),
                pl.BlockSpec((1, Np), lambda i: (0, 0)),
            ],
            out_specs=pl.BlockSpec((TM, Np), lambda i: (i, 0)),
        ),
        compiler_params=pltpu.CompilerParams(
            dimension_semantics=("parallel",),
            vmem_limit_bytes=48 * 1024 * 1024,
        ),
    )(patches, w_mat, bias_p)

    return out_pad[:M, :Cout].reshape(N, H_out, W_out, Cout)             # NHWC


# --------------------------------------------------------------------------------------
# Public wrappers.
# --------------------------------------------------------------------------------------
def basic_conv_nhwc(x_nhwc, weight, gamma, beta, running_mean, running_var,
                    *, kernel_size, stride=1, eps=1e-5, out_dtype=jnp.bfloat16):
    """Fused Conv+BN(eval)+LeakyReLU, NHWC in / NHWC out (preferred layout & dtype)."""
    k = kernel_size
    pad = k // 2
    N, H, W, Cin = x_nhwc.shape
    Cout = weight.shape[0]
    H_out = (H + 2 * pad - k) // stride + 1
    W_out = (W + 2 * pad - k) // stride + 1

    # Fold BatchNorm (eval mode) into the conv:  y = conv(x) * scale + bias.
    scale = gamma.astype(jnp.float32) / jnp.sqrt(running_var.astype(jnp.float32) + eps)
    bias = beta.astype(jnp.float32) - running_mean.astype(jnp.float32) * scale

    Np = _round_up(Cout, 128)                               # lane-dense output / unmasked vst
    bias_p = jnp.pad(bias, (0, Np - Cout)).reshape(1, Np)

    # (Cout, Cin, kh, kw) -> (kh, kw, Cin, Cout) with BN scale folded, cast to bf16 for MXU.
    w_khwc = (jnp.transpose(weight, (2, 3, 1, 0)).astype(jnp.float32) * scale
              ).astype(jnp.bfloat16)
    x_bf16 = x_nhwc.astype(jnp.bfloat16)

    if stride == 1:
        return _conv_s1_implicit(x_bf16, w_khwc, bias_p, k, pad, Np, Cout,
                                 H_out, W_out, out_dtype)
    return _conv_im2col(x_bf16, w_khwc, bias_p, k, pad, stride, Np, Cout,
                        H_out, W_out, out_dtype)


@functools.partial(jax.jit, static_argnames=("kernel_size", "stride"))
def basic_conv(x_nchw, weight, gamma, beta, running_mean, running_var,
               *, kernel_size, stride=1, eps=1e-5):
    """PyTorch-parity interface: NCHW float in -> NCHW (input dtype) out."""
    x_nhwc = jnp.transpose(x_nchw, (0, 2, 3, 1))
    y = basic_conv_nhwc(x_nhwc, weight, gamma, beta, running_mean, running_var,
                        kernel_size=kernel_size, stride=stride, eps=eps,
                        out_dtype=jnp.bfloat16)
    # TODO(synk): in a full network keep NHWC/bf16 end-to-end; this transpose + cast exists
    # only to match the PyTorch module's NCHW float32 interface.
    return jnp.transpose(y, (0, 3, 1, 2)).astype(x_nchw.dtype)


if __name__ == "__main__":
    key = jax.random.PRNGKey(0)
    kx, kw = jax.random.split(key)

    N, Cin, H, W = 2, 4, 16, 16
    Cout, ksize = 8, 3

    x = jax.random.normal(kx, (N, Cin, H, W), dtype=jnp.float32)
    weight = jax.random.normal(kw, (Cout, Cin, ksize, ksize), dtype=jnp.float32) * 0.1

    # Deterministic BatchNorm parameters (eval mode uses running stats).
    gamma = 1.0 + 0.1 * jnp.arange(Cout, dtype=jnp.float32)
    beta = 0.05 * jnp.arange(Cout, dtype=jnp.float32)
    running_mean = 0.01 * jnp.arange(Cout, dtype=jnp.float32)
    running_var = 1.0 + 0.02 * jnp.arange(Cout, dtype=jnp.float32)

    def reference(xin, stride):
        pad = ksize // 2
        y = jax.lax.conv_general_dilated(
            xin, weight, (stride, stride), [(pad, pad), (pad, pad)],
            dimension_numbers=("NCHW", "OIHW", "NCHW"))
        sc = gamma / jnp.sqrt(running_var + 1e-5)
        y = y * sc[None, :, None, None] + (beta - running_mean * sc)[None, :, None, None]
        return jnp.where(y >= 0, y, 0.1 * y)

    # stride=1 -> implicit-im2col fast path
    out1 = basic_conv(x, weight, gamma, beta, running_mean, running_var,
                      kernel_size=ksize, stride=1)
    jax.block_until_ready(out1)
    assert out1.shape == (N, Cout, H, W), out1.shape
    ref1 = reference(x, 1)
    err1 = float(jnp.max(jnp.abs(out1 - ref1) / (1.0 + jnp.abs(ref1))))
    assert err1 < 3e-2, f"stride=1 mismatch: {err1}"

    # stride=2 -> explicit-im2col GEMM fallback
    out2 = basic_conv(x, weight, gamma, beta, running_mean, running_var,
                      kernel_size=ksize, stride=2)
    jax.block_until_ready(out2)
    assert out2.shape == (N, Cout, H // 2, W // 2), out2.shape
    ref2 = reference(x, 2)
    err2 = float(jnp.max(jnp.abs(out2 - ref2) / (1.0 + jnp.abs(ref2))))
    assert err2 < 3e-2, f"stride=2 mismatch: {err2}"

    print("KERNEL_OK")
</pallas_src>

<mosaic_0001>
module attributes {stable_mosaic.version = 11 : i64} {
  func.func @kernel(%arg0: i32, %arg1: memref<528x4xbf16, #tpu.memory_space<vmem>>, %arg2: memref<48x4xbf16, #tpu.memory_space<vmem>>, %arg3: memref<9x4x128xbf16, #tpu.memory_space<vmem>>, %arg4: memref<1x128xf32, #tpu.memory_space<vmem>>, %arg5: memref<528x128xbf16, #tpu.memory_space<vmem>>) attributes {dimension_semantics = [#tpu.dimension_semantics<parallel>], iteration_bounds = array<i64: 2>, scalar_prefetch = 0 : i64, scratch_operands = 0 : i64, tpu.core_type = #tpu.core_type<tc>, window_params = [{transform_indices = @transform_0, window_bounds = array<i64: 528, 4>}, {transform_indices = @transform_1, window_bounds = array<i64: 48, 4>}, {pipeline_mode = #tpu.pipeline_mode<synchronous>, transform_indices = @transform_2, window_bounds = array<i64: 9, 4, 128>}, {pipeline_mode = #tpu.pipeline_mode<synchronous>, transform_indices = @transform_3, window_bounds = array<i64: 1, 128>}, {transform_indices = @transform_4, window_bounds = array<i64: 528, 128>}]} {
    %c0 = arith.constant 0 : index
    %c0_0 = arith.constant 0 : index
    %0 = vector.load %arg1[%c0, %c0_0] : memref<528x4xbf16, #tpu.memory_space<vmem>>, vector<528x4xbf16>
    %c0_1 = arith.constant 0 : index
    %c0_2 = arith.constant 0 : index
    %1 = vector.load %arg2[%c0_1, %c0_2] : memref<48x4xbf16, #tpu.memory_space<vmem>>, vector<48x4xbf16>
    %2 = tpu.concatenate %0, %1 in 0 : vector<528x4xbf16>, vector<48x4xbf16> -> vector<576x4xbf16>
    %3 = vector.extract_strided_slice %2 {offsets = [0, 0], sizes = [528, 4], strides = [1, 1]} : vector<576x4xbf16> to vector<528x4xbf16>
    %c0_3 = arith.constant 0 : index
    %c0_4 = arith.constant 0 : index
    %c0_5 = arith.constant 0 : index
    %4 = vector.load %arg3[%c0_3, %c0_4, %c0_5] : memref<9x4x128xbf16, #tpu.memory_space<vmem>>, vector<1x4x128xbf16>
    %5 = vector.shape_cast %4 : vector<1x4x128xbf16> to vector<4x128xbf16>
    %cst = arith.constant dense<0.000000e+00> : vector<528x128xf32>
    %6 = tpu.matmul %3, %5, %cst {dimension_numbers = #tpu.dot_dimension_numbers<[1], [0], [0], [1], [0, 0, 1, 1], [], []>} : vector<528x4xbf16>, vector<4x128xbf16>, vector<528x128xf32> -> vector<528x128xf32>
    %7 = vector.extract_strided_slice %2 {offsets = [1, 0], sizes = [528, 4], strides = [1, 1]} : vector<576x4xbf16> to vector<528x4xbf16>
    %c1 = arith.constant 1 : index
    %c0_6 = arith.constant 0 : index
    %c0_7 = arith.constant 0 : index
    %8 = vector.load %arg3[%c1, %c0_6, %c0_7] : memref<9x4x128xbf16, #tpu.memory_space<vmem>>, vector<1x4x128xbf16>
    %9 = vector.shape_cast %8 : vector<1x4x128xbf16> to vector<4x128xbf16>
    %cst_8 = arith.constant dense<0.000000e+00> : vector<528x128xf32>
    %10 = tpu.matmul %7, %9, %cst_8 {dimension_numbers = #tpu.dot_dimension_numbers<[1], [0], [0], [1], [0, 0, 1, 1], [], []>} : vector<528x4xbf16>, vector<4x128xbf16>, vector<528x128xf32> -> vector<528x128xf32>
    %11 = arith.addf %6, %10 : vector<528x128xf32>
    %12 = vector.extract_strided_slice %2 {offsets = [2, 0], sizes = [528, 4], strides = [1, 1]} : vector<576x4xbf16> to vector<528x4xbf16>
    %c2 = arith.constant 2 : index
    %c0_9 = arith.constant 0 : index
    %c0_10 = arith.constant 0 : index
    %13 = vector.load %arg3[%c2, %c0_9, %c0_10] : memref<9x4x128xbf16, #tpu.memory_space<vmem>>, vector<1x4x128xbf16>
    %14 = vector.shape_cast %13 : vector<1x4x128xbf16> to vector<4x128xbf16>
    %cst_11 = arith.constant dense<0.000000e+00> : vector<528x128xf32>
    %15 = tpu.matmul %12, %14, %cst_11 {dimension_numbers = #tpu.dot_dimension_numbers<[1], [0], [0], [1], [0, 0, 1, 1], [], []>} : vector<528x4xbf16>, vector<4x128xbf16>, vector<528x128xf32> -> vector<528x128xf32>
    %16 = arith.addf %11, %15 : vector<528x128xf32>
    %17 = vector.extract_strided_slice %2 {offsets = [18, 0], sizes = [528, 4], strides = [1, 1]} : vector<576x4xbf16> to vector<528x4xbf16>
    %c3 = arith.constant 3 : index
    %c0_12 = arith.constant 0 : index
    %c0_13 = arith.constant 0 : index
    %18 = vector.load %arg3[%c3, %c0_12, %c0_13] : memref<9x4x128xbf16, #tpu.memory_space<vmem>>, vector<1x4x128xbf16>
    %19 = vector.shape_cast %18 : vector<1x4x128xbf16> to vector<4x128xbf16>
    %cst_14 = arith.constant dense<0.000000e+00> : vector<528x128xf32>
    %20 = tpu.matmul %17, %19, %cst_14 {dimension_numbers = #tpu.dot_dimension_numbers<[1], [0], [0], [1], [0, 0, 1, 1], [], []>} : vector<528x4xbf16>, vector<4x128xbf16>, vector<528x128xf32> -> vector<528x128xf32>
    %21 = arith.addf %16, %20 : vector<528x128xf32>
    %22 = vector.extract_strided_slice %2 {offsets = [19, 0], sizes = [528, 4], strides = [1, 1]} : vector<576x4xbf16> to vector<528x4xbf16>
    %c4 = arith.constant 4 : index
    %c0_15 = arith.constant 0 : index
    %c0_16 = arith.constant 0 : index
    %23 = vector.load %arg3[%c4, %c0_15, %c0_16] : memref<9x4x128xbf16, #tpu.memory_space<vmem>>, vector<1x4x128xbf16>
    %24 = vector.shape_cast %23 : vector<1x4x128xbf16> to vector<4x128xbf16>
    %cst_17 = arith.constant dense<0.000000e+00> : vector<528x128xf32>
    %25 = tpu.matmul %22, %24, %cst_17 {dimension_numbers = #tpu.dot_dimension_numbers<[1], [0], [0], [1], [0, 0, 1, 1], [], []>} : vector<528x4xbf16>, vector<4x128xbf16>, vector<528x128xf32> -> vector<528x128xf32>
    %26 = arith.addf %21, %25 : vector<528x128xf32>
    %27 = vector.extract_strided_slice %2 {offsets = [20, 0], sizes = [528, 4], strides = [1, 1]} : vector<576x4xbf16> to vector<528x4xbf16>
    %c5 = arith.constant 5 : index
    %c0_18 = arith.constant 0 : index
    %c0_19 = arith.constant 0 : index
    %28 = vector.load %arg3[%c5, %c0_18, %c0_19] : memref<9x4x128xbf16, #tpu.memory_space<vmem>>, vector<1x4x128xbf16>
    %29 = vector.shape_cast %28 : vector<1x4x128xbf16> to vector<4x128xbf16>
    %cst_20 = arith.constant dense<0.000000e+00> : vector<528x128xf32>
    %30 = tpu.matmul %27, %29, %cst_20 {dimension_numbers = #tpu.dot_dimension_numbers<[1], [0], [0], [1], [0, 0, 1, 1], [], []>} : vector<528x4xbf16>, vector<4x128xbf16>, vector<528x128xf32> -> vector<528x128xf32>
    %31 = arith.addf %26, %30 : vector<528x128xf32>
    %32 = vector.extract_strided_slice %2 {offsets = [36, 0], sizes = [528, 4], strides = [1, 1]} : vector<576x4xbf16> to vector<528x4xbf16>
    %c6 = arith.constant 6 : index
    %c0_21 = arith.constant 0 : index
    %c0_22 = arith.constant 0 : index
    %33 = vector.load %arg3[%c6, %c0_21, %c0_22] : memref<9x4x128xbf16, #tpu.memory_space<vmem>>, vector<1x4x128xbf16>
    %34 = vector.shape_cast %33 : vector<1x4x128xbf16> to vector<4x128xbf16>
    %cst_23 = arith.constant dense<0.000000e+00> : vector<528x128xf32>
    %35 = tpu.matmul %32, %34, %cst_23 {dimension_numbers = #tpu.dot_dimension_numbers<[1], [0], [0], [1], [0, 0, 1, 1], [], []>} : vector<528x4xbf16>, vector<4x128xbf16>, vector<528x128xf32> -> vector<528x128xf32>
    %36 = arith.addf %31, %35 : vector<528x128xf32>
    %37 = vector.extract_strided_slice %2 {offsets = [37, 0], sizes = [528, 4], strides = [1, 1]} : vector<576x4xbf16> to vector<528x4xbf16>
    %c7 = arith.constant 7 : index
    %c0_24 = arith.constant 0 : index
    %c0_25 = arith.constant 0 : index
    %38 = vector.load %arg3[%c7, %c0_24, %c0_25] : memref<9x4x128xbf16, #tpu.memory_space<vmem>>, vector<1x4x128xbf16>
    %39 = vector.shape_cast %38 : vector<1x4x128xbf16> to vector<4x128xbf16>
    %cst_26 = arith.constant dense<0.000000e+00> : vector<528x128xf32>
    %40 = tpu.matmul %37, %39, %cst_26 {dimension_numbers = #tpu.dot_dimension_numbers<[1], [0], [0], [1], [0, 0, 1, 1], [], []>} : vector<528x4xbf16>, vector<4x128xbf16>, vector<528x128xf32> -> vector<528x128xf32>
    %41 = arith.addf %36, %40 : vector<528x128xf32>
    %42 = vector.extract_strided_slice %2 {offsets = [38, 0], sizes = [528, 4], strides = [1, 1]} : vector<576x4xbf16> to vector<528x4xbf16>
    %c8 = arith.constant 8 : index
    %c0_27 = arith.constant 0 : index
    %c0_28 = arith.constant 0 : index
    %43 = vector.load %arg3[%c8, %c0_27, %c0_28] : memref<9x4x128xbf16, #tpu.memory_space<vmem>>, vector<1x4x128xbf16>
    %44 = vector.shape_cast %43 : vector<1x4x128xbf16> to vector<4x128xbf16>
    %cst_29 = arith.constant dense<0.000000e+00> : vector<528x128xf32>
    %45 = tpu.matmul %42, %44, %cst_29 {dimension_numbers = #tpu.dot_dimension_numbers<[1], [0], [0], [1], [0, 0, 1, 1], [], []>} : vector<528x4xbf16>, vector<4x128xbf16>, vector<528x128xf32> -> vector<528x128xf32>
    %46 = arith.addf %41, %45 : vector<528x128xf32>
    %c0_30 = arith.constant 0 : index
    %c0_31 = arith.constant 0 : index
    %47 = vector.load %arg4[%c0_30, %c0_31] : memref<1x128xf32, #tpu.memory_space<vmem>>, vector<1x128xf32>
    %48 = vector.broadcast %47 : vector<1x128xf32> to vector<528x128xf32>
    %49 = arith.addf %46, %48 : vector<528x128xf32>
    %cst_32 = arith.constant 1.000000e-01 : f32
    %50 = vector.broadcast %cst_32 : f32 to vector<528x128xf32>
    %51 = arith.mulf %50, %49 : vector<528x128xf32>
    %52 = arith.maximumf %49, %51 : vector<528x128xf32>
    %53 = arith.truncf %52 : vector<528x128xf32> to vector<528x128xbf16>
    %c0_33 = arith.constant 0 : index
    %c0_34 = arith.constant 0 : index
    %54 = vector.load %arg5[%c0_33, %c0_34] : memref<528x128xbf16, #tpu.memory_space<vmem>>, vector<528x128xbf16>
    tpu.vector_store %arg5[%c0_33, %c0_34], %53 {strides = array<i32>} : memref<528x128xbf16, #tpu.memory_space<vmem>>, vector<528x128xbf16>,
    return
  }
  func.func @transform_0(%arg0: i32) -> (i32, i32) {
    %c0_i32 = arith.constant 0 : i32
    %c0_i32_0 = arith.constant 0 : i32
    return %arg0, %c0_i32 : i32, i32
  }
  func.func @transform_1(%arg0: i32) -> (i32, i32) {
    %c1_i32 = arith.constant 1 : i32
    %0 = arith.addi %arg0, %c1_i32 : i32
    %c11_i32 = arith.constant 11 : i32
    %1 = arith.muli %0, %c11_i32 : i32
    %c0_i32 = arith.constant 0 : i32
    %c0_i32_0 = arith.constant 0 : i32
    return %1, %c0_i32 : i32, i32
  }
  func.func @transform_2(%arg0: i32) -> (i32, i32, i32) {
    %c0_i32 = arith.constant 0 : i32
    %c0_i32_0 = arith.constant 0 : i32
    %c0_i32_1 = arith.constant 0 : i32
    %c0_i32_2 = arith.constant 0 : i32
    return %c0_i32, %c0_i32_0, %c0_i32_1 : i32, i32, i32
  }
  func.func @transform_3(%arg0: i32) -> (i32, i32) {
    %c0_i32 = arith.constant 0 : i32
    %c0_i32_0 = arith.constant 0 : i32
    %c0_i32_1 = arith.constant 0 : i32
    return %c0_i32, %c0_i32_0 : i32, i32
  }
  func.func @transform_4(%arg0: i32) -> (i32, i32) {
    %c0_i32 = arith.constant 0 : i32
    %c0_i32_0 = arith.constant 0 : i32
    return %arg0, %c0_i32 : i32, i32
  }
}

</mosaic_0001>

<bundles_post_ra>
// kernel: basic_conv.1
= control target key start
LH: loop header
LB: loop body
LE: loop exit
PB: predicated region body
PF: predicated region fallthrough
CT: control target
= control target key end

     0   :  { %s8073_s15 = smov 0   ;;  %s10939_s0 = inlined_call_operand.vmem [shape: bf16[1104,4], index: 0, kind: input, shape index: {}, may-alias: {0,1}]   ;;  %s10940_s1 = inlined_call_operand.vmem [shape: bf16[1104,4], index: 1, kind: input, shape index: {}, may-alias: {0,1}]   ;;  %s10941_s2 = inlined_call_operand.vmem [shape: bf16[9,4,128], index: 2, kind: input, shape index: {}]   ;;  %s10942_s3 = inlined_call_operand.vmem [shape: f32[1,128], index: 3, kind: input, shape index: {}]   ;;  %s10943_s4 = inlined_call_operand.vmem [shape: bf16[1056,128], index: 4, kind: output, shape index: {}]  }
   0x1 LB: > { %s5721_s16 = sadd.s32 4294967295, %s8044_s15   ;;  %p5725_p0 = scmp.ge.s32.totalorder %s8044_s15, 1  ;;  %s8044_s15 = sphi %s8073_s15, %s14_s15  }
   0x2   : > { %p190_p1 = scmp.lt.s32.totalorder %s8044_s15, 3 }
   0x4   : > { %p191_p2 = pnand %p5725_p0, %p190_p1 }
   0x6   : > { %194 = sbr.rel (%p191_p2) target bundleno = 1419 (0x58b), region = 36 }
   0xb   : > { %v5766_v0 = vld [vmem:[%s10941_s2 + $0x2] sm:$0x3]  ;;  %vm882_vm0 = vcmask 1041408   ;;  %s8086_s19 = smul.u32 66, %s5721_s16  ;;  %v11088_v1 = vmov 0.0   ;;  %vm8047_vm1 = vmmov 0  }
   0xc   : > { %6709 = vmatprep.subr.bf16.mxu0 %v11088_v1  ;;  %7915 = vmatprep.subr.bf16.mxu1 %v11088_v1  ;;  %v884_v2 = vsel %vm882_vm0, %v5766_v0, 0  ;;  %vm513_vm2 = vsmask.f32 7424  ;;  %v5833_v9 = vld [vmem:[%s10941_s2 + $0x4] sm:$0x3]  ;;  %vm782_vm3 = vcmask 31744  }
   0xd   : > { %6710 = vmatpush3.bf16.msra.mxu0 %v884_v2  ;;  %7916 = vmatpush3.bf16.msra.mxu1 %v884_v2  ;;  %p232_p3 = scmp.lt.s32.totalorder %s8086_s19, 137  ;;  %v510_v16 = vld [vmem:[%s10941_s2] sm:$0x3]  ;;  %v1719_v26 = vsel %vm882_vm0, %v5833_v9, 0  ;;  %s241_s29 = sadd.s32 1, %s5721_s16  ;;  %vm1551_vm4 = vcmask 1046528  }
   0xe   : > { %6711 = vmatprep.mubr.msk.bf16.mxu0 %vm8047_vm1, %v11088_v1  ;;  %6779 = vmatprep.mubr.msk.bf16.mxu1 %vm8047_vm1, %v11088_v1  ;;  %v1250_v32 = vsel %vm882_vm0, %v510_v16, 0  ;;  %s5727_s30 = smul.u32 66, %s241_s29  ;;  %vm2459_vm5 = vsmask.f32 6400  ;;  %vm3069_vm6 = vcmask 1045504   ;;  %vm4585_vm8 = vcmask 1044480  }
   0xf   : > { %6977 = vmatprep.subr.bf16.mxu0 %v11088_v1  ;;  %s233_s20 = scalar_select %p232_p3, %s8086_s19, 137  ;;  %6843 = vmatprep.subr.bf16.mxu1 %v11088_v1  ;;  %vm3977_vm7 = vsmask.f32 5376 }
  0x10   : > { %p244_p4 = scmp.lt.s32.totalorder %s5727_s30, 137  ;;  %p252_p5 = scmp.lt.s32.totalorder %s8086_s19, 131 }
  0x11   : > { %s5726_s21 = sshll.u32 %s233_s20, 2 }
  0x12   : > { %s8102_s24 = scalar_lea.vmem %s10939_s0, %s5726_s21  ;;  %s11545_s30 = smov (!%p244_p4, %s5727_s30), 137 }
  0x13   : > { %v8105_v3 = vld [vmem:[%s8102_s24] sm:$0xff]   ;;  %v8108_v4 = vld [vmem:[%s8102_s24 + $0x8] sm:$0xff]   ;;  %v7930_v10 = vld [vmem:[%s8102_s24 + $0x90] sm:$0xff]   ;;  %s5728_s5 = sshll.u32 %s11545_s30, 2  ;;  %s11547_s19 = smov (!%p252_p5, %s8086_s19), 131 }
  0x14   : > { %v515_v5 = vshrl.u32 %v8105_v3, 16  ;;  %v517_v6 = vshll.u32 %v8105_v3, 16  ;;  %v522_v7 = vshll.u32 %v8108_v4, 16  ;;  %v7929_v8 = vld [vmem:[%s8102_s24 + $0x88] sm:$0xff]   ;;  %v526_v11 = vshrl.u32 %v8108_v4, 16  ;;  %v8127_v17 = vld [vmem:[%s8102_s24 + $0x10] sm:$0xff]   ;;  %s8294_s8 = scalar_lea.vmem %s10940_s1, %s5728_s5 }
  0x15   : > { %v8121_v15 = vshll.u32 %v7929_v8, 16  ;;  %v7932_v18 = vld [vmem:[%s8102_s24 + $0x98] sm:$0xff]   ;;  %v8130_v19 = vshrl.u32 %v7929_v8, 16  ;;  %v8132_v20 = vshll.u32 %v7930_v10, 16  ;;  %v8138_v24 = vshll.u32 %v8127_v17, 16  ;;  %v7934_v37 = vld [vmem:[%s8102_s24 + $0xa0] sm:$0xff]  }
  0x16   : > { %v519_v12 = vrot.slane %v517_v6, 1  ;;  %v524_v13 = vrot.slane %v522_v7, 1  ;;  %v8119_v14 = vrot.slane %v522_v7, 2  ;;  %v8134_v21 = vrot.slane %v526_v11, 1  ;;  %v8159_v36 = vld [vmem:[%s8102_s24 + $0x18] sm:$0xff]   ;;  %v8187_v48 = vld [vmem:[%s8102_s24 + $0x20] sm:$0xff]  }
  0x17   : > { %11090 = vst [vmem:[#allocation2_spill] sm:$0xff] %v8121_v15  ;;  %11091 = vst [vmem:[#allocation3_spill] sm:$0xff] %v8130_v19  ;;  %v652_v23 = vrot.slane %v8121_v15, 1  ;;  %v660_v25 = vrot.slane %v8132_v20, 1  ;;  %v8148_v30 = vshrl.u32 %v7930_v10, 16  ;;  %v8150_v31 = vshll.u32 %v7932_v18, 16 }
  0x18   : > { %11092 = vst [vmem:[#allocation4_spill] sm:$0xff] %v8132_v20  ;;  %v520_v22 = vor.u32 %v519_v12, %v515_v5  ;;  %11093 = vst [vmem:[#allocation5_spill] sm:$0xff] %v8138_v24  ;;  %v528_v34 = vor.u32 %v526_v11, %v524_v13  ;;  %v532_v35 = vrot.slane %v8138_v24, 1  ;;  %v8171_v41 = vshrl.u32 %v8127_v17, 16  ;;  %v8195_v51 = vld [vmem:[%s8102_s24 + $0xa8] sm:$0xff]   ;;  %v8224_v63 = vld [vmem:[%s8102_s24 + $0xb0] sm:$0xff]  }
  0x19   : > { %v656_v29 = vor.u32 %v8130_v19, %v652_v23  ;;  %11094 = vst [vmem:[#allocation6_spill] sm:$0xff] %v8148_v30  ;;  %11095 = vst [vmem:[#allocation7_spill] sm:$0xff] %v8150_v31  ;;  %v664_v38 = vor.u32 %v8148_v30, %v660_v25  ;;  %v668_v39 = vrot.slane %v8150_v31, 1  ;;  %v8174_v42 = vshll.u32 %v8159_v36, 16  ;;  %v8216_v60 = vld [vmem:[%s8102_s24 + $0x28] sm:$0xff]   ;;  %v8248_v11 = vld [vmem:[%s8102_s24 + $0x30] sm:$0xff]  }
  0x1a   : > { %v525_v28 = vsel %vm513_vm2, %v520_v22, %v524_v13  ;;  %v533_v40 = vsel %vm513_vm2, %v528_v34, %v532_v35  ;;  %11096 = vst [vmem:[#allocation8_spill] sm:$0xff] %v8171_v41  ;;  %v8176_v43 = vshrl.u32 %v7932_v18, 16  ;;  %v8178_v44 = vshll.u32 %v7934_v37, 16  ;;  %v8256_v16 = vld [vmem:[%s8102_s24 + $0xb8] sm:$0xff]   ;;  %s5729_s26 = sshll.u32 %s11547_s19, 2 }
  0x1b   : > { %6712 = vmatmul.mubr.msk.bf16.vlgmr.msra.gmra.mxu0 %vm782_vm3, %v525_v28  ;;  %v661_v33 = vsel %vm513_vm2, %v656_v29, %v660_v25  ;;  %11097 = vst [vmem:[#allocation9_spill] sm:$0xff] %v8174_v42  ;;  %v669_v45 = vsel %vm513_vm2, %v664_v38, %v668_v39  ;;  %v536_v46 = vor.u32 %v8171_v41, %v532_v35  ;;  %v540_v47 = vrot.slane %v8174_v42, 1  ;;  %v8278_v34 = vld [vmem:[%s8102_s24 + $0x38] sm:$0xff]   ;;  %v8282_v35 = vld [vmem:[%s8102_s24 + $0x80] sm:$0xff]   ;;  %s10701_s28 = scalar_lea.vmem %s10943_s4, %s5729_s26 }
  0x1c   : > { %6978 = vmatpush3.bf16.msra.mxu0 %v1719_v26  ;;  %6715 = vmatprep.mubr.msk.bf16.mxu0 %vm8047_vm1, %v11088_v1  ;;  %11098 = vst [vmem:[#allocation10_spill] sm:$0xff] %v8176_v43  ;;  %11099 = vst [vmem:[#allocation11_spill] sm:$0xff] %v8178_v44  ;;  %v672_v49 = vor.u32 %v8176_v43, %v668_v39  ;;  %v676_v50 = vrot.slane %v8178_v44, 1  ;;  %v8199_v53 = vshrl.u32 %v8159_v36, 16  ;;  %v8202_v54 = vshll.u32 %v8187_v48, 16  ;;  %v8289_v39 = vld [vmem:[%s8102_s24 + $0xc0] sm:$0xff]  }
  0x1d   : > { %6780 = vmatmul.mubr.msk.bf16.vlgmr.msra.gmra.mxu1 %vm782_vm3, %v661_v33  ;;  %7245 = vmatprep.subr.bf16.mxu0 %v11088_v1  ;;  %v541_v52 = vsel %vm513_vm2, %v536_v46, %v540_v47  ;;  %v8205_v56 = vshrl.u32 %v7934_v37, 16  ;;  %v8208_v57 = vshll.u32 %v8195_v51, 16  ;;  %v8230_v2 = vshrl.u32 %v8187_v48, 16 }
  0x1e   : > { %6844 = vmatpush3.bf16.msra.mxu1 %v1250_v32  ;;  %6783 = vmatprep.mubr.msk.bf16.mxu1 %vm8047_vm1, %v11088_v1  ;;  %11100 = vst [vmem:[#allocation12_spill] sm:$0xff] %v8199_v53  ;;  %11101 = vst [vmem:[#allocation13_spill] sm:$0xff] %v8202_v54  ;;  %v677_v55 = vsel %vm513_vm2, %v672_v49, %v676_v50  ;;  %v544_v58 = vor.u32 %v8199_v53, %v540_v47  ;;  %v548_v59 = vrot.slane %v8202_v54, 1 }
  0x1f   : > { %7111 = vmatprep.subr.bf16.mxu1 %v11088_v1  ;;  %11102 = vst [vmem:[#allocation14_spill] sm:$0xff] %v8205_v56  ;;  %11103 = vst [vmem:[#allocation15_spill] sm:$0xff] %v8208_v57  ;;  %v680_v61 = vor.u32 %v8205_v56, %v676_v50  ;;  %v684_v62 = vrot.slane %v8208_v57, 1  ;;  %v8233_v5 = vshll.u32 %v8216_v60, 16  ;;  %v8237_v7 = vshrl.u32 %v8195_v51, 16 }
  0x20   : > { %v549_v0 = vsel %vm513_vm2, %v544_v58, %v548_v59  ;;  %11104 = vst [vmem:[#allocation16_spill] sm:$0xff] %v8230_v2  ;;  %v8240_v8 = vshll.u32 %v8224_v63, 16  ;;  %v552_v9 = vor.u32 %v8230_v2, %v548_v59  ;;  %v8260_v22 = vshrl.u32 %v8216_v60, 16 }
  0x21   : > { %11105 = vst [vmem:[#allocation17_spill] sm:$0xff] %v8233_v5  ;;  %v685_v6 = vsel %vm513_vm2, %v680_v61, %v684_v62  ;;  %11106 = vst [vmem:[#allocation18_spill] sm:$0xff] %v8237_v7  ;;  %v556_v10 = vrot.slane %v8233_v5, 1  ;;  %v688_v12 = vor.u32 %v8237_v7, %v684_v62  ;;  %v8263_v25 = vshll.u32 %v8248_v11, 16 }
  0x22   : > { %11107 = vst [vmem:[#allocation19_spill] sm:$0xff] %v8240_v8  ;;  %v692_v13 = vrot.slane %v8240_v8, 1  ;;  %11108 = vst [vmem:[#allocation20_spill] sm:$0xff] %v8260_v22  ;;  %v8267_v28 = vshrl.u32 %v8224_v63, 16  ;;  %v8270_v29 = vshll.u32 %v8256_v16, 16  ;;  %v8301_v46 = vshrl.u32 %v8248_v11, 16 }
  0x23   : > { %6716 = vmatmul.mubr.msk.bf16.gmra.mxu0 %vm782_vm3, %v533_v40  ;;  %v557_v18 = vsel %vm513_vm2, %v552_v9, %v556_v10  ;;  %11109 = vst [vmem:[#allocation21_spill] sm:$0xff] %v8263_v25  ;;  %v560_v32 = vor.u32 %v8260_v22, %v556_v10  ;;  %v564_v33 = vrot.slane %v8263_v25, 1  ;;  %v8297_v40 = vshll.u32 %v8282_v35, 16 }
  0x24   : > { %6719 = vmatprep.mubr.msk.bf16.mxu0 %vm8047_vm1, %v11088_v1  ;;  %v693_v26 = vsel %vm513_vm2, %v688_v12, %v692_v13  ;;  %11110 = vst [vmem:[#allocation22_spill] sm:$0xff] %v8267_v28  ;;  %11111 = vst [vmem:[#allocation23_spill] sm:$0xff] %v8270_v29  ;;  %v696_v37 = vor.u32 %v8267_v28, %v692_v13  ;;  %v700_v38 = vrot.slane %v8270_v29, 1  ;;  %v8304_v47 = vshll.u32 %v8278_v34, 16  ;;  %v8339_v12 = vld [vmem:[%s8102_s24 + $0xc8] sm:$0xff]  }
  0x25   : > { %6784 = vmatmul.mubr.msk.bf16.gmra.mxu1 %vm782_vm3, %v669_v45  ;;  %11112 = vst [vmem:[#allocation24_spill] sm:$0xff] %v8297_v40  ;;  %v565_v45 = vsel %vm513_vm2, %v560_v32, %v564_v33  ;;  %11113 = vst [vmem:[#allocation25_spill] sm:$0xff] %v8301_v46  ;;  %v8307_v49 = vshrl.u32 %v8282_v35, 16  ;;  %v10944_v50 = vrot.slane %v8297_v40, 1  ;;  %v8315_v58 = vshll.u32 %v8289_v39, 16 }
  0x26   : > { %6787 = vmatprep.mubr.msk.bf16.mxu1 %vm8047_vm1, %v11088_v1  ;;  %11114 = vst [vmem:[#allocation26_spill] sm:$0xff] %v8304_v47  ;;  %v568_v61 = vor.u32 %v8301_v46, %v564_v33  ;;  %v572_v62 = vrot.slane %v8304_v47, 1  ;;  %v8350_v32 = vshrl.u32 %v8289_v39, 16  ;;  %v8353_v33 = vshll.u32 %v8339_v12, 16 }
  0x27   : > { %11115 = vst [vmem:[#allocation27_spill] sm:$0xff] %v8307_v49  ;;  %11117 = vst [vmem:[#allocation29_spill] sm:$0xff] %v8315_v58  ;;  %v648_v59 = vor.u32 %v8307_v49, %v10944_v50  ;;  %v708_v10 = vrot.slane %v8315_v58, 1  ;;  %v8380_v27 = vshrl.u32 %v8339_v12, 16 }
  0x28   : > { %v573_v13 = vsel %vm513_vm2, %v568_v61, %v572_v62  ;;  %11120 = vst [vmem:[#allocation32_spill] sm:$0xff] %v8350_v32  ;;  %11121 = vst [vmem:[#allocation33_spill] sm:$0xff] %v8353_v33  ;;  %v8369_v61 = vld [vmem:[%s8102_s24 + $0xd0] sm:$0xff]  }
  0x29   : > { %11124 = vst [vmem:[#allocation36_spill] sm:$0xff] %v8380_v27 }
  0x2b   : > { %6720 = vmatmul.mubr.msk.bf16.gmra.mxu0 %vm782_vm3, %v541_v52  ;;  %v701_v52 = vsel %vm513_vm2, %v696_v37, %v700_v38 }
  0x2c   : > { %6723 = vmatprep.mubr.msk.bf16.mxu0 %vm8047_vm1, %v11088_v1 }
  0x2d   : > { %6788 = vmatmul.mubr.msk.bf16.gmra.mxu1 %vm782_vm3, %v677_v55  ;;  %v8312_v55 = vshrl.u32 %v8256_v16, 16 }
  0x2e   : > { %6791 = vmatprep.mubr.msk.bf16.mxu1 %vm8047_vm1, %v11088_v1 }
  0x2f   : > { %11116 = vst [vmem:[#allocation28_spill] sm:$0xff] %v8312_v55  ;;  %v704_v9 = vor.u32 %v8312_v55, %v700_v38  ;;  %v8410_v55 = vshrl.u32 %v8369_v61, 16 }
  0x31   : > { %11128 = vst [vmem:[#allocation40_spill] sm:$0xff] %v8410_v55 }
  0x33   : > { %6724 = vmatmul.mubr.msk.bf16.gmra.mxu0 %vm782_vm3, %v549_v0  ;;  %v8326_v0 = vld [vmem:[%s8102_s24 + $0x40] sm:$0xff]  }
  0x34   : > { %6727 = vmatprep.mubr.msk.bf16.mxu0 %vm8047_vm1, %v11088_v1 }
  0x35   : > { %6792 = vmatmul.mubr.msk.bf16.gmra.mxu1 %vm782_vm3, %v685_v6  ;;  %v8332_v6 = vsel %vm513_vm2, %v648_v59, %v652_v23  ;;  %v709_v23 = vsel %vm513_vm2, %v704_v9, %v708_v10  ;;  %v716_v59 = vrot.slane %v8353_v33, 1  ;;  %v8391_v33 = vld [vmem:[%s8102_s24 + $0x50] sm:$0xff]  }
  0x36   : > { %6795 = vmatprep.mubr.msk.bf16.mxu1 %vm8047_vm1, %v11088_v1  ;;  %v8406_v29 = vshll.u32 %v8391_v33, 16 }
  0x38   : > { %11127 = vst [vmem:[#allocation39_spill] sm:$0xff] %v8406_v29 }
  0x3b   : > { %6728 = vmatmul.mubr.msk.bf16.gmra.mxu0 %vm782_vm3, %v557_v18  ;;  %v8343_v18 = vshrl.u32 %v8278_v34, 16 }
  0x3c   : > { %6731 = vmatprep.mubr.msk.bf16.mxu0 %vm8047_vm1, %v11088_v1 }
  0x3d   : > { %6796 = vmatmul.mubr.msk.bf16.gmra.mxu1 %vm782_vm3, %v693_v26  ;;  %11118 = vst [vmem:[#allocation30_spill] sm:$0xff] %v8343_v18  ;;  %v8346_v26 = vshll.u32 %v8326_v0, 16  ;;  %v576_v37 = vor.u32 %v8343_v18, %v572_v62  ;;  %v8373_v62 = vshrl.u32 %v8326_v0, 16 }
  0x3e   : > { %6799 = vmatprep.mubr.msk.bf16.mxu1 %vm8047_vm1, %v11088_v1 }
  0x3f   : > { %11119 = vst [vmem:[#allocation31_spill] sm:$0xff] %v8346_v26  ;;  %v580_v38 = vrot.slane %v8346_v26, 1  ;;  %11122 = vst [vmem:[#allocation34_spill] sm:$0xff] %v8373_v62 }
  0x41   : > { %v581_v9 = vsel %vm513_vm2, %v576_v37, %v580_v38  ;;  %v584_v37 = vor.u32 %v8373_v62, %v580_v38 }
  0x43   : > { %6732 = vmatmul.mubr.msk.bf16.gmra.mxu0 %vm782_vm3, %v565_v45  ;;  %v8361_v45 = vld [vmem:[%s8102_s24 + $0x48] sm:$0xff]  }
  0x44   : > { %6735 = vmatprep.mubr.msk.bf16.mxu0 %vm8047_vm1, %v11088_v1  ;;  %v8403_v38 = vshrl.u32 %v8361_v45, 16 }
  0x45   : > { %6800 = vmatmul.mubr.msk.bf16.gmra.mxu1 %vm782_vm3, %v701_v52  ;;  %v712_v52 = vor.u32 %v8350_v32, %v708_v10  ;;  %v8383_v10 = vshll.u32 %v8369_v61, 16 }
  0x46   : > { %6803 = vmatprep.mubr.msk.bf16.mxu1 %vm8047_vm1, %v11088_v1  ;;  %11126 = vst [vmem:[#allocation38_spill] sm:$0xff] %v8403_v38 }
  0x47   : > { %11125 = vst [vmem:[#allocation37_spill] sm:$0xff] %v8383_v10  ;;  %v724_v58 = vrot.slane %v8383_v10, 1  ;;  %v596_v10 = vrot.slane %v8406_v29, 1  ;;  %v8576_v29 = vld [vmem:[%s8294_s8] sm:$0xff]  }
  0x4b   : > { %6736 = vmatmul.mubr.msk.bf16.gmra.mxu0 %vm782_vm3, %v573_v13  ;;  %v8376_v13 = vshll.u32 %v8361_v45, 16 }
  0x4c   : > { %6739 = vmatprep.mubr.msk.bf16.mxu0 %vm8047_vm1, %v11088_v1 }
  0x4d   : > { %6804 = vmatmul.mubr.msk.bf16.gmra.mxu1 %vm782_vm3, %v709_v23  ;;  %11123 = vst [vmem:[#allocation35_spill] sm:$0xff] %v8376_v13  ;;  %v717_v23 = vsel %vm513_vm2, %v712_v52, %v716_v59  ;;  %v588_v50 = vrot.slane %v8376_v13, 1  ;;  %v720_v52 = vor.u32 %v8380_v27, %v716_v59  ;;  %v8421_v27 = vld [vmem:[%s8102_s24 + $0x58] sm:$0xff]  }
  0x4e   : > { %6807 = vmatprep.mubr.msk.bf16.mxu1 %vm8047_vm1, %v11088_v1  ;;  %v8436_v57 = vshll.u32 %v8421_v27, 16 }
  0x4f   : > { %v589_v32 = vsel %vm513_vm2, %v584_v37, %v588_v50  ;;  %v592_v37 = vor.u32 %v8403_v38, %v588_v50  ;;  %v8433_v50 = vshrl.u32 %v8391_v33, 16 }
  0x50   : > { %11131 = vst [vmem:[#allocation43_spill] sm:$0xff] %v8436_v57 }
  0x51   : > { %v597_v28 = vsel %vm513_vm2, %v592_v37, %v596_v10  ;;  %11130 = vst [vmem:[#allocation42_spill] sm:$0xff] %v8433_v50  ;;  %v600_v37 = vor.u32 %v8433_v50, %v596_v10  ;;  %v8463_v10 = vshrl.u32 %v8421_v27, 16 }
  0x53   : > { %6740 = vmatmul.mubr.msk.bf16.gmra.mxu0 %vm782_vm3, %v581_v9  ;;  %v8399_v9 = vld [vmem:[%s8102_s24 + $0xd8] sm:$0xff]   ;;  %11134 = vst [vmem:[#allocation46_spill] sm:$0xff] %v8463_v10 }
  0x54   : > { %6743 = vmatprep.mubr.msk.bf16.mxu0 %vm8047_vm1, %v11088_v1  ;;  %v8413_v59 = vshll.u32 %v8399_v9, 16  ;;  %v8440_v7 = vshrl.u32 %v8399_v9, 16 }
  0x55   : > { %6808 = vmatmul.mubr.msk.bf16.gmra.mxu1 %vm782_vm3, %v717_v23  ;;  %v725_v23 = vsel %vm513_vm2, %v720_v52, %v724_v58  ;;  %v728_v52 = vor.u32 %v8410_v55, %v724_v58  ;;  %v8451_v55 = vld [vmem:[%s8102_s24 + $0x60] sm:$0xff]  }
  0x56   : > { %6811 = vmatprep.mubr.msk.bf16.mxu1 %vm8047_vm1, %v11088_v1  ;;  %11129 = vst [vmem:[#allocation41_spill] sm:$0xff] %v8413_v59  ;;  %v732_v8 = vrot.slane %v8413_v59, 1  ;;  %11132 = vst [vmem:[#allocation44_spill] sm:$0xff] %v8440_v7  ;;  %v604_v59 = vrot.slane %v8436_v57, 1  ;;  %v8466_v31 = vshll.u32 %v8451_v55, 16 }
  0x58   : > { %v605_v56 = vsel %vm513_vm2, %v600_v37, %v604_v59  ;;  %11135 = vst [vmem:[#allocation47_spill] sm:$0xff] %v8466_v31  ;;  %v608_v37 = vor.u32 %v8463_v10, %v604_v59  ;;  %v8493_v59 = vshrl.u32 %v8451_v55, 16 }
  0x5a   : > { %11138 = vst [vmem:[#allocation50_spill] sm:$0xff] %v8493_v59 }
  0x5b   : > { %6744 = vmatmul.mubr.msk.bf16.gmra.mxu0 %vm782_vm3, %v589_v32  ;;  %v8429_v32 = vld [vmem:[%s8102_s24 + $0xe0] sm:$0xff]  }
  0x5c   : > { %6747 = vmatprep.mubr.msk.bf16.mxu0 %vm8047_vm1, %v11088_v1  ;;  %v8443_v58 = vshll.u32 %v8429_v32, 16  ;;  %v8470_v43 = vshrl.u32 %v8429_v32, 16 }
  0x5d   : > { %6812 = vmatmul.mubr.msk.bf16.gmra.mxu1 %vm782_vm3, %v725_v23  ;;  %v733_v23 = vsel %vm513_vm2, %v728_v52, %v732_v8  ;;  %v736_v52 = vor.u32 %v8440_v7, %v732_v8  ;;  %v8481_v7 = vld [vmem:[%s8102_s24 + $0x68] sm:$0xff]  }
  0x5e   : > { %6815 = vmatprep.mubr.msk.bf16.mxu1 %vm8047_vm1, %v11088_v1  ;;  %11133 = vst [vmem:[#allocation45_spill] sm:$0xff] %v8443_v58  ;;  %v740_v44 = vrot.slane %v8443_v58, 1  ;;  %11136 = vst [vmem:[#allocation48_spill] sm:$0xff] %v8470_v43  ;;  %v612_v58 = vrot.slane %v8466_v31, 1  ;;  %v8496_v15 = vshll.u32 %v8481_v7, 16 }
  0x60   : > { %v613_v30 = vsel %vm513_vm2, %v608_v37, %v612_v58  ;;  %11139 = vst [vmem:[#allocation51_spill] sm:$0xff] %v8496_v15  ;;  %v616_v37 = vor.u32 %v8493_v59, %v612_v58  ;;  %v8523_v58 = vshrl.u32 %v8481_v7, 16 }
  0x62   : > { %11142 = vst [vmem:[#allocation54_spill] sm:$0xff] %v8523_v58 }
  0x63   : > { %6748 = vmatmul.mubr.msk.bf16.gmra.mxu0 %vm782_vm3, %v597_v28  ;;  %v8459_v28 = vld [vmem:[%s8102_s24 + $0xe8] sm:$0xff]  }
  0x64   : > { %6751 = vmatprep.mubr.msk.bf16.mxu0 %vm8047_vm1, %v11088_v1  ;;  %v8473_v8 = vshll.u32 %v8459_v28, 16  ;;  %v8500_v19 = vshrl.u32 %v8459_v28, 16 }
  0x65   : > { %6816 = vmatmul.mubr.msk.bf16.gmra.mxu1 %vm782_vm3, %v733_v23  ;;  %v741_v23 = vsel %vm513_vm2, %v736_v52, %v740_v44  ;;  %v744_v52 = vor.u32 %v8470_v43, %v740_v44  ;;  %v8511_v43 = vld [vmem:[%s8102_s24 + $0x70] sm:$0xff]  }
  0x66   : > { %6819 = vmatprep.mubr.msk.bf16.mxu1 %vm8047_vm1, %v11088_v1  ;;  %11137 = vst [vmem:[#allocation49_spill] sm:$0xff] %v8473_v8  ;;  %v748_v20 = vrot.slane %v8473_v8, 1  ;;  %11140 = vst [vmem:[#allocation52_spill] sm:$0xff] %v8500_v19  ;;  %v620_v8 = vrot.slane %v8496_v15, 1  ;;  %v8526_v15 = vshll.u32 %v8511_v43, 16 }
  0x68   : > { %v621_v31 = vsel %vm513_vm2, %v616_v37, %v620_v8  ;;  %11143 = vst [vmem:[#allocation55_spill] sm:$0xff] %v8526_v15  ;;  %v624_v37 = vor.u32 %v8523_v58, %v620_v8  ;;  %v8553_v8 = vshrl.u32 %v8511_v43, 16 }
  0x6a   : > { %11146 = vst [vmem:[#allocation58_spill] sm:$0xff] %v8553_v8 }
  0x6b   : > { %6752 = vmatmul.mubr.msk.bf16.gmra.mxu0 %vm782_vm3, %v605_v56  ;;  %v8489_v56 = vld [vmem:[%s8102_s24 + $0xf0] sm:$0xff]  }
  0x6c   : > { %6755 = vmatprep.mubr.msk.bf16.mxu0 %vm8047_vm1, %v11088_v1  ;;  %v8503_v44 = vshll.u32 %v8489_v56, 16  ;;  %v8530_v59 = vshrl.u32 %v8489_v56, 16 }
  0x6d   : > { %6820 = vmatmul.mubr.msk.bf16.gmra.mxu1 %vm782_vm3, %v741_v23  ;;  %v749_v23 = vsel %vm513_vm2, %v744_v52, %v748_v20  ;;  %v752_v52 = vor.u32 %v8500_v19, %v748_v20  ;;  %v8541_v19 = vld [vmem:[%s8102_s24 + $0x78] sm:$0xff]  }
  0x6e   : > { %6823 = vmatprep.mubr.msk.bf16.mxu1 %vm8047_vm1, %v11088_v1  ;;  %11141 = vst [vmem:[#allocation53_spill] sm:$0xff] %v8503_v44  ;;  %v756_v49 = vrot.slane %v8503_v44, 1  ;;  %11144 = vst [vmem:[#allocation56_spill] sm:$0xff] %v8530_v59  ;;  %v628_v44 = vrot.slane %v8526_v15, 1  ;;  %v8556_v15 = vshll.u32 %v8541_v19, 16  ;;  %v8580_v50 = vshrl.u32 %v8541_v19, 16 }
  0x70   : > { %v629_v10 = vsel %vm513_vm2, %v624_v37, %v628_v44  ;;  %11147 = vst [vmem:[#allocation59_spill] sm:$0xff] %v8556_v15  ;;  %v632_v37 = vor.u32 %v8553_v8, %v628_v44  ;;  %11150 = vst [vmem:[#allocation62_spill] sm:$0xff] %v8580_v50 }
  0x73   : > { %6756 = vmatmul.mubr.msk.bf16.gmra.mxu0 %vm782_vm3, %v613_v30  ;;  %v8519_v30 = vld [vmem:[%s8102_s24 + $0xf8] sm:$0xff]  }
  0x74   : > { %6759 = vmatprep.mubr.msk.bf16.mxu0 %vm8047_vm1, %v11088_v1  ;;  %v8533_v20 = vshll.u32 %v8519_v30, 16  ;;  %v8560_v58 = vshrl.u32 %v8519_v30, 16 }
  0x75   : > { %6824 = vmatmul.mubr.msk.bf16.gmra.mxu1 %vm782_vm3, %v749_v23  ;;  %v757_v23 = vsel %vm513_vm2, %v752_v52, %v756_v49  ;;  %v760_v52 = vor.u32 %v8530_v59, %v756_v49 }
  0x76   : > { %6827 = vmatprep.mubr.msk.bf16.mxu1 %vm8047_vm1, %v11088_v1  ;;  %11145 = vst [vmem:[#allocation57_spill] sm:$0xff] %v8533_v20  ;;  %v764_v57 = vrot.slane %v8533_v20, 1  ;;  %11148 = vst [vmem:[#allocation60_spill] sm:$0xff] %v8560_v58  ;;  %v636_v20 = vrot.slane %v8556_v15, 1 }
  0x7b   : > { %6760 = vmatmul.mubr.msk.bf16.gmra.mxu0 %vm782_vm3, %v621_v31  ;;  %v8549_v31 = vld [vmem:[%s8102_s24 + $0x100] sm:$0xff]  }
  0x7c   : > { %6763 = vmatprep.mubr.msk.bf16.mxu0 %vm8047_vm1, %v11088_v1  ;;  %v8563_v49 = vshll.u32 %v8549_v31, 16  ;;  %v8584_v15 = vshrl.u32 %v8549_v31, 16 }
  0x7d   : > { %6828 = vmatmul.mubr.msk.bf16.gmra.mxu1 %vm782_vm3, %v757_v23  ;;  %v765_v23 = vsel %vm513_vm2, %v760_v52, %v764_v57  ;;  %v768_v52 = vor.u32 %v8560_v58, %v764_v57  ;;  %v640_v57 = vor.u32 %v8580_v50, %v636_v20 }
  0x7e   : > { %6831 = vmatprep.mubr.msk.bf16.mxu1 %vm8047_vm1, %v11088_v1  ;;  %11149 = vst [vmem:[#allocation61_spill] sm:$0xff] %v8563_v49  ;;  %v772_v59 = vrot.slane %v8563_v49, 1  ;;  %11151 = vst [vmem:[#allocation63_spill] sm:$0xff] %v8584_v15  ;;  %v11153_v49 = vrot.slane %v8297_v40, 1 }
  0x80   : > { %v773_v44 = vsel %vm513_vm2, %v768_v52, %v772_v59  ;;  %v645_v58 = vsel %vm513_vm2, %v640_v57, %v11153_v49  ;;  %v1553_v49 = vrot.slane %v8108_v4, 1 }
  0x83   : > { %6764 = vmatmul.mubr.msk.bf16.gmra.mxu0 %vm782_vm3, %v629_v10  ;;  %v637_v10 = vsel %vm513_vm2, %v632_v37, %v636_v20  ;;  %v776_v37 = vor.u32 %v8584_v15, %v772_v59  ;;  %v5867_v59 = vld [vmem:[%s10941_s2 + $0x6] sm:$0x3] }
  0x84   : > { %6767 = vmatprep.mubr.msk.bf16.mxu0 %vm8047_vm1, %v11088_v1  ;;  %v2092_v20 = vsel %vm882_vm0, %v5867_v59, 0  ;;  %v1561_v59 = vrot.slane %v8216_v60, 1 }
  0x85   : > { %6832 = vmatmul.mubr.msk.bf16.gmra.mxu1 %vm782_vm3, %v765_v23  ;;  %v8587_v23 = vshll.u32 %v8576_v29, 16 }
  0x86   : > { %6835 = vmatprep.mubr.msk.bf16.mxu1 %vm8047_vm1, %v11088_v1 }
  0x87   : > { %11152 = vst [vmem:[#allocation64_spill] sm:$0xff] %v8587_v23  ;;  %v780_v52 = vrot.slane %v8587_v23, 1 }
  0x8b   : > { %6768 = vmatmul.mubr.msk.bf16.gmra.mxu0 %vm782_vm3, %v637_v10  ;;  %v781_v10 = vsel %vm513_vm2, %v776_v37, %v780_v52  ;;  %v1557_v52 = vrot.slane %v8159_v36, 1 }
  0x8c   : > { %6771 = vmatprep.mubr.msk.bf16.mxu0 %vm8047_vm1, %v11088_v1 }
  0x8d   : > { %6836 = vmatmul.mubr.msk.bf16.gmra.mxu1 %vm782_vm3, %v773_v44 }
  0x8e   : > { %6839 = vmatprep.mubr.msk.bf16.mxu1 %vm8047_vm1, %v11088_v1 }
  0x93   : > { %6772 = vmatmul.mubr.msk.bf16.gmra.mxu0 %vm782_vm3, %v645_v58  ;;  %v1552_v58 = vrot.slane %v8105_v3, 1 }
  0x94   : > { %6775 = vmatprep.mubr.msk.bf16.mxu0 %vm8047_vm1, %v11088_v1 }
  0x95   : > { %6840 = vmatmul.mubr.msk.bf16.gmra.mxu1 %vm782_vm3, %v781_v10  ;;  %v1554_v44 = vsel %vm1551_vm4, %v1552_v58, %v1553_v49  ;;  %v1559_v10 = vrot.slane %v8187_v48, 1  ;;  %v1565_v58 = vrot.slane %v8278_v34, 1 }
  0x96   : > { %6845 = vmatprep.mubr.msk.bf16.mxu1 %vm8047_vm1, %v11088_v1 }
  0x9b   : > { %6776 = vmatmul.mubr.msk.bf16.gmra.mxu0 %vm782_vm3, %v8332_v6  ;;  %v5901_v6 = vld [vmem:[%s10941_s2 + $0x8] sm:$0x3] }
  0x9c   : > { %6979 = vmatprep.mubr.msk.bf16.mxu0 %vm8047_vm1, %v11088_v1  ;;  %v2702_v57 = vsel %vm882_vm0, %v5901_v6, 0 }
  0x9d   : > { %6846 = vmatmul.mubr.msk.bf16.vlgmr.msra.gmra.mxu1 %vm782_vm3, %v8105_v3  ;;  %v1555_v3 = vrot.slane %v8127_v17, 1 }
  0x9e   : > { %7112 = vmatpush3.bf16.msra.mxu1 %v2092_v20  ;;  %6849 = vmatprep.mubr.msk.bf16.mxu1 %vm8047_vm1, %v11088_v1  ;;  %v1563_v20 = vrot.slane %v8248_v11, 1 }
  0x9f   : > { %7379 = vmatprep.subr.bf16.mxu1 %v11088_v1  ;;  %v8638_v37 = vsel %vm1551_vm4, %v1553_v49, %v1555_v3  ;;  %v1567_v49 = vrot.slane %v8326_v0, 1 }
  0xa3   : > { %6980 = vmatmul.mubr.msk.bf16.vlgmr.msra.gmra.mxu0 %vm782_vm3, %v1554_v44  ;;  %v1569_v44 = vrot.slane %v8361_v45, 1 }
  0xa4   : > { %7246 = vmatpush3.bf16.msra.mxu0 %v2702_v57  ;;  %6983 = vmatprep.mubr.msk.bf16.mxu0 %vm8047_vm1, %v11088_v1 }
  0xa5   : > { %6850 = vmatmul.mubr.msk.bf16.gmra.mxu1 %vm782_vm3, %v8108_v4  ;;  %7513 = vmatprep.subr.bf16.mxu0 %v11088_v1  ;;  %v8650_v4 = vsel %vm1551_vm4, %v1555_v3, %v1557_v52 }
  0xa6   : > { %6853 = vmatprep.mubr.msk.bf16.mxu1 %vm8047_vm1, %v11088_v1 }
  0xab   : > { %6984 = vmatmul.mubr.msk.bf16.gmra.mxu0 %vm782_vm3, %v8638_v37 }
  0xac   : > { %6987 = vmatprep.mubr.msk.bf16.mxu0 %vm8047_vm1, %v11088_v1 }
  0xad   : > { %6854 = vmatmul.mubr.msk.bf16.gmra.mxu1 %vm782_vm3, %v8127_v17  ;;  %v8662_v17 = vsel %vm1551_vm4, %v1557_v52, %v1559_v10 }
  0xae   : > { %6857 = vmatprep.mubr.msk.bf16.mxu1 %vm8047_vm1, %v11088_v1 }
  0xb3   : > { %6988 = vmatmul.mubr.msk.bf16.gmra.mxu0 %vm782_vm3, %v8650_v4 }
  0xb4   : > { %6991 = vmatprep.mubr.msk.bf16.mxu0 %vm8047_vm1, %v11088_v1 }
  0xb5   : > { %6858 = vmatmul.mubr.msk.bf16.gmra.mxu1 %vm782_vm3, %v8159_v36  ;;  %v8674_v36 = vsel %vm1551_vm4, %v1559_v10, %v1561_v59  ;;  %v8728_v10 = vsel %vm1551_vm4, %v1567_v49, %v1569_v44 }
  0xb6   : > { %6861 = vmatprep.mubr.msk.bf16.mxu1 %vm8047_vm1, %v11088_v1  ;;  %11158 = vst [vmem:[#allocation69_spill] sm:$0xff] %v8728_v10 }
  0xbb   : > { %6992 = vmatmul.mubr.msk.bf16.gmra.mxu0 %vm782_vm3, %v8662_v17 }
  0xbc   : > { %6995 = vmatprep.mubr.msk.bf16.mxu0 %vm8047_vm1, %v11088_v1 }
  0xbd   : > { %6862 = vmatmul.mubr.msk.bf16.gmra.mxu1 %vm782_vm3, %v8187_v48  ;;  %v8686_v48 = vsel %vm1551_vm4, %v1561_v59, %v1563_v20 }
  0xbe   : > { %6865 = vmatprep.mubr.msk.bf16.mxu1 %vm8047_vm1, %v11088_v1  ;;  %11154 = vst [vmem:[#allocation65_spill] sm:$0xff] %v8686_v48 }
  0xc3   : > { %6996 = vmatmul.mubr.msk.bf16.gmra.mxu0 %vm782_vm3, %v8674_v36 }
  0xc4   : > { %6999 = vmatprep.mubr.msk.bf16.mxu0 %vm8047_vm1, %v11088_v1 }
  0xc5   : > { %6866 = vmatmul.mubr.msk.bf16.gmra.mxu1 %vm782_vm3, %v8216_v60  ;;  %v8698_v60 = vsel %vm1551_vm4, %v1563_v20, %v1565_v58 }
  0xc6   : > { %6869 = vmatprep.mubr.msk.bf16.mxu1 %vm8047_vm1, %v11088_v1  ;;  %11155 = vst [vmem:[#allocation66_spill] sm:$0xff] %v8698_v60 }
  0xcb   : > { %7000 = vmatmul.mubr.msk.bf16.gmra.mxu0 %vm782_vm3, %v8686_v48 }
  0xcc   : > { %7003 = vmatprep.mubr.msk.bf16.mxu0 %vm8047_vm1, %v11088_v1 }
  0xcd   : > { %6870 = vmatmul.mubr.msk.bf16.gmra.mxu1 %vm782_vm3, %v8248_v11  ;;  %v8710_v11 = vsel %vm1551_vm4, %v1565_v58, %v1567_v49 }
  0xce   : > { %6873 = vmatprep.mubr.msk.bf16.mxu1 %vm8047_vm1, %v11088_v1  ;;  %11156 = vst [vmem:[#allocation67_spill] sm:$0xff] %v8710_v11 }
  0xd3   : > { %7004 = vmatmul.mubr.msk.bf16.gmra.mxu0 %vm782_vm3, %v8698_v60 }
  0xd4   : > { %7007 = vmatprep.mubr.msk.bf16.mxu0 %vm8047_vm1, %v11088_v1 }
  0xd5   : > { %6874 = vmatmul.mubr.msk.bf16.gmra.mxu1 %vm782_vm3, %v8278_v34 }
  0xd6   : > { %6877 = vmatprep.mubr.msk.bf16.mxu1 %vm8047_vm1, %v11088_v1 }
  0xdb   : > { %v8712_v6 = vpop.f32.mrf.mxu0  ;;  %7008 = vmatmul.mubr.msk.bf16.gmra.mxu0 %vm782_vm3, %v8710_v11 }
  0xdc   : > { %7011 = vmatprep.mubr.msk.bf16.mxu0 %vm8047_vm1, %v11088_v1 }
  0xdd   : > { %v8719_v57 = vpop.f32.mrf.mxu1  ;;  %6878 = vmatmul.mubr.msk.bf16.gmra.mxu1 %vm782_vm3, %v8326_v0  ;;  %v6713_v34 = vpop.f32.mrf.mxu0  ;;  %v1571_v0 = vrot.slane %v8391_v33, 1 }
  0xde   : > { %11157 = vst [vmem:[#allocation68_spill] sm:$0xff] %v8719_v57  ;;  %6881 = vmatprep.mubr.msk.bf16.mxu1 %vm8047_vm1, %v11088_v1 }
  0xdf   : > { %v6781_v3 = vpop.f32.mrf.mxu1  ;;  %v8725_v52 = vpop.f32.mrf.mxu0 }
  0xe1   : > { %v8730_v59 = vpop.f32.mrf.mxu1  ;;  %v6714_v20 = vpop.f32.mrf.mxu0 }
  0xe2   : > { %11159 = vst [vmem:[#allocation70_spill] sm:$0xff] %v8730_v59 }
  0xe3   : > { %v6782_v58 = vpop.f32.mrf.mxu1  ;;  %v8732_v23 = vpop.f32.mrf.mxu0  ;;  %7012 = vmatmul.mubr.msk.bf16.gmra.mxu0 %vm782_vm3, %v8728_v10 }
  0xe4   : > { %7015 = vmatprep.mubr.msk.bf16.mxu0 %vm8047_vm1, %v11088_v1  ;;  %v8748_v58 = vsel %vm1551_vm4, %v1569_v44, %v1571_v0 }
  0xe5   : > { %v8739_v34 = vpop.f32.mrf.mxu1  ;;  %6882 = vmatmul.mubr.msk.bf16.gmra.mxu1 %vm782_vm3, %v8361_v45  ;;  %v6717_v49 = vpop.f32.mrf.mxu0  ;;  %11161 = vst [vmem:[#allocation72_spill] sm:$0xff] %v8748_v58  ;;  %v1573_v45 = vrot.slane %v8421_v27, 1 }
  0xe6   : > { %11160 = vst [vmem:[#allocation71_spill] sm:$0xff] %v8739_v34  ;;  %6885 = vmatprep.mubr.msk.bf16.mxu1 %vm8047_vm1, %v11088_v1 }
  0xe7   : > { %v6785_v3 = vpop.f32.mrf.mxu1  ;;  %v8745_v20 = vpop.f32.mrf.mxu0 }
  0xe8   : > { %v8768_v3 = vsel %vm1551_vm4, %v1571_v0, %v1573_v45 }
  0xe9   : > { %v8750_v15 = vpop.f32.mrf.mxu1  ;;  %v6718_v40 = vpop.f32.mrf.mxu0  ;;  %11164 = vst [vmem:[#allocation75_spill] sm:$0xff] %v8768_v3 }
  0xea   : > { %11162 = vst [vmem:[#allocation73_spill] sm:$0xff] %v8750_v15 }
  0xeb   : > { %v6786_v50 = vpop.f32.mrf.mxu1  ;;  %v8752_v8 = vpop.f32.mrf.mxu0  ;;  %7016 = vmatmul.mubr.msk.bf16.gmra.mxu0 %vm782_vm3, %v8748_v58 }
  0xec   : > { %7019 = vmatprep.mubr.msk.bf16.mxu0 %vm8047_vm1, %v11088_v1 }
  0xed   : > { %v8759_v49 = vpop.f32.mrf.mxu1  ;;  %6886 = vmatmul.mubr.msk.bf16.gmra.mxu1 %vm782_vm3, %v8391_v33  ;;  %v6721_v44 = vpop.f32.mrf.mxu0  ;;  %v1575_v33 = vrot.slane %v8451_v55, 1 }
  0xee   : > { %11163 = vst [vmem:[#allocation74_spill] sm:$0xff] %v8759_v49  ;;  %6889 = vmatprep.mubr.msk.bf16.mxu1 %vm8047_vm1, %v11088_v1 }
  0xef   : > { %v6789_v40 = vpop.f32.mrf.mxu1  ;;  %v8765_v50 = vpop.f32.mrf.mxu0 }
  0xf0   : > { %v8788_v40 = vsel %vm1551_vm4, %v1573_v45, %v1575_v33 }
  0xf1   : > { %v8770_v15 = vpop.f32.mrf.mxu1  ;;  %v6722_v34 = vpop.f32.mrf.mxu0  ;;  %11167 = vst [vmem:[#allocation78_spill] sm:$0xff] %v8788_v40 }
  0xf2   : > { %11165 = vst [vmem:[#allocation76_spill] sm:$0xff] %v8770_v15 }
  0xf3   : > { %v6790_v59 = vpop.f32.mrf.mxu1  ;;  %v8772_v57 = vpop.f32.mrf.mxu0  ;;  %7020 = vmatmul.mubr.msk.bf16.gmra.mxu0 %vm782_vm3, %v8768_v3 }
  0xf4   : > { %7023 = vmatprep.mubr.msk.bf16.mxu0 %vm8047_vm1, %v11088_v1 }
  0xf5   : > { %v8779_v44 = vpop.f32.mrf.mxu1  ;;  %6890 = vmatmul.mubr.msk.bf16.gmra.mxu1 %vm782_vm3, %v8421_v27  ;;  %v6725_v0 = vpop.f32.mrf.mxu0  ;;  %v1577_v27 = vrot.slane %v8481_v7, 1 }
  0xf6   : > { %11166 = vst [vmem:[#allocation77_spill] sm:$0xff] %v8779_v44  ;;  %6893 = vmatprep.mubr.msk.bf16.mxu1 %vm8047_vm1, %v11088_v1 }
  0xf7   : > { %v6793_v59 = vpop.f32.mrf.mxu1  ;;  %v8785_v34 = vpop.f32.mrf.mxu0 }
  0xf8   : > { %v8808_v59 = vsel %vm1551_vm4, %v1575_v33, %v1577_v27 }
  0xf9   : > { %v8790_v15 = vpop.f32.mrf.mxu1  ;;  %v6726_v49 = vpop.f32.mrf.mxu0  ;;  %11170 = vst [vmem:[#allocation81_spill] sm:$0xff] %v8808_v59 }
  0xfa   : > { %11168 = vst [vmem:[#allocation79_spill] sm:$0xff] %v8790_v15 }
  0xfb   : > { %v6794_v3 = vpop.f32.mrf.mxu1  ;;  %v8792_v58 = vpop.f32.mrf.mxu0  ;;  %7024 = vmatmul.mubr.msk.bf16.gmra.mxu0 %vm782_vm3, %v8788_v40 }
  0xfc   : > { %7027 = vmatprep.mubr.msk.bf16.mxu0 %vm8047_vm1, %v11088_v1 }
  0xfd   : > { %v8799_v0 = vpop.f32.mrf.mxu1  ;;  %6894 = vmatmul.mubr.msk.bf16.gmra.mxu1 %vm782_vm3, %v8451_v55  ;;  %v6729_v45 = vpop.f32.mrf.mxu0  ;;  %v1579_v55 = vrot.slane %v8511_v43, 1 }
  0xfe   : > { %11169 = vst [vmem:[#allocation80_spill] sm:$0xff] %v8799_v0  ;;  %6897 = vmatprep.mubr.msk.bf16.mxu1 %vm8047_vm1, %v11088_v1 }
  0xff   : > { %v6797_v49 = vpop.f32.mrf.mxu1  ;;  %v8805_v3 = vpop.f32.mrf.mxu0 }
 0x100   : > { %v8828_v49 = vsel %vm1551_vm4, %v1577_v27, %v1579_v55 }
 0x101   : > { %v8810_v15 = vpop.f32.mrf.mxu1  ;;  %v6730_v44 = vpop.f32.mrf.mxu0  ;;  %11173 = vst [vmem:[#allocation84_spill] sm:$0xff] %v8828_v49 }
 0x102   : > { %11171 = vst [vmem:[#allocation82_spill] sm:$0xff] %v8810_v15 }
 0x103   : > { %v6798_v40 = vpop.f32.mrf.mxu1  ;;  %v8812_v10 = vpop.f32.mrf.mxu0  ;;  %7028 = vmatmul.mubr.msk.bf16.gmra.mxu0 %vm782_vm3, %v8808_v59 }
 0x104   : > { %7031 = vmatprep.mubr.msk.bf16.mxu0 %vm8047_vm1, %v11088_v1 }
 0x105   : > { %v8819_v45 = vpop.f32.mrf.mxu1  ;;  %6898 = vmatmul.mubr.msk.bf16.gmra.mxu1 %vm782_vm3, %v8481_v7  ;;  %v6733_v33 = vpop.f32.mrf.mxu0  ;;  %v1581_v7 = vrot.slane %v8541_v19, 1 }
 0x106   : > { %11172 = vst [vmem:[#allocation83_spill] sm:$0xff] %v8819_v45  ;;  %6901 = vmatprep.mubr.msk.bf16.mxu1 %vm8047_vm1, %v11088_v1 }
 0x107   : > { %v6801_v44 = vpop.f32.mrf.mxu1  ;;  %v8825_v40 = vpop.f32.mrf.mxu0 }
 0x108   : > { %v8848_v44 = vsel %vm1551_vm4, %v1579_v55, %v1581_v7 }
 0x109   : > { %v8830_v15 = vpop.f32.mrf.mxu1  ;;  %v6734_v0 = vpop.f32.mrf.mxu0  ;;  %11176 = vst [vmem:[#allocation87_spill] sm:$0xff] %v8848_v44 }
 0x10a   : > { %11174 = vst [vmem:[#allocation85_spill] sm:$0xff] %v8830_v15 }
 0x10b   : > { %v6802_v59 = vpop.f32.mrf.mxu1  ;;  %v8832_v13 = vpop.f32.mrf.mxu0  ;;  %7032 = vmatmul.mubr.msk.bf16.gmra.mxu0 %vm782_vm3, %v8828_v49 }
 0x10c   : > { %7035 = vmatprep.mubr.msk.bf16.mxu0 %vm8047_vm1, %v11088_v1 }
 0x10d   : > { %v8839_v33 = vpop.f32.mrf.mxu1  ;;  %6902 = vmatmul.mubr.msk.bf16.gmra.mxu1 %vm782_vm3, %v8511_v43  ;;  %v6737_v27 = vpop.f32.mrf.mxu0  ;;  %v1583_v43 = vrot.slane %v8282_v35, 1 }
 0x10e   : > { %11175 = vst [vmem:[#allocation86_spill] sm:$0xff] %v8839_v33  ;;  %6905 = vmatprep.mubr.msk.bf16.mxu1 %vm8047_vm1, %v11088_v1 }
 0x10f   : > { %v6805_v0 = vpop.f32.mrf.mxu1  ;;  %v8845_v59 = vpop.f32.mrf.mxu0 }
 0x110   : > { %v8868_v0 = vsel %vm1551_vm4, %v1581_v7, %v1583_v43 }
 0x111   : > { %v8850_v15 = vpop.f32.mrf.mxu1  ;;  %v6738_v45 = vpop.f32.mrf.mxu0  ;;  %11179 = vst [vmem:[#allocation90_spill] sm:$0xff] %v8868_v0 }
 0x112   : > { %11177 = vst [vmem:[#allocation88_spill] sm:$0xff] %v8850_v15 }
 0x113   : > { %v6806_v49 = vpop.f32.mrf.mxu1  ;;  %v8852_v38 = vpop.f32.mrf.mxu0  ;;  %7036 = vmatmul.mubr.msk.bf16.gmra.mxu0 %vm782_vm3, %v8848_v44 }
 0x114   : > { %7039 = vmatprep.mubr.msk.bf16.mxu0 %vm8047_vm1, %v11088_v1 }
 0x115   : > { %v8859_v27 = vpop.f32.mrf.mxu1  ;;  %6906 = vmatmul.mubr.msk.bf16.gmra.mxu1 %vm782_vm3, %v8541_v19  ;;  %v6741_v55 = vpop.f32.mrf.mxu0  ;;  %v7963_v19 = vld [vmem:[%s8102_s24 + $0x88] sm:$0xff]  }
 0x116   : > { %11178 = vst [vmem:[#allocation89_spill] sm:$0xff] %v8859_v27  ;;  %6909 = vmatprep.mubr.msk.bf16.mxu1 %vm8047_vm1, %v11088_v1  ;;  %v1585_v55 = vrot.slane %v7963_v19, 1 }
 0x117   : > { %v6809_v45 = vpop.f32.mrf.mxu1  ;;  %v8865_v49 = vpop.f32.mrf.mxu0 }
 0x119   : > { %v8870_v15 = vpop.f32.mrf.mxu1  ;;  %v6742_v33 = vpop.f32.mrf.mxu0 }
 0x11a   : > { %11180 = vst [vmem:[#allocation91_spill] sm:$0xff] %v8870_v15  ;;  %v8888_v15 = vsel %vm1551_vm4, %v1583_v43, %v1585_v55 }
 0x11b   : > { %v6810_v44 = vpop.f32.mrf.mxu1  ;;  %v8872_v11 = vpop.f32.mrf.mxu0  ;;  %7040 = vmatmul.mubr.msk.bf16.gmra.mxu0 %vm782_vm3, %v8868_v0  ;;  %11182 = vst [vmem:[#allocation93_spill] sm:$0xff] %v8888_v15 }
 0x11c   : > { %7043 = vmatprep.mubr.msk.bf16.mxu0 %vm8047_vm1, %v11088_v1 }
 0x11d   : > { %v8879_v45 = vpop.f32.mrf.mxu1  ;;  %6910 = vmatmul.mubr.msk.bf16.gmra.mxu1 %vm782_vm3, %v8282_v35  ;;  %v6745_v7 = vpop.f32.mrf.mxu0  ;;  %v7964_v35 = vld [vmem:[%s8102_s24 + $0x90] sm:$0xff]  }
 0x11e   : > { %11181 = vst [vmem:[#allocation92_spill] sm:$0xff] %v8879_v45  ;;  %6913 = vmatprep.mubr.msk.bf16.mxu1 %vm8047_vm1, %v11088_v1  ;;  %v1587_v7 = vrot.slane %v7964_v35, 1 }
 0x11f   : > { %v6813_v33 = vpop.f32.mrf.mxu1  ;;  %v8885_v44 = vpop.f32.mrf.mxu0 }
 0x121   : > { %v8890_v27 = vpop.f32.mrf.mxu1  ;;  %v6746_v0 = vpop.f32.mrf.mxu0 }
 0x122   : > { %11183 = vst [vmem:[#allocation94_spill] sm:$0xff] %v8890_v27  ;;  %v2464_v27 = vrot.slane %v8138_v24, 2 }
 0x123   : > { %v6814_v26 = vpop.f32.mrf.mxu1  ;;  %v8892_v62 = vpop.f32.mrf.mxu0  ;;  %7044 = vmatmul.mubr.msk.bf16.gmra.mxu0 %vm782_vm3, %v8888_v15  ;;  %v8909_v15 = vsel %vm1551_vm4, %v1585_v55, %v1587_v7  ;;  %v11187_v55 = vor.u32 %v8119_v14, %v8134_v21 }
 0x124   : > { %7047 = vmatprep.mubr.msk.bf16.mxu0 %vm8047_vm1, %v11088_v1  ;;  %v2463_v26 = vrot.slane %v8171_v41, 1  ;;  %11185 = vst [vmem:[#allocation96_spill] sm:$0xff] %v8909_v15 }
 0x125   : > { %v8899_v33 = vpop.f32.mrf.mxu1  ;;  %6914 = vmatmul.mubr.msk.bf16.gmra.mxu1 %vm782_vm3, %v7963_v19  ;;  %v6749_v43 = vpop.f32.mrf.mxu0 }
 0x126   : > { %11184 = vst [vmem:[#allocation95_spill] sm:$0xff] %v8899_v33  ;;  %6917 = vmatprep.mubr.msk.bf16.mxu1 %vm8047_vm1, %v11088_v1  ;;  %v8913_v47 = vor.u32 %v2464_v27, %v2463_v26 }
 0x127   : > { %v6817_v0 = vpop.f32.mrf.mxu1  ;;  %v8906_v45 = vpop.f32.mrf.mxu0 }
 0x128   : > { %v7965_v0 = vld [vmem:[%s8102_s24 + $0x98] sm:$0xff]   ;;  %v8927_v27 = vsel %vm2459_vm5, %v11187_v55, %v8913_v47 }
 0x129   : > { %v8911_v60 = vpop.f32.mrf.mxu1  ;;  %v6750_v33 = vpop.f32.mrf.mxu0  ;;  %v1589_v41 = vrot.slane %v7965_v0, 1 }
 0x12a   : > { %11186 = vst [vmem:[#allocation97_spill] sm:$0xff] %v8911_v60 }
 0x12b   : > { %v6818_v19 = vpop.f32.mrf.mxu1  ;;  %v8915_v43 = vpop.f32.mrf.mxu0  ;;  %7048 = vmatmul.mubr.msk.bf16.gmra.mxu0 %vm782_vm3, %v8909_v15  ;;  %v8937_v60 = vsel %vm1551_vm4, %v1587_v7, %v1589_v41 }
 0x12c   : > { %7051 = vmatprep.mubr.msk.bf16.mxu0 %vm8047_vm1, %v11088_v1  ;;  %11189 = vst [vmem:[#allocation99_spill] sm:$0xff] %v8937_v60 }
 0x12d   : > { %v8929_v33 = vpop.f32.mrf.mxu1  ;;  %6918 = vmatmul.mubr.msk.bf16.gmra.mxu1 %vm782_vm3, %v7964_v35  ;;  %v6753_v26 = vpop.f32.mrf.mxu0  ;;  %v7966_v35 = vld [vmem:[%s8102_s24 + $0xa0] sm:$0xff]  }
 0x12e   : > { %11188 = vst [vmem:[#allocation98_spill] sm:$0xff] %v8929_v33  ;;  %6921 = vmatprep.mubr.msk.bf16.mxu1 %vm8047_vm1, %v11088_v1  ;;  %v1591_v26 = vrot.slane %v7966_v35, 1 }
 0x12f   : > { %v6821_v19 = vpop.f32.mrf.mxu1  ;;  %v8934_v24 = vpop.f32.mrf.mxu0 }
 0x131   : > { %v8939_v15 = vpop.f32.mrf.mxu1  ;;  %v6754_v14 = vpop.f32.mrf.mxu0 }
 0x132   : > { %11190 = vst [vmem:[#allocation100_spill] sm:$0xff] %v8939_v15  ;;  %v8956_v15 = vsel %vm1551_vm4, %v1589_v41, %v1591_v26 }
 0x133   : > { %v6822_v21 = vpop.f32.mrf.mxu1  ;;  %v8941_v55 = vpop.f32.mrf.mxu0  ;;  %7052 = vmatmul.mubr.msk.bf16.gmra.mxu0 %vm782_vm3, %v8937_v60  ;;  %11192 = vst [vmem:[#allocation102_spill] sm:$0xff] %v8956_v15 }
 0x134   : > { %7055 = vmatprep.mubr.msk.bf16.mxu0 %vm8047_vm1, %v11088_v1 }
 0x135   : > { %v8948_v19 = vpop.f32.mrf.mxu1  ;;  %6922 = vmatmul.mubr.msk.bf16.gmra.mxu1 %vm782_vm3, %v7965_v0  ;;  %v6757_v7 = vpop.f32.mrf.mxu0  ;;  %v1593_v0 = vrot.slane %v8195_v51, 1 }
 0x136   : > { %11191 = vst [vmem:[#allocation101_spill] sm:$0xff] %v8948_v19  ;;  %6925 = vmatprep.mubr.msk.bf16.mxu1 %vm8047_vm1, %v11088_v1 }
 0x137   : > { %v6825_v14 = vpop.f32.mrf.mxu1  ;;  %v8953_v21 = vpop.f32.mrf.mxu0 }
 0x138   : > { %v8975_v14 = vsel %vm1551_vm4, %v1591_v26, %v1593_v0 }
 0x139   : > { %v8958_v33 = vpop.f32.mrf.mxu1  ;;  %v6758_v60 = vpop.f32.mrf.mxu0  ;;  %11196 = vst [vmem:[#allocation106_spill] sm:$0xff] %v8975_v14 }
 0x13a   : > { %11193 = vst [vmem:[#allocation103_spill] sm:$0xff] %v8958_v33 }
 0x13b   : > { %v6826_v18 = vpop.f32.mrf.mxu1  ;;  %v8960_v48 = vpop.f32.mrf.mxu0  ;;  %7056 = vmatmul.mubr.msk.bf16.gmra.mxu0 %vm782_vm3, %v8956_v15 }
 0x13c   : > { %7059 = vmatprep.mubr.msk.bf16.mxu0 %vm8047_vm1, %v11088_v1 }
 0x13d   : > { %v8967_v7 = vpop.f32.mrf.mxu1  ;;  %6926 = vmatmul.mubr.msk.bf16.gmra.mxu1 %vm782_vm3, %v7966_v35  ;;  %v6761_v41 = vpop.f32.mrf.mxu0  ;;  %v1595_v35 = vrot.slane %v8224_v63, 1 }
 0x13e   : > { %11194 = vst [vmem:[#allocation104_spill] sm:$0xff] %v8967_v7  ;;  %6929 = vmatprep.mubr.msk.bf16.mxu1 %vm8047_vm1, %v11088_v1 }
 0x13f   : > { %v6829_v18 = vpop.f32.mrf.mxu1  ;;  %v8972_v60 = vpop.f32.mrf.mxu0 }
 0x140   : > { %11195 = vst [vmem:[#allocation105_spill] sm:$0xff] %v8972_v60  ;;  %v7967_v18 = vld [vmem:[%s8102_s24 + $0xa8] sm:$0xff]  }
 0x141   : > { %v8977_v33 = vpop.f32.mrf.mxu1  ;;  %v6762_v19 = vpop.f32.mrf.mxu0 }
 0x142   : > { %11197 = vst [vmem:[#allocation107_spill] sm:$0xff] %v8977_v33  ;;  %v8995_v33 = vsel %vm1551_vm4, %v1593_v0, %v1595_v35 }
 0x143   : > { %v6830_v15 = vpop.f32.mrf.mxu1  ;;  %v8979_v51 = vpop.f32.mrf.mxu0  ;;  %7060 = vmatmul.mubr.msk.bf16.gmra.mxu0 %vm782_vm3, %v8975_v14  ;;  %11200 = vst [vmem:[#allocation110_spill] sm:$0xff] %v8995_v33 }
 0x144   : > { %11198 = vst [vmem:[#allocation108_spill] sm:$0xff] %v8979_v51  ;;  %7063 = vmatprep.mubr.msk.bf16.mxu0 %vm8047_vm1, %v11088_v1 }
 0x145   : > { %v8986_v41 = vpop.f32.mrf.mxu1  ;;  %6930 = vmatmul.mubr.msk.bf16.gmra.mxu1 %vm782_vm3, %v7967_v18  ;;  %v6765_v26 = vpop.f32.mrf.mxu0  ;;  %v1597_v18 = vrot.slane %v8256_v16, 1 }
 0x146   : > { %11199 = vst [vmem:[#allocation109_spill] sm:$0xff] %v8986_v41  ;;  %6933 = vmatprep.mubr.msk.bf16.mxu1 %vm8047_vm1, %v11088_v1 }
 0x147   : > { %v6833_v15 = vpop.f32.mrf.mxu1  ;;  %v8992_v19 = vpop.f32.mrf.mxu0 }
 0x148   : > { %v9015_v15 = vsel %vm1551_vm4, %v1595_v35, %v1597_v18 }
 0x149   : > { %v8997_v7 = vpop.f32.mrf.mxu1  ;;  %v6766_v14 = vpop.f32.mrf.mxu0  ;;  %11205 = vst [vmem:[#allocation115_spill] sm:$0xff] %v9015_v15 }
 0x14a   : > { %11201 = vst [vmem:[#allocation111_spill] sm:$0xff] %v8997_v7 }
 0x14b   : > { %v6834_v51 = vpop.f32.mrf.mxu1  ;;  %v8999_v60 = vpop.f32.mrf.mxu0  ;;  %7064 = vmatmul.mubr.msk.bf16.gmra.mxu0 %vm782_vm3, %v8995_v33 }
 0x14c   : > { %11202 = vst [vmem:[#allocation112_spill] sm:$0xff] %v8999_v60  ;;  %7067 = vmatprep.mubr.msk.bf16.mxu0 %vm8047_vm1, %v11088_v1 }
 0x14d   : > { %v9006_v26 = vpop.f32.mrf.mxu1  ;;  %6934 = vmatmul.mubr.msk.bf16.gmra.mxu1 %vm782_vm3, %v8224_v63  ;;  %v6769_v0 = vpop.f32.mrf.mxu0  ;;  %v1599_v63 = vrot.slane %v8289_v39, 1 }
 0x14e   : > { %11203 = vst [vmem:[#allocation113_spill] sm:$0xff] %v9006_v26  ;;  %6937 = vmatprep.mubr.msk.bf16.mxu1 %vm8047_vm1, %v11088_v1 }
 0x14f   : > { %v6837_v14 = vpop.f32.mrf.mxu1  ;;  %v9012_v51 = vpop.f32.mrf.mxu0 }
 0x150   : > { %11204 = vst [vmem:[#allocation114_spill] sm:$0xff] %v9012_v51  ;;  %v9035_v14 = vsel %vm1551_vm4, %v1597_v18, %v1599_v63 }
 0x151   : > { %v9017_v7 = vpop.f32.mrf.mxu1  ;;  %v6770_v41 = vpop.f32.mrf.mxu0  ;;  %11210 = vst [vmem:[#allocation120_spill] sm:$0xff] %v9035_v14 }
 0x152   : > { %11206 = vst [vmem:[#allocation116_spill] sm:$0xff] %v9017_v7 }
 0x153   : > { %v6838_v33 = vpop.f32.mrf.mxu1  ;;  %v9019_v60 = vpop.f32.mrf.mxu0  ;;  %7068 = vmatmul.mubr.msk.bf16.gmra.mxu0 %vm782_vm3, %v9015_v15 }
 0x154   : > { %11207 = vst [vmem:[#allocation117_spill] sm:$0xff] %v9019_v60  ;;  %7071 = vmatprep.mubr.msk.bf16.mxu0 %vm8047_vm1, %v11088_v1 }
 0x155   : > { %v9026_v0 = vpop.f32.mrf.mxu1  ;;  %6938 = vmatmul.mubr.msk.bf16.gmra.mxu1 %vm782_vm3, %v8256_v16  ;;  %v6773_v35 = vpop.f32.mrf.mxu0  ;;  %v1601_v16 = vrot.slane %v8339_v12, 1 }
 0x156   : > { %11208 = vst [vmem:[#allocation118_spill] sm:$0xff] %v9026_v0  ;;  %6941 = vmatprep.mubr.msk.bf16.mxu1 %vm8047_vm1, %v11088_v1 }
 0x157   : > { %v6841_v33 = vpop.f32.mrf.mxu1  ;;  %v9032_v41 = vpop.f32.mrf.mxu0 }
 0x158   : > { %11209 = vst [vmem:[#allocation119_spill] sm:$0xff] %v9032_v41  ;;  %v9053_v33 = vsel %vm1551_vm4, %v1599_v63, %v1601_v16 }
 0x159   : > { %v9037_v7 = vpop.f32.mrf.mxu1  ;;  %v6774_v26 = vpop.f32.mrf.mxu0  ;;  %11214 = vst [vmem:[#allocation124_spill] sm:$0xff] %v9053_v33 }
 0x15a   : > { %11211 = vst [vmem:[#allocation121_spill] sm:$0xff] %v9037_v7 }
 0x15b   : > { %v6842_v15 = vpop.f32.mrf.mxu1  ;;  %v9039_v60 = vpop.f32.mrf.mxu0  ;;  %7072 = vmatmul.mubr.msk.bf16.gmra.mxu0 %vm782_vm3, %v9035_v14 }
 0x15c   : > { %11212 = vst [vmem:[#allocation122_spill] sm:$0xff] %v9039_v60  ;;  %7075 = vmatprep.mubr.msk.bf16.mxu0 %vm8047_vm1, %v11088_v1 }
 0x15d   : > { %v1286_v35 = vpop.f32.mrf.mxu1  ;;  %6942 = vmatmul.mubr.msk.bf16.gmra.mxu1 %vm782_vm3, %v8289_v39  ;;  %v6777_v18 = vpop.f32.mrf.mxu0 }
 0x15e   : > { %6945 = vmatprep.mubr.msk.bf16.mxu1 %vm8047_vm1, %v11088_v1  ;;  %v1287_v14 = vadd.f32 %v1286_v35, %v8712_v6  ;;  %v1603_v18 = vrot.slane %v8369_v61, 1 }
 0x15f   : > { %v6847_v26 = vpop.f32.mrf.mxu1  ;;  %v9050_v15 = vpop.f32.mrf.mxu0 }
 0x160   : > { %11213 = vst [vmem:[#allocation123_spill] sm:$0xff] %v9050_v15 }
 0x161   : > { %v1289_v7 = vpop.f32.mrf.mxu1  ;;  %v6778_v0 = vpop.f32.mrf.mxu0 }
 0x162   : > { %v1290_v0 = vadd.f32 %v1289_v7, %v8725_v52  ;;  %v1605_v52 = vrot.slane %v8399_v9, 1 }
 0x163   : > { %v6848_v60 = vpop.f32.mrf.mxu1  ;;  %v1755_v41 = vpop.f32.mrf.mxu0  ;;  %7076 = vmatmul.mubr.msk.bf16.gmra.mxu0 %vm782_vm3, %v9053_v33 }
 0x164   : > { %v9058_v39 = vadd.f32 %v1755_v41, %v1287_v14  ;;  %7079 = vmatprep.mubr.msk.bf16.mxu0 %vm8047_vm1, %v11088_v1  ;;  %v9071_v41 = vsel %vm1551_vm4, %v1601_v16, %v1603_v18 }
 0x165   : > { %v1294_v26 = vpop.f32.mrf.mxu1  ;;  %6946 = vmatmul.mubr.msk.bf16.gmra.mxu1 %vm782_vm3, %v8339_v12  ;;  %v6981_v63 = vpop.f32.mrf.mxu0 }
 0x166   : > { %11215 = vst [vmem:[#allocation125_spill] sm:$0xff] %v9058_v39  ;;  %6949 = vmatprep.mubr.msk.bf16.mxu1 %vm8047_vm1, %v11088_v1  ;;  %v1295_v33 = vadd.f32 %v1294_v26, %v8732_v23 }
 0x167   : > { %v6851_v6 = vpop.f32.mrf.mxu1  ;;  %v1758_v60 = vpop.f32.mrf.mxu0 }
 0x168   : > { %v9068_v35 = vadd.f32 %v1758_v60, %v1290_v0 }
 0x169   : > { %v1297_v14 = vpop.f32.mrf.mxu1  ;;  %v6982_v39 = vpop.f32.mrf.mxu0 }
 0x16a   : > { %v1298_v39 = vadd.f32 %v1297_v14, %v8745_v20  ;;  %v1607_v20 = vrot.slane %v8429_v32, 1 }
 0x16b   : > { %v6852_v15 = vpop.f32.mrf.mxu1  ;;  %v1763_v51 = vpop.f32.mrf.mxu0  ;;  %7080 = vmatmul.mubr.msk.bf16.gmra.mxu0 %vm782_vm3, %v9071_v41 }
 0x16c   : > { %v9076_v12 = vadd.f32 %v1763_v51, %v1295_v33  ;;  %7083 = vmatprep.mubr.msk.bf16.mxu0 %vm8047_vm1, %v11088_v1  ;;  %v9089_v51 = vsel %vm1551_vm4, %v1603_v18, %v1605_v52 }
 0x16d   : > { %v1302_v7 = vpop.f32.mrf.mxu1  ;;  %6950 = vmatmul.mubr.msk.bf16.gmra.mxu1 %vm782_vm3, %v8369_v61  ;;  %v6985_v16 = vpop.f32.mrf.mxu0 }
 0x16e   : > { %6953 = vmatprep.mubr.msk.bf16.mxu1 %vm8047_vm1, %v11088_v1  ;;  %v1303_v0 = vadd.f32 %v1302_v7, %v8752_v8 }
 0x16f   : > { %v6855_v23 = vpop.f32.mrf.mxu1  ;;  %v1766_v15 = vpop.f32.mrf.mxu0 }
 0x170   : > { %v9086_v26 = vadd.f32 %v1766_v15, %v1298_v39  ;;  %v9107_v23 = vsel %vm1551_vm4, %v1605_v52, %v1607_v20 }
 0x171   : > { %v1305_v33 = vpop.f32.mrf.mxu1  ;;  %v6986_v63 = vpop.f32.mrf.mxu0 }
 0x172   : > { %v1306_v16 = vadd.f32 %v1305_v33, %v8765_v50  ;;  %v1609_v50 = vrot.slane %v8459_v28, 1 }
 0x173   : > { %v6856_v6 = vpop.f32.mrf.mxu1  ;;  %v1771_v60 = vpop.f32.mrf.mxu0  ;;  %7084 = vmatmul.mubr.msk.bf16.gmra.mxu0 %vm782_vm3, %v9089_v51 }
 0x174   : > { %v9094_v61 = vadd.f32 %v1771_v60, %v1303_v0  ;;  %7087 = vmatprep.mubr.msk.bf16.mxu0 %vm8047_vm1, %v11088_v1 }
 0x175   : > { %v1310_v14 = vpop.f32.mrf.mxu1  ;;  %6954 = vmatmul.mubr.msk.bf16.gmra.mxu1 %vm782_vm3, %v8399_v9  ;;  %v6989_v18 = vpop.f32.mrf.mxu0 }
 0x176   : > { %6957 = vmatprep.mubr.msk.bf16.mxu1 %vm8047_vm1, %v11088_v1  ;;  %v1311_v0 = vadd.f32 %v1310_v14, %v8772_v57 }
 0x177   : > { %v6859_v8 = vpop.f32.mrf.mxu1  ;;  %v1774_v7 = vpop.f32.mrf.mxu0 }
 0x178   : > { %v9104_v39 = vadd.f32 %v1774_v7, %v1306_v16  ;;  %v9125_v8 = vsel %vm1551_vm4, %v1607_v20, %v1609_v50 }
 0x179   : > { %v1313_v15 = vpop.f32.mrf.mxu1  ;;  %v6990_v63 = vpop.f32.mrf.mxu0 }
 0x17a   : > { %v1314_v18 = vadd.f32 %v1313_v15, %v8785_v34  ;;  %v1611_v34 = vrot.slane %v8489_v56, 1 }
 0x17b   : > { %v6860_v6 = vpop.f32.mrf.mxu1  ;;  %v1779_v60 = vpop.f32.mrf.mxu0  ;;  %7088 = vmatmul.mubr.msk.bf16.gmra.mxu0 %vm782_vm3, %v9107_v23 }
 0x17c   : > { %v9112_v9 = vadd.f32 %v1779_v60, %v1311_v0  ;;  %7091 = vmatprep.mubr.msk.bf16.mxu0 %vm8047_vm1, %v11088_v1 }
 0x17d   : > { %v1318_v33 = vpop.f32.mrf.mxu1  ;;  %6958 = vmatmul.mubr.msk.bf16.gmra.mxu1 %vm782_vm3, %v8429_v32  ;;  %v6993_v52 = vpop.f32.mrf.mxu0 }
 0x17e   : > { %6961 = vmatprep.mubr.msk.bf16.mxu1 %vm8047_vm1, %v11088_v1  ;;  %v1319_v0 = vadd.f32 %v1318_v33, %v8792_v58 }
 0x17f   : > { %v6863_v57 = vpop.f32.mrf.mxu1  ;;  %v1782_v14 = vpop.f32.mrf.mxu0 }
 0x180   : > { %v9122_v16 = vadd.f32 %v1782_v14, %v1314_v18  ;;  %v9143_v57 = vsel %vm1551_vm4, %v1609_v50, %v1611_v34 }
 0x181   : > { %v1321_v7 = vpop.f32.mrf.mxu1  ;;  %v6994_v63 = vpop.f32.mrf.mxu0 }
 0x182   : > { %v1322_v52 = vadd.f32 %v1321_v7, %v8805_v3  ;;  %v1613_v3 = vrot.slane %v8519_v30, 1 }
 0x183   : > { %v6864_v6 = vpop.f32.mrf.mxu1  ;;  %v1787_v60 = vpop.f32.mrf.mxu0  ;;  %7092 = vmatmul.mubr.msk.bf16.gmra.mxu0 %vm782_vm3, %v9125_v8 }
 0x184   : > { %v9130_v32 = vadd.f32 %v1787_v60, %v1319_v0  ;;  %7095 = vmatprep.mubr.msk.bf16.mxu0 %vm8047_vm1, %v11088_v1 }
 0x185   : > { %v1326_v15 = vpop.f32.mrf.mxu1  ;;  %6962 = vmatmul.mubr.msk.bf16.gmra.mxu1 %vm782_vm3, %v8459_v28  ;;  %v6997_v20 = vpop.f32.mrf.mxu0 }
 0x186   : > { %6965 = vmatprep.mubr.msk.bf16.mxu1 %vm8047_vm1, %v11088_v1  ;;  %v1327_v0 = vadd.f32 %v1326_v15, %v8812_v10 }
 0x187   : > { %v6867_v58 = vpop.f32.mrf.mxu1  ;;  %v1790_v33 = vpop.f32.mrf.mxu0 }
 0x188   : > { %v9140_v18 = vadd.f32 %v1790_v33, %v1322_v52  ;;  %v9161_v58 = vsel %vm1551_vm4, %v1611_v34, %v1613_v3 }
 0x189   : > { %v1329_v14 = vpop.f32.mrf.mxu1  ;;  %v6998_v63 = vpop.f32.mrf.mxu0 }
 0x18a   : > { %v1330_v20 = vadd.f32 %v1329_v14, %v8825_v40  ;;  %v1615_v40 = vrot.slane %v8549_v31, 1 }
 0x18b   : > { %v6868_v6 = vpop.f32.mrf.mxu1  ;;  %v1795_v60 = vpop.f32.mrf.mxu0  ;;  %7096 = vmatmul.mubr.msk.bf16.gmra.mxu0 %vm782_vm3, %v9143_v57 }
 0x18c   : > { %v9148_v28 = vadd.f32 %v1795_v60, %v1327_v0  ;;  %7099 = vmatprep.mubr.msk.bf16.mxu0 %vm8047_vm1, %v11088_v1 }
 0x18d   : > { %v1334_v7 = vpop.f32.mrf.mxu1  ;;  %6966 = vmatmul.mubr.msk.bf16.gmra.mxu1 %vm782_vm3, %v8489_v56  ;;  %v7001_v50 = vpop.f32.mrf.mxu0 }
 0x18e   : > { %6969 = vmatprep.mubr.msk.bf16.mxu1 %vm8047_vm1, %v11088_v1  ;;  %v1335_v0 = vadd.f32 %v1334_v7, %v8832_v13 }
 0x18f   : > { %v6871_v10 = vpop.f32.mrf.mxu1  ;;  %v1798_v15 = vpop.f32.mrf.mxu0 }
 0x190   : > { %v9158_v52 = vadd.f32 %v1798_v15, %v1330_v20  ;;  %v9179_v10 = vsel %vm1551_vm4, %v1613_v3, %v1615_v40 }
 0x191   : > { %v1337_v33 = vpop.f32.mrf.mxu1  ;;  %v7002_v63 = vpop.f32.mrf.mxu0 }
 0x192   : > { %v1338_v50 = vadd.f32 %v1337_v33, %v8845_v59  ;;  %v11073_v59 = vrot.slane %v8576_v29, 1 }
 0x193   : > { %v6872_v6 = vpop.f32.mrf.mxu1  ;;  %v1803_v60 = vpop.f32.mrf.mxu0  ;;  %7100 = vmatmul.mubr.msk.bf16.gmra.mxu0 %vm782_vm3, %v9161_v58 }
 0x194   : > { %v9166_v56 = vadd.f32 %v1803_v60, %v1335_v0  ;;  %7103 = vmatprep.mubr.msk.bf16.mxu0 %vm8047_vm1, %v11088_v1 }
 0x195   : > { %v1342_v14 = vpop.f32.mrf.mxu1  ;;  %6970 = vmatmul.mubr.msk.bf16.gmra.mxu1 %vm782_vm3, %v8519_v30  ;;  %v7005_v34 = vpop.f32.mrf.mxu0 }
 0x196   : > { %6973 = vmatprep.mubr.msk.bf16.mxu1 %vm8047_vm1, %v11088_v1  ;;  %v1343_v0 = vadd.f32 %v1342_v14, %v8852_v38 }
 0x197   : > { %v6875_v13 = vpop.f32.mrf.mxu1  ;;  %v1806_v7 = vpop.f32.mrf.mxu0 }
 0x198   : > { %v9176_v20 = vadd.f32 %v1806_v7, %v1338_v50  ;;  %v9199_v13 = vsel %vm1551_vm4, %v1615_v40, %v11073_v59  ;;  %v5935_v7 = vld [vmem:[%s10941_s2 + $0xa] sm:$0x3] }
 0x199   : > { %v1345_v15 = vpop.f32.mrf.mxu1  ;;  %v7006_v63 = vpop.f32.mrf.mxu0 }
 0x19a   : > { %v1346_v34 = vadd.f32 %v1345_v15, %v8865_v49 }
 0x19b   : > { %v6876_v6 = vpop.f32.mrf.mxu1  ;;  %v1811_v60 = vpop.f32.mrf.mxu0  ;;  %7104 = vmatmul.mubr.msk.bf16.gmra.mxu0 %vm782_vm3, %v9179_v10 }
 0x19c   : > { %v9184_v30 = vadd.f32 %v1811_v60, %v1343_v0  ;;  %7107 = vmatprep.mubr.msk.bf16.mxu0 %vm8047_vm1, %v11088_v1  ;;  %v3237_v6 = vsel %vm882_vm0, %v5935_v7, 0  ;;  %v2467_v7 = vrot.slane %v8199_v53, 1  ;;  %v11245_v53 = vld [vmem:[#allocation71_spill] sm:$0xff] }
 0x19d   : > { %v1350_v33 = vpop.f32.mrf.mxu1  ;;  %6974 = vmatmul.mubr.msk.bf16.gmra.mxu1 %vm782_vm3, %v8549_v31  ;;  %v7009_v3 = vpop.f32.mrf.mxu0 }
 0x19e   : > { %7113 = vmatprep.mubr.msk.bf16.mxu1 %vm8047_vm1, %v11088_v1  ;;  %v1351_v49 = vadd.f32 %v1350_v33, %v8872_v11  ;;  %v5969_v11 = vld [vmem:[%s10941_s2 + $0xc] sm:$0x3] }
 0x19f   : > { %v6879_v38 = vpop.f32.mrf.mxu1  ;;  %v1814_v14 = vpop.f32.mrf.mxu0 }
 0x1a0   : > { %v9194_v50 = vadd.f32 %v1814_v14, %v1346_v34 }
 0x1a1   : > { %v1353_v31 = vpop.f32.mrf.mxu1  ;;  %v7010_v63 = vpop.f32.mrf.mxu0 }
 0x1a2   : > { %v1354_v34 = vadd.f32 %v1353_v31, %v8885_v44  ;;  %v3610_v31 = vsel %vm882_vm0, %v5969_v11, 0 }
 0x1a3   : > { %v6880_v15 = vpop.f32.mrf.mxu1  ;;  %v1819_v0 = vpop.f32.mrf.mxu0  ;;  %7108 = vmatmul.mubr.msk.bf16.gmra.mxu0 %vm782_vm3, %v9199_v13 }
 0x1a4   : > { %v9208_v60 = vadd.f32 %v1819_v0, %v1351_v49  ;;  %7247 = vmatprep.mubr.msk.bf16.mxu0 %vm8047_vm1, %v11088_v1 }
 0x1a5   : > { %v1358_v40 = vpop.f32.mrf.mxu1  ;;  %7114 = vmatmul.mubr.msk.bf16.vlgmr.msra.gmra.mxu1 %vm782_vm3, %v8638_v37  ;;  %v7013_v3 = vpop.f32.mrf.mxu0  ;;  %v2468_v37 = vrot.slane %v8174_v42, 2 }
 0x1a6   : > { %7380 = vmatpush3.bf16.msra.mxu1 %v3237_v6  ;;  %7117 = vmatprep.mubr.msk.bf16.mxu1 %vm8047_vm1, %v11088_v1  ;;  %v1359_v49 = vadd.f32 %v1358_v40, %v8892_v62 }
 0x1a7   : > { %v6883_v33 = vpop.f32.mrf.mxu1  ;;  %v1822_v38 = vpop.f32.mrf.mxu0  ;;  %7647 = vmatprep.subr.bf16.mxu1 %v11088_v1  ;;  %v2469_v3 = vor.u32 %v2468_v37, %v2467_v7  ;;  %v2471_v7 = vrot.slane %v8230_v2, 1  ;;  %v2472_v37 = vrot.slane %v8202_v54, 2  ;;  %v11239_v54 = vld [vmem:[#allocation68_spill] sm:$0xff] }
 0x1a8   : > { %v9221_v14 = vadd.f32 %v1822_v38, %v1354_v34 }
 0x1a9   : > { %v1361_v63 = vpop.f32.mrf.mxu1  ;;  %v7014_v44 = vpop.f32.mrf.mxu0  ;;  %v2470_v38 = vsel %vm2459_vm5, %v8913_v47, %v2469_v3 }
 0x1aa   : > { %v1362_v62 = vadd.f32 %v1361_v63, %v8906_v45 }
 0x1ab   : > { %v6884_v15 = vpop.f32.mrf.mxu1  ;;  %v1827_v0 = vpop.f32.mrf.mxu0  ;;  %7248 = vmatmul.mubr.msk.bf16.vlgmr.msra.gmra.mxu0 %vm782_vm3, %v8927_v27 }
 0x1ac   : > { %v9229_v6 = vadd.f32 %v1827_v0, %v1359_v49  ;;  %7514 = vmatpush3.bf16.msra.mxu0 %v3610_v31  ;;  %7251 = vmatprep.mubr.msk.bf16.mxu0 %vm8047_vm1, %v11088_v1  ;;  %v2473_v15 = vor.u32 %v2472_v37, %v2471_v7 }
 0x1ad   : > { %v1366_v34 = vpop.f32.mrf.mxu1  ;;  %7118 = vmatmul.mubr.msk.bf16.gmra.mxu1 %vm782_vm3, %v8650_v4  ;;  %v7017_v33 = vpop.f32.mrf.mxu0  ;;  %7781 = vmatprep.subr.bf16.mxu0 %v11088_v1 }
 0x1ae   : > { %7121 = vmatprep.mubr.msk.bf16.mxu1 %vm8047_vm1, %v11088_v1  ;;  %v1367_v31 = vadd.f32 %v1366_v34, %v8915_v43 }
 0x1af   : > { %v6887_v27 = vpop.f32.mrf.mxu1  ;;  %v1830_v40 = vpop.f32.mrf.mxu0 }
 0x1b0   : > { %v9239_v11 = vadd.f32 %v1830_v40, %v1362_v62  ;;  %v2474_v27 = vsel %vm2459_vm5, %v2469_v3, %v2473_v15  ;;  %v2475_v40 = vrot.slane %v8260_v22, 1 }
 0x1b1   : > { %v1369_v4 = vpop.f32.mrf.mxu1  ;;  %v7018_v44 = vpop.f32.mrf.mxu0 }
 0x1b2   : > { %v1370_v33 = vadd.f32 %v1369_v4, %v8934_v24 }
 0x1b3   : > { %v6888_v49 = vpop.f32.mrf.mxu1  ;;  %v1835_v45 = vpop.f32.mrf.mxu0  ;;  %7252 = vmatmul.mubr.msk.bf16.gmra.mxu0 %vm782_vm3, %v2470_v38  ;;  %v2476_v38 = vrot.slane %v8233_v5, 2  ;;  %v11234_v5 = vld [vmem:[#allocation122_spill] sm:$0xff] }
 0x1b4   : > { %v9247_v63 = vadd.f32 %v1835_v45, %v1367_v31  ;;  %7255 = vmatprep.mubr.msk.bf16.mxu0 %vm8047_vm1, %v11088_v1 }
 0x1b5   : > { %v1374_v0 = vpop.f32.mrf.mxu1  ;;  %7122 = vmatmul.mubr.msk.bf16.gmra.mxu1 %vm782_vm3, %v8662_v17  ;;  %v7021_v47 = vpop.f32.mrf.mxu0  ;;  %v2477_v4 = vor.u32 %v2476_v38, %v2475_v40 }
 0x1b6   : > { %7125 = vmatprep.mubr.msk.bf16.mxu1 %vm8047_vm1, %v11088_v1  ;;  %v1375_v17 = vadd.f32 %v1374_v0, %v8941_v55 }
 0x1b7   : > { %v6891_v43 = vpop.f32.mrf.mxu1  ;;  %v1838_v34 = vpop.f32.mrf.mxu0 }
 0x1b8   : > { %v9256_v62 = vadd.f32 %v1838_v34, %v1370_v33  ;;  %v2478_v33 = vsel %vm2459_vm5, %v2473_v15, %v2477_v4  ;;  %v2479_v43 = vrot.slane %v8301_v46, 1  ;;  %v2480_v34 = vrot.slane %v8263_v25, 2  ;;  %v11216_v15 = vld [vmem:[#allocation65_spill] sm:$0xff] }
 0x1b9   : > { %v1377_v7 = vpop.f32.mrf.mxu1  ;;  %v7022_v37 = vpop.f32.mrf.mxu0  ;;  %v11229_v25 = vld [vmem:[#allocation117_spill] sm:$0xff] }
 0x1ba   : > { %v1378_v45 = vadd.f32 %v1377_v7, %v8953_v21  ;;  %v2481_v7 = vor.u32 %v2480_v34, %v2479_v43 }
 0x1bb   : > { %v6892_v44 = vpop.f32.mrf.mxu1  ;;  %v1843_v31 = vpop.f32.mrf.mxu0  ;;  %7256 = vmatmul.mubr.msk.bf16.gmra.mxu0 %vm782_vm3, %v2474_v27 }
 0x1bc   : > { %v9263_v24 = vadd.f32 %v1843_v31, %v1375_v17  ;;  %7259 = vmatprep.mubr.msk.bf16.mxu0 %vm8047_vm1, %v11088_v1  ;;  %v11217_v31 = vld [vmem:[#allocation105_spill] sm:$0xff] }
 0x1bd   : > { %v1382_v49 = vpop.f32.mrf.mxu1  ;;  %7126 = vmatmul.mubr.msk.bf16.gmra.mxu1 %vm782_vm3, %v8674_v36  ;;  %v7025_v3 = vpop.f32.mrf.mxu0 }
 0x1be   : > { %7129 = vmatprep.mubr.msk.bf16.mxu1 %vm8047_vm1, %v11088_v1  ;;  %v1383_v36 = vadd.f32 %v1382_v49, %v8960_v48 }
 0x1bf   : > { %v6895_v55 = vpop.f32.mrf.mxu1  ;;  %v1846_v0 = vpop.f32.mrf.mxu0 }
 0x1c0   : > { %v9272_v47 = vadd.f32 %v1846_v0, %v1378_v45  ;;  %v2482_v55 = vsel %vm2459_vm5, %v2477_v4, %v2481_v7  ;;  %v11218_v0 = vld [vmem:[#allocation30_spill] sm:$0xff] }
 0x1c1   : > { %v1385_v27 = vpop.f32.mrf.mxu1  ;;  %v7026_v40 = vpop.f32.mrf.mxu0  ;;  %v11221_v4 = vld [vmem:[#allocation66_spill] sm:$0xff] }
 0x1c2   : > { %v1386_v3 = vadd.f32 %v1385_v27, %v11217_v31  ;;  %v11219_v40 = vld [vmem:[#allocation26_spill] sm:$0xff] }
 0x1c3   : > { %v6896_v38 = vpop.f32.mrf.mxu1  ;;  %v1851_v37 = vpop.f32.mrf.mxu0  ;;  %7260 = vmatmul.mubr.msk.bf16.gmra.mxu0 %vm782_vm3, %v2478_v33  ;;  %v2483_v33 = vrot.slane %v11218_v0, 1  ;;  %v2484_v43 = vrot.slane %v11219_v40, 2  ;;  %v11224_v40 = vld [vmem:[#allocation112_spill] sm:$0xff] }
 0x1c4   : > { %v9279_v21 = vadd.f32 %v1851_v37, %v1383_v36  ;;  %7263 = vmatprep.mubr.msk.bf16.mxu0 %vm8047_vm1, %v11088_v1  ;;  %v11220_v38 = vld [vmem:[#allocation108_spill] sm:$0xff] }
 0x1c5   : > { %v1390_v17 = vpop.f32.mrf.mxu1  ;;  %7130 = vmatmul.mubr.msk.bf16.gmra.mxu1 %vm782_vm3, %v11216_v15  ;;  %v7029_v44 = vpop.f32.mrf.mxu0  ;;  %v2485_v31 = vor.u32 %v2484_v43, %v2483_v33 }
 0x1c6   : > { %7133 = vmatprep.mubr.msk.bf16.mxu1 %vm8047_vm1, %v11088_v1  ;;  %v1391_v37 = vadd.f32 %v1390_v17, %v11220_v38 }
 0x1c7   : > { %v6899_v48 = vpop.f32.mrf.mxu1  ;;  %v1854_v49 = vpop.f32.mrf.mxu0 }
 0x1c8   : > { %v9288_v45 = vadd.f32 %v1854_v49, %v1386_v3 }
 0x1c9   : > { %v1393_v34 = vpop.f32.mrf.mxu1  ;;  %v7030_v36 = vpop.f32.mrf.mxu0 }
 0x1ca   : > { %v1394_v49 = vadd.f32 %v1393_v34, %v8992_v19 }
 0x1cb   : > { %v6900_v15 = vpop.f32.mrf.mxu1  ;;  %v1859_v44 = vpop.f32.mrf.mxu0  ;;  %7264 = vmatmul.mubr.msk.bf16.gmra.mxu0 %vm782_vm3, %v2482_v55  ;;  %v2486_v55 = vsel %vm2459_vm5, %v2481_v7, %v2485_v31  ;;  %v11225_v7 = vld [vmem:[#allocation67_spill] sm:$0xff] }
 0x1cc   : > { %v9295_v27 = vadd.f32 %v1859_v44, %v1391_v37  ;;  %7267 = vmatprep.mubr.msk.bf16.mxu0 %vm8047_vm1, %v11088_v1  ;;  %v11222_v37 = vld [vmem:[#allocation34_spill] sm:$0xff]  ;;  %v11223_v44 = vld [vmem:[#allocation31_spill] sm:$0xff] }
 0x1cd   : > { %v1398_v3 = vpop.f32.mrf.mxu1  ;;  %7134 = vmatmul.mubr.msk.bf16.gmra.mxu1 %vm782_vm3, %v11221_v4  ;;  %v7033_v48 = vpop.f32.mrf.mxu0  ;;  %v2487_v15 = vrot.slane %v11222_v37, 1  ;;  %v2488_v33 = vrot.slane %v11223_v44, 2 }
 0x1ce   : > { %7137 = vmatprep.mubr.msk.bf16.mxu1 %vm8047_vm1, %v11088_v1  ;;  %v1399_v4 = vadd.f32 %v1398_v3, %v11224_v40 }
 0x1cf   : > { %v6903_v17 = vpop.f32.mrf.mxu1  ;;  %v1862_v36 = vpop.f32.mrf.mxu0  ;;  %v2489_v34 = vor.u32 %v2488_v33, %v2487_v15 }
 0x1d0   : > { %v9304_v38 = vadd.f32 %v1862_v36, %v1394_v49  ;;  %v11226_v36 = vld [vmem:[#allocation114_spill] sm:$0xff] }
 0x1d1   : > { %v1401_v43 = vpop.f32.mrf.mxu1  ;;  %v7034_v59 = vpop.f32.mrf.mxu0 }
 0x1d2   : > { %v1402_v44 = vadd.f32 %v1401_v43, %v11226_v36 }
 0x1d3   : > { %v6904_v48 = vpop.f32.mrf.mxu1  ;;  %v1867_v0 = vpop.f32.mrf.mxu0  ;;  %7268 = vmatmul.mubr.msk.bf16.gmra.mxu0 %vm782_vm3, %v2486_v55  ;;  %v11227_v55 = vld [vmem:[#allocation38_spill] sm:$0xff] }
 0x1d4   : > { %v9311_v19 = vadd.f32 %v1867_v0, %v1399_v4  ;;  %7271 = vmatprep.mubr.msk.bf16.mxu0 %vm8047_vm1, %v11088_v1  ;;  %v2490_v0 = vsel %vm2459_vm5, %v2485_v31, %v2489_v34  ;;  %v2491_v4 = vrot.slane %v11227_v55, 1  ;;  %v11228_v48 = vld [vmem:[#allocation35_spill] sm:$0xff]  ;;  %v11230_v31 = vld [vmem:[#allocation69_spill] sm:$0xff] }
 0x1d5   : > { %v1406_v49 = vpop.f32.mrf.mxu1  ;;  %7138 = vmatmul.mubr.msk.bf16.gmra.mxu1 %vm782_vm3, %v11225_v7  ;;  %v7037_v17 = vpop.f32.mrf.mxu0  ;;  %v2492_v15 = vrot.slane %v11228_v48, 2 }
 0x1d6   : > { %7141 = vmatprep.mubr.msk.bf16.mxu1 %vm8047_vm1, %v11088_v1  ;;  %v1407_v7 = vadd.f32 %v1406_v49, %v11229_v25 }
 0x1d7   : > { %v6907_v59 = vpop.f32.mrf.mxu1  ;;  %v1870_v40 = vpop.f32.mrf.mxu0 }
 0x1d8   : > { %v9320_v3 = vadd.f32 %v1870_v40, %v1402_v44  ;;  %v2493_v44 = vor.u32 %v2492_v15, %v2491_v4  ;;  %v11231_v40 = vld [vmem:[#allocation119_spill] sm:$0xff] }
 0x1d9   : > { %v1409_v33 = vpop.f32.mrf.mxu1  ;;  %v7038_v37 = vpop.f32.mrf.mxu0 }
 0x1da   : > { %v1410_v48 = vadd.f32 %v1409_v33, %v11231_v40 }
 0x1db   : > { %v6908_v17 = vpop.f32.mrf.mxu1  ;;  %v1875_v46 = vpop.f32.mrf.mxu0  ;;  %7272 = vmatmul.mubr.msk.bf16.gmra.mxu0 %vm782_vm3, %v2490_v0  ;;  %v11232_v0 = vld [vmem:[#allocation42_spill] sm:$0xff] }
 0x1dc   : > { %v9327_v43 = vadd.f32 %v1875_v46, %v1407_v7  ;;  %7275 = vmatprep.mubr.msk.bf16.mxu0 %vm8047_vm1, %v11088_v1  ;;  %v2494_v46 = vsel %vm2459_vm5, %v2489_v34, %v2493_v44  ;;  %v2495_v7 = vrot.slane %v11232_v0, 1  ;;  %v11233_v17 = vld [vmem:[#allocation39_spill] sm:$0xff]  ;;  %v11235_v34 = vld [vmem:[#allocation72_spill] sm:$0xff] }
 0x1dd   : > { %v1414_v36 = vpop.f32.mrf.mxu1  ;;  %7142 = vmatmul.mubr.msk.bf16.gmra.mxu1 %vm782_vm3, %v11230_v31  ;;  %v7041_v59 = vpop.f32.mrf.mxu0  ;;  %v2496_v4 = vrot.slane %v11233_v17, 2 }
 0x1de   : > { %7145 = vmatprep.mubr.msk.bf16.mxu1 %vm8047_vm1, %v11088_v1  ;;  %v1415_v31 = vadd.f32 %v1414_v36, %v11234_v5 }
 0x1df   : > { %v6911_v25 = vpop.f32.mrf.mxu1  ;;  %v1878_v37 = vpop.f32.mrf.mxu0 }
 0x1e0   : > { %v9336_v49 = vadd.f32 %v1878_v37, %v1410_v48  ;;  %v2497_v48 = vor.u32 %v2496_v4, %v2495_v7  ;;  %v11236_v37 = vld [vmem:[#allocation123_spill] sm:$0xff] }
 0x1e1   : > { %v1417_v15 = vpop.f32.mrf.mxu1  ;;  %v7042_v55 = vpop.f32.mrf.mxu0 }
 0x1e2   : > { %v1418_v17 = vadd.f32 %v1417_v15, %v11236_v37 }
 0x1e3   : > { %v6912_v59 = vpop.f32.mrf.mxu1  ;;  %v1883_v22 = vpop.f32.mrf.mxu0  ;;  %7276 = vmatmul.mubr.msk.bf16.gmra.mxu0 %vm782_vm3, %v2494_v46  ;;  %v11237_v46 = vld [vmem:[#allocation46_spill] sm:$0xff] }
 0x1e4   : > { %v9343_v33 = vadd.f32 %v1883_v22, %v1415_v31  ;;  %7279 = vmatprep.mubr.msk.bf16.mxu0 %vm8047_vm1, %v11088_v1  ;;  %v2498_v22 = vsel %vm2459_vm5, %v2493_v44, %v2497_v48  ;;  %v2499_v31 = vrot.slane %v11237_v46, 1  ;;  %v11238_v59 = vld [vmem:[#allocation43_spill] sm:$0xff] }
 0x1e5   : > { %v1422_v40 = vpop.f32.mrf.mxu1  ;;  %7146 = vmatmul.mubr.msk.bf16.gmra.mxu1 %vm782_vm3, %v11235_v34  ;;  %v7045_v25 = vpop.f32.mrf.mxu0  ;;  %v2500_v7 = vrot.slane %v11238_v59, 2  ;;  %v11240_v44 = vld [vmem:[#allocation75_spill] sm:$0xff] }
 0x1e6   : > { %7149 = vmatprep.mubr.msk.bf16.mxu1 %vm8047_vm1, %v11088_v1  ;;  %v1423_v34 = vadd.f32 %v1422_v40, %v11239_v54 }
 0x1e7   : > { %v6915_v5 = vpop.f32.mrf.mxu1  ;;  %v1886_v55 = vpop.f32.mrf.mxu0 }
 0x1e8   : > { %v9352_v36 = vadd.f32 %v1886_v55, %v1418_v17  ;;  %v2501_v17 = vor.u32 %v2500_v7, %v2499_v31  ;;  %v11241_v55 = vld [vmem:[#allocation70_spill] sm:$0xff] }
 0x1e9   : > { %v1425_v4 = vpop.f32.mrf.mxu1  ;;  %v7046_v0 = vpop.f32.mrf.mxu0 }
 0x1ea   : > { %v1426_v59 = vadd.f32 %v1425_v4, %v11241_v55 }
 0x1eb   : > { %v6916_v25 = vpop.f32.mrf.mxu1  ;;  %v1891_v2 = vpop.f32.mrf.mxu0  ;;  %7280 = vmatmul.mubr.msk.bf16.gmra.mxu0 %vm782_vm3, %v2498_v22  ;;  %v11243_v22 = vld [vmem:[#allocation50_spill] sm:$0xff] }
 0x1ec   : > { %v9359_v15 = vadd.f32 %v1891_v2, %v1423_v34  ;;  %7283 = vmatprep.mubr.msk.bf16.mxu0 %vm8047_vm1, %v11088_v1  ;;  %v2502_v2 = vsel %vm2459_vm5, %v2497_v48, %v2501_v17  ;;  %v2503_v34 = vrot.slane %v11243_v22, 1  ;;  %v11244_v25 = vld [vmem:[#allocation47_spill] sm:$0xff]  ;;  %v11247_v48 = vld [vmem:[#allocation78_spill] sm:$0xff] }
 0x1ed   : > { %v1430_v37 = vpop.f32.mrf.mxu1  ;;  %7150 = vmatmul.mubr.msk.bf16.gmra.mxu1 %vm782_vm3, %v11240_v44  ;;  %v7049_v5 = vpop.f32.mrf.mxu0  ;;  %v2504_v31 = vrot.slane %v11244_v25, 2 }
 0x1ee   : > { %7153 = vmatprep.mubr.msk.bf16.mxu1 %vm8047_vm1, %v11088_v1  ;;  %v1431_v44 = vadd.f32 %v1430_v37, %v11245_v53 }
 0x1ef   : > { %v6919_v54 = vpop.f32.mrf.mxu1  ;;  %v1894_v0 = vpop.f32.mrf.mxu0 }
 0x1f0   : > { %v9368_v40 = vadd.f32 %v1894_v0, %v1426_v59  ;;  %v2505_v59 = vor.u32 %v2504_v31, %v2503_v34  ;;  %v11248_v0 = vld [vmem:[#allocation73_spill] sm:$0xff] }
 0x1f1   : > { %v1433_v7 = vpop.f32.mrf.mxu1  ;;  %v7050_v46 = vpop.f32.mrf.mxu0 }
 0x1f2   : > { %11242 = vst [vmem:[#allocation65_spill] sm:$0xff] %v9368_v40  ;;  %v1434_v25 = vadd.f32 %v1433_v7, %v11248_v0 }
 0x1f3   : > { %v6920_v5 = vpop.f32.mrf.mxu1  ;;  %v1899_v42 = vpop.f32.mrf.mxu0  ;;  %7284 = vmatmul.mubr.msk.bf16.gmra.mxu0 %vm782_vm3, %v2502_v2  ;;  %v11250_v2 = vld [vmem:[#allocation54_spill] sm:$0xff] }
 0x1f4   : > { %v9375_v4 = vadd.f32 %v1899_v42, %v1431_v44  ;;  %7287 = vmatprep.mubr.msk.bf16.mxu0 %vm8047_vm1, %v11088_v1  ;;  %v2506_v42 = vsel %vm2459_vm5, %v2501_v17, %v2505_v59  ;;  %v2507_v44 = vrot.slane %v11250_v2, 1  ;;  %v11251_v5 = vld [vmem:[#allocation51_spill] sm:$0xff]  ;;  %v11254_v17 = vld [vmem:[#allocation81_spill] sm:$0xff] }
 0x1f5   : > { %v1438_v55 = vpop.f32.mrf.mxu1  ;;  %7154 = vmatmul.mubr.msk.bf16.gmra.mxu1 %vm782_vm3, %v11247_v48  ;;  %v7053_v54 = vpop.f32.mrf.mxu0  ;;  %v2508_v34 = vrot.slane %v11251_v5, 2 }
 0x1f6   : > { %11246 = vst [vmem:[#allocation105_spill] sm:$0xff] %v9375_v4  ;;  %7157 = vmatprep.mubr.msk.bf16.mxu1 %vm8047_vm1, %v11088_v1  ;;  %v11252_v4 = vld [vmem:[#allocation74_spill] sm:$0xff] }
 0x1f7   : > { %v6923_v53 = vpop.f32.mrf.mxu1  ;;  %v1902_v46 = vpop.f32.mrf.mxu0  ;;  %v1439_v48 = vadd.f32 %v1438_v55, %v11252_v4 }
 0x1f8   : > { %v9384_v37 = vadd.f32 %v1902_v46, %v1434_v25  ;;  %v2509_v25 = vor.u32 %v2508_v34, %v2507_v44  ;;  %v11255_v46 = vld [vmem:[#allocation76_spill] sm:$0xff] }
 0x1f9   : > { %v1441_v31 = vpop.f32.mrf.mxu1  ;;  %v7054_v22 = vpop.f32.mrf.mxu0 }
 0x1fa   : > { %11249 = vst [vmem:[#allocation108_spill] sm:$0xff] %v9384_v37  ;;  %v1442_v5 = vadd.f32 %v1441_v31, %v11255_v46 }
 0x1fb   : > { %v6924_v54 = vpop.f32.mrf.mxu1  ;;  %v1907_v40 = vpop.f32.mrf.mxu0  ;;  %7288 = vmatmul.mubr.msk.bf16.gmra.mxu0 %vm782_vm3, %v2506_v42  ;;  %v11257_v42 = vld [vmem:[#allocation58_spill] sm:$0xff] }
 0x1fc   : > { %v9391_v7 = vadd.f32 %v1907_v40, %v1439_v48  ;;  %7291 = vmatprep.mubr.msk.bf16.mxu0 %vm8047_vm1, %v11088_v1  ;;  %v2510_v40 = vsel %vm2459_vm5, %v2505_v59, %v2509_v25  ;;  %v2511_v48 = vrot.slane %v11257_v42, 1  ;;  %v11258_v54 = vld [vmem:[#allocation55_spill] sm:$0xff]  ;;  %v11261_v59 = vld [vmem:[#allocation84_spill] sm:$0xff] }
 0x1fd   : > { %v1446_v0 = vpop.f32.mrf.mxu1  ;;  %7158 = vmatmul.mubr.msk.bf16.gmra.mxu1 %vm782_vm3, %v11254_v17  ;;  %v7057_v53 = vpop.f32.mrf.mxu0  ;;  %v2512_v44 = vrot.slane %v11258_v54, 2 }
 0x1fe   : > { %11253 = vst [vmem:[#allocation66_spill] sm:$0xff] %v9391_v7  ;;  %7161 = vmatprep.mubr.msk.bf16.mxu1 %vm8047_vm1, %v11088_v1  ;;  %v11259_v7 = vld [vmem:[#allocation77_spill] sm:$0xff] }
 0x1ff   : > { %v6927_v22 = vpop.f32.mrf.mxu1  ;;  %v1910_v4 = vpop.f32.mrf.mxu0  ;;  %v1447_v17 = vadd.f32 %v1446_v0, %v11259_v7 }
 0x200   : > { %v9400_v55 = vadd.f32 %v1910_v4, %v1442_v5  ;;  %v2513_v5 = vor.u32 %v2512_v44, %v2511_v48  ;;  %v11262_v4 = vld [vmem:[#allocation79_spill] sm:$0xff] }
 0x201   : > { %v1449_v34 = vpop.f32.mrf.mxu1  ;;  %v7058_v2 = vpop.f32.mrf.mxu0 }
 0x202   : > { %11256 = vst [vmem:[#allocation112_spill] sm:$0xff] %v9400_v55  ;;  %v1450_v54 = vadd.f32 %v1449_v34, %v11262_v4 }
 0x203   : > { %v6928_v53 = vpop.f32.mrf.mxu1  ;;  %v1915_v37 = vpop.f32.mrf.mxu0  ;;  %7292 = vmatmul.mubr.msk.bf16.gmra.mxu0 %vm782_vm3, %v2510_v40  ;;  %v11264_v40 = vld [vmem:[#allocation62_spill] sm:$0xff] }
 0x204   : > { %v9407_v31 = vadd.f32 %v1915_v37, %v1447_v17  ;;  %7295 = vmatprep.mubr.msk.bf16.mxu0 %vm8047_vm1, %v11088_v1  ;;  %v2514_v37 = vsel %vm2459_vm5, %v2509_v25, %v2513_v5  ;;  %v2515_v17 = vrot.slane %v11264_v40, 1  ;;  %v11265_v53 = vld [vmem:[#allocation59_spill] sm:$0xff] }
 0x205   : > { %v1454_v46 = vpop.f32.mrf.mxu1  ;;  %7162 = vmatmul.mubr.msk.bf16.gmra.mxu1 %vm782_vm3, %v11261_v59  ;;  %v7061_v22 = vpop.f32.mrf.mxu0  ;;  %v2516_v48 = vrot.slane %v11265_v53, 2  ;;  %v11268_v25 = vld [vmem:[#allocation87_spill] sm:$0xff] }
 0x206   : > { %11260 = vst [vmem:[#allocation67_spill] sm:$0xff] %v9407_v31  ;;  %7165 = vmatprep.mubr.msk.bf16.mxu1 %vm8047_vm1, %v11088_v1  ;;  %v11266_v31 = vld [vmem:[#allocation80_spill] sm:$0xff] }
 0x207   : > { %v6931_v2 = vpop.f32.mrf.mxu1  ;;  %v1918_v7 = vpop.f32.mrf.mxu0  ;;  %v1455_v59 = vadd.f32 %v1454_v46, %v11266_v31 }
 0x208   : > { %v9416_v0 = vadd.f32 %v1918_v7, %v1450_v54  ;;  %v2517_v54 = vor.u32 %v2516_v48, %v2515_v17  ;;  %v11269_v7 = vld [vmem:[#allocation82_spill] sm:$0xff] }
 0x209   : > { %v1457_v44 = vpop.f32.mrf.mxu1  ;;  %v7062_v42 = vpop.f32.mrf.mxu0 }
 0x20a   : > { %11263 = vst [vmem:[#allocation114_spill] sm:$0xff] %v9416_v0  ;;  %v1458_v53 = vadd.f32 %v1457_v44, %v11269_v7 }
 0x20b   : > { %v6932_v22 = vpop.f32.mrf.mxu1  ;;  %v1923_v55 = vpop.f32.mrf.mxu0  ;;  %7296 = vmatmul.mubr.msk.bf16.gmra.mxu0 %vm782_vm3, %v2514_v37  ;;  %v11271_v37 = vld [vmem:[#allocation27_spill] sm:$0xff] }
 0x20c   : > { %v9423_v34 = vadd.f32 %v1923_v55, %v1455_v59  ;;  %7299 = vmatprep.mubr.msk.bf16.mxu0 %vm8047_vm1, %v11088_v1  ;;  %v2518_v55 = vsel %vm2459_vm5, %v2513_v5, %v2517_v54  ;;  %v2519_v59 = vrot.slane %v11271_v37, 1  ;;  %v11272_v22 = vld [vmem:[#allocation24_spill] sm:$0xff]  ;;  %v11275_v5 = vld [vmem:[#allocation90_spill] sm:$0xff] }
 0x20d   : > { %v1462_v4 = vpop.f32.mrf.mxu1  ;;  %7166 = vmatmul.mubr.msk.bf16.gmra.mxu1 %vm782_vm3, %v11268_v25  ;;  %v7065_v2 = vpop.f32.mrf.mxu0  ;;  %v2520_v17 = vrot.slane %v11272_v22, 2 }
 0x20e   : > { %11267 = vst [vmem:[#allocation117_spill] sm:$0xff] %v9423_v34  ;;  %7169 = vmatprep.mubr.msk.bf16.mxu1 %vm8047_vm1, %v11088_v1  ;;  %v11273_v34 = vld [vmem:[#allocation83_spill] sm:$0xff] }
 0x20f   : > { %v6935_v42 = vpop.f32.mrf.mxu1  ;;  %v1926_v31 = vpop.f32.mrf.mxu0  ;;  %v1463_v25 = vadd.f32 %v1462_v4, %v11273_v34 }
 0x210   : > { %v9432_v46 = vadd.f32 %v1926_v31, %v1458_v53  ;;  %v2521_v53 = vor.u32 %v2520_v17, %v2519_v59  ;;  %v11276_v31 = vld [vmem:[#allocation85_spill] sm:$0xff] }
 0x211   : > { %v1465_v48 = vpop.f32.mrf.mxu1  ;;  %v7066_v40 = vpop.f32.mrf.mxu0 }
 0x212   : > { %11270 = vst [vmem:[#allocation69_spill] sm:$0xff] %v9432_v46  ;;  %v1466_v22 = vadd.f32 %v1465_v48, %v11276_v31 }
 0x213   : > { %v6936_v2 = vpop.f32.mrf.mxu1  ;;  %v1931_v0 = vpop.f32.mrf.mxu0  ;;  %7300 = vmatmul.mubr.msk.bf16.gmra.mxu0 %vm782_vm3, %v2518_v55  ;;  %v11278_v55 = vld [vmem:[#allocation3_spill] sm:$0xff] }
 0x214   : > { %v9439_v44 = vadd.f32 %v1931_v0, %v1463_v25  ;;  %7303 = vmatprep.mubr.msk.bf16.mxu0 %vm8047_vm1, %v11088_v1  ;;  %v2522_v0 = vsel %vm2459_vm5, %v2517_v54, %v2521_v53  ;;  %v2523_v25 = vrot.slane %v11278_v55, 1  ;;  %v11279_v2 = vld [vmem:[#allocation2_spill] sm:$0xff]  ;;  %v11282_v54 = vld [vmem:[#allocation93_spill] sm:$0xff] }
 0x215   : > { %v1470_v7 = vpop.f32.mrf.mxu1  ;;  %7170 = vmatmul.mubr.msk.bf16.gmra.mxu1 %vm782_vm3, %v11275_v5  ;;  %v7069_v42 = vpop.f32.mrf.mxu0  ;;  %v2524_v59 = vrot.slane %v11279_v2, 2 }
 0x216   : > { %11274 = vst [vmem:[#allocation119_spill] sm:$0xff] %v9439_v44  ;;  %7173 = vmatprep.mubr.msk.bf16.mxu1 %vm8047_vm1, %v11088_v1  ;;  %v11280_v44 = vld [vmem:[#allocation86_spill] sm:$0xff] }
 0x217   : > { %v6939_v40 = vpop.f32.mrf.mxu1  ;;  %v1934_v34 = vpop.f32.mrf.mxu0  ;;  %v1471_v5 = vadd.f32 %v1470_v7, %v11280_v44 }
 0x218   : > { %v9448_v4 = vadd.f32 %v1934_v34, %v1466_v22  ;;  %v2525_v22 = vor.u32 %v2524_v59, %v2523_v25  ;;  %v11283_v34 = vld [vmem:[#allocation88_spill] sm:$0xff] }
 0x219   : > { %v1473_v17 = vpop.f32.mrf.mxu1  ;;  %v7070_v37 = vpop.f32.mrf.mxu0 }
 0x21a   : > { %11277 = vst [vmem:[#allocation122_spill] sm:$0xff] %v9448_v4  ;;  %v1474_v2 = vadd.f32 %v1473_v17, %v11283_v34 }
 0x21b   : > { %v6940_v42 = vpop.f32.mrf.mxu1  ;;  %v1939_v46 = vpop.f32.mrf.mxu0  ;;  %7304 = vmatmul.mubr.msk.bf16.gmra.mxu0 %vm782_vm3, %v2522_v0  ;;  %v11285_v0 = vld [vmem:[#allocation6_spill] sm:$0xff] }
 0x21c   : > { %v9455_v48 = vadd.f32 %v1939_v46, %v1471_v5  ;;  %7307 = vmatprep.mubr.msk.bf16.mxu0 %vm8047_vm1, %v11088_v1  ;;  %v2526_v46 = vsel %vm2459_vm5, %v2521_v53, %v2525_v22  ;;  %v2527_v5 = vrot.slane %v11285_v0, 1  ;;  %v11286_v42 = vld [vmem:[#allocation4_spill] sm:$0xff] }
 0x21d   : > { %v1478_v31 = vpop.f32.mrf.mxu1  ;;  %7174 = vmatmul.mubr.msk.bf16.gmra.mxu1 %vm782_vm3, %v11282_v54  ;;  %v7073_v40 = vpop.f32.mrf.mxu0  ;;  %v2528_v25 = vrot.slane %v11286_v42, 2  ;;  %v11289_v53 = vld [vmem:[#allocation96_spill] sm:$0xff] }
 0x21e   : > { %11281 = vst [vmem:[#allocation72_spill] sm:$0xff] %v9455_v48  ;;  %7177 = vmatprep.mubr.msk.bf16.mxu1 %vm8047_vm1, %v11088_v1  ;;  %v11287_v48 = vld [vmem:[#allocation89_spill] sm:$0xff] }
 0x21f   : > { %v6943_v37 = vpop.f32.mrf.mxu1  ;;  %v1942_v44 = vpop.f32.mrf.mxu0  ;;  %v1479_v54 = vadd.f32 %v1478_v31, %v11287_v48 }
 0x220   : > { %v9464_v7 = vadd.f32 %v1942_v44, %v1474_v2  ;;  %v2529_v2 = vor.u32 %v2528_v25, %v2527_v5  ;;  %v11290_v44 = vld [vmem:[#allocation91_spill] sm:$0xff] }
 0x221   : > { %v1481_v59 = vpop.f32.mrf.mxu1  ;;  %v7074_v55 = vpop.f32.mrf.mxu0 }
 0x222   : > { %11284 = vst [vmem:[#allocation123_spill] sm:$0xff] %v9464_v7  ;;  %v1482_v42 = vadd.f32 %v1481_v59, %v11290_v44 }
 0x223   : > { %v6944_v40 = vpop.f32.mrf.mxu1  ;;  %v1947_v4 = vpop.f32.mrf.mxu0  ;;  %7308 = vmatmul.mubr.msk.bf16.gmra.mxu0 %vm782_vm3, %v2526_v46  ;;  %v11292_v46 = vld [vmem:[#allocation10_spill] sm:$0xff] }
 0x224   : > { %v9471_v17 = vadd.f32 %v1947_v4, %v1479_v54  ;;  %7311 = vmatprep.mubr.msk.bf16.mxu0 %vm8047_vm1, %v11088_v1  ;;  %v2530_v4 = vsel %vm2459_vm5, %v2525_v22, %v2529_v2  ;;  %v2531_v54 = vrot.slane %v11292_v46, 1  ;;  %v11293_v40 = vld [vmem:[#allocation7_spill] sm:$0xff] }
 0x225   : > { %v1486_v34 = vpop.f32.mrf.mxu1  ;;  %7178 = vmatmul.mubr.msk.bf16.gmra.mxu1 %vm782_vm3, %v11289_v53  ;;  %v7077_v37 = vpop.f32.mrf.mxu0  ;;  %v2532_v5 = vrot.slane %v11293_v40, 2  ;;  %v11296_v22 = vld [vmem:[#allocation99_spill] sm:$0xff] }
 0x226   : > { %11288 = vst [vmem:[#allocation68_spill] sm:$0xff] %v9471_v17  ;;  %7181 = vmatprep.mubr.msk.bf16.mxu1 %vm8047_vm1, %v11088_v1  ;;  %v11294_v17 = vld [vmem:[#allocation92_spill] sm:$0xff] }
 0x227   : > { %v6947_v55 = vpop.f32.mrf.mxu1  ;;  %v1950_v48 = vpop.f32.mrf.mxu0  ;;  %v1487_v53 = vadd.f32 %v1486_v34, %v11294_v17 }
 0x228   : > { %v9480_v31 = vadd.f32 %v1950_v48, %v1482_v42  ;;  %v2533_v42 = vor.u32 %v2532_v5, %v2531_v54  ;;  %v11297_v48 = vld [vmem:[#allocation94_spill] sm:$0xff] }
 0x229   : > { %v1489_v25 = vpop.f32.mrf.mxu1  ;;  %v7078_v0 = vpop.f32.mrf.mxu0 }
 0x22a   : > { %11291 = vst [vmem:[#allocation75_spill] sm:$0xff] %v9480_v31  ;;  %v1490_v40 = vadd.f32 %v1489_v25, %v11297_v48 }
 0x22b   : > { %v6948_v37 = vpop.f32.mrf.mxu1  ;;  %v1955_v7 = vpop.f32.mrf.mxu0  ;;  %7312 = vmatmul.mubr.msk.bf16.gmra.mxu0 %vm782_vm3, %v2530_v4  ;;  %v11299_v4 = vld [vmem:[#allocation14_spill] sm:$0xff] }
 0x22c   : > { %v9487_v59 = vadd.f32 %v1955_v7, %v1487_v53  ;;  %7315 = vmatprep.mubr.msk.bf16.mxu0 %vm8047_vm1, %v11088_v1  ;;  %v2534_v7 = vsel %vm2459_vm5, %v2529_v2, %v2533_v42  ;;  %v2535_v53 = vrot.slane %v11299_v4, 1  ;;  %v11300_v37 = vld [vmem:[#allocation11_spill] sm:$0xff]  ;;  %v11303_v2 = vld [vmem:[#allocation102_spill] sm:$0xff] }
 0x22d   : > { %v1494_v44 = vpop.f32.mrf.mxu1  ;;  %7182 = vmatmul.mubr.msk.bf16.gmra.mxu1 %vm782_vm3, %v11296_v22  ;;  %v7081_v55 = vpop.f32.mrf.mxu0  ;;  %v2536_v54 = vrot.slane %v11300_v37, 2 }
 0x22e   : > { %11295 = vst [vmem:[#allocation70_spill] sm:$0xff] %v9487_v59  ;;  %7185 = vmatprep.mubr.msk.bf16.mxu1 %vm8047_vm1, %v11088_v1  ;;  %v11301_v59 = vld [vmem:[#allocation95_spill] sm:$0xff] }
 0x22f   : > { %v6951_v0 = vpop.f32.mrf.mxu1  ;;  %v1958_v17 = vpop.f32.mrf.mxu0  ;;  %v1495_v22 = vadd.f32 %v1494_v44, %v11301_v59 }
 0x230   : > { %v9496_v34 = vadd.f32 %v1958_v17, %v1490_v40  ;;  %v2537_v40 = vor.u32 %v2536_v54, %v2535_v53  ;;  %v11304_v17 = vld [vmem:[#allocation97_spill] sm:$0xff] }
 0x231   : > { %v1497_v5 = vpop.f32.mrf.mxu1  ;;  %v7082_v46 = vpop.f32.mrf.mxu0 }
 0x232   : > { %11298 = vst [vmem:[#allocation71_spill] sm:$0xff] %v9496_v34  ;;  %v1498_v37 = vadd.f32 %v1497_v5, %v11304_v17 }
 0x233   : > { %v6952_v55 = vpop.f32.mrf.mxu1  ;;  %v1963_v31 = vpop.f32.mrf.mxu0  ;;  %7316 = vmatmul.mubr.msk.bf16.gmra.mxu0 %vm782_vm3, %v2534_v7  ;;  %v11306_v7 = vld [vmem:[#allocation18_spill] sm:$0xff] }
 0x234   : > { %v9503_v25 = vadd.f32 %v1963_v31, %v1495_v22  ;;  %7319 = vmatprep.mubr.msk.bf16.mxu0 %vm8047_vm1, %v11088_v1  ;;  %v2538_v31 = vsel %vm2459_vm5, %v2533_v42, %v2537_v40  ;;  %v2539_v22 = vrot.slane %v11306_v7, 1  ;;  %v11307_v55 = vld [vmem:[#allocation15_spill] sm:$0xff]  ;;  %v11310_v42 = vld [vmem:[#allocation106_spill] sm:$0xff] }
 0x235   : > { %v1502_v48 = vpop.f32.mrf.mxu1  ;;  %7186 = vmatmul.mubr.msk.bf16.gmra.mxu1 %vm782_vm3, %v11303_v2  ;;  %v7085_v0 = vpop.f32.mrf.mxu0  ;;  %v2540_v53 = vrot.slane %v11307_v55, 2 }
 0x236   : > { %11302 = vst [vmem:[#allocation78_spill] sm:$0xff] %v9503_v25  ;;  %7189 = vmatprep.mubr.msk.bf16.mxu1 %vm8047_vm1, %v11088_v1  ;;  %v11308_v25 = vld [vmem:[#allocation98_spill] sm:$0xff] }
 0x237   : > { %v6955_v46 = vpop.f32.mrf.mxu1  ;;  %v1966_v59 = vpop.f32.mrf.mxu0  ;;  %v1503_v2 = vadd.f32 %v1502_v48, %v11308_v25 }
 0x238   : > { %v9512_v44 = vadd.f32 %v1966_v59, %v1498_v37  ;;  %v2541_v37 = vor.u32 %v2540_v53, %v2539_v22  ;;  %v11311_v59 = vld [vmem:[#allocation100_spill] sm:$0xff] }
 0x239   : > { %v1505_v54 = vpop.f32.mrf.mxu1  ;;  %v7086_v4 = vpop.f32.mrf.mxu0 }
 0x23a   : > { %11305 = vst [vmem:[#allocation73_spill] sm:$0xff] %v9512_v44  ;;  %v1506_v55 = vadd.f32 %v1505_v54, %v11311_v59 }
 0x23b   : > { %v6956_v0 = vpop.f32.mrf.mxu1  ;;  %v1971_v34 = vpop.f32.mrf.mxu0  ;;  %7320 = vmatmul.mubr.msk.bf16.gmra.mxu0 %vm782_vm3, %v2538_v31  ;;  %v11313_v31 = vld [vmem:[#allocation22_spill] sm:$0xff] }
 0x23c   : > { %v9519_v5 = vadd.f32 %v1971_v34, %v1503_v2  ;;  %7323 = vmatprep.mubr.msk.bf16.mxu0 %vm8047_vm1, %v11088_v1  ;;  %v2542_v34 = vsel %vm2459_vm5, %v2537_v40, %v2541_v37  ;;  %v2543_v2 = vrot.slane %v11313_v31, 1  ;;  %v11314_v0 = vld [vmem:[#allocation19_spill] sm:$0xff]  ;;  %v11317_v40 = vld [vmem:[#allocation110_spill] sm:$0xff] }
 0x23d   : > { %v1510_v17 = vpop.f32.mrf.mxu1  ;;  %7190 = vmatmul.mubr.msk.bf16.gmra.mxu1 %vm782_vm3, %v11310_v42  ;;  %v7089_v46 = vpop.f32.mrf.mxu0  ;;  %v2544_v22 = vrot.slane %v11314_v0, 2 }
 0x23e   : > { %11309 = vst [vmem:[#allocation74_spill] sm:$0xff] %v9519_v5  ;;  %7193 = vmatprep.mubr.msk.bf16.mxu1 %vm8047_vm1, %v11088_v1  ;;  %v11315_v5 = vld [vmem:[#allocation101_spill] sm:$0xff] }
 0x23f   : > { %v6959_v4 = vpop.f32.mrf.mxu1  ;;  %v1974_v25 = vpop.f32.mrf.mxu0  ;;  %v1511_v42 = vadd.f32 %v1510_v17, %v11315_v5 }
 0x240   : > { %v9528_v48 = vadd.f32 %v1974_v25, %v1506_v55  ;;  %v2545_v55 = vor.u32 %v2544_v22, %v2543_v2  ;;  %v11318_v25 = vld [vmem:[#allocation103_spill] sm:$0xff] }
 0x241   : > { %v1513_v53 = vpop.f32.mrf.mxu1  ;;  %v7090_v7 = vpop.f32.mrf.mxu0 }
 0x242   : > { %11312 = vst [vmem:[#allocation81_spill] sm:$0xff] %v9528_v48  ;;  %v1514_v0 = vadd.f32 %v1513_v53, %v11318_v25 }
 0x243   : > { %v6960_v46 = vpop.f32.mrf.mxu1  ;;  %v1979_v44 = vpop.f32.mrf.mxu0  ;;  %7324 = vmatmul.mubr.msk.bf16.gmra.mxu0 %vm782_vm3, %v2542_v34  ;;  %v11320_v34 = vld [vmem:[#allocation28_spill] sm:$0xff] }
 0x244   : > { %v9535_v54 = vadd.f32 %v1979_v44, %v1511_v42  ;;  %7327 = vmatprep.mubr.msk.bf16.mxu0 %vm8047_vm1, %v11088_v1  ;;  %v2546_v44 = vsel %vm2459_vm5, %v2541_v37, %v2545_v55  ;;  %v2547_v42 = vrot.slane %v11320_v34, 1  ;;  %v11321_v46 = vld [vmem:[#allocation23_spill] sm:$0xff] }
 0x245   : > { %v1518_v59 = vpop.f32.mrf.mxu1  ;;  %7194 = vmatmul.mubr.msk.bf16.gmra.mxu1 %vm782_vm3, %v11317_v40  ;;  %v7093_v4 = vpop.f32.mrf.mxu0  ;;  %v2548_v2 = vrot.slane %v11321_v46, 2  ;;  %v11324_v37 = vld [vmem:[#allocation115_spill] sm:$0xff] }
 0x246   : > { %11316 = vst [vmem:[#allocation76_spill] sm:$0xff] %v9535_v54  ;;  %7197 = vmatprep.mubr.msk.bf16.mxu1 %vm8047_vm1, %v11088_v1  ;;  %v11322_v54 = vld [vmem:[#allocation104_spill] sm:$0xff] }
 0x247   : > { %v6963_v7 = vpop.f32.mrf.mxu1  ;;  %v1982_v5 = vpop.f32.mrf.mxu0  ;;  %v1519_v40 = vadd.f32 %v1518_v59, %v11322_v54 }
 0x248   : > { %v9544_v17 = vadd.f32 %v1982_v5, %v1514_v0  ;;  %v2549_v0 = vor.u32 %v2548_v2, %v2547_v42  ;;  %v11325_v5 = vld [vmem:[#allocation107_spill] sm:$0xff] }
 0x249   : > { %v1521_v22 = vpop.f32.mrf.mxu1  ;;  %v7094_v31 = vpop.f32.mrf.mxu0 }
 0x24a   : > { %11319 = vst [vmem:[#allocation77_spill] sm:$0xff] %v9544_v17  ;;  %v1522_v46 = vadd.f32 %v1521_v22, %v11325_v5 }
 0x24b   : > { %v6964_v4 = vpop.f32.mrf.mxu1  ;;  %v1987_v48 = vpop.f32.mrf.mxu0  ;;  %7328 = vmatmul.mubr.msk.bf16.gmra.mxu0 %vm782_vm3, %v2546_v44  ;;  %v11327_v44 = vld [vmem:[#allocation32_spill] sm:$0xff] }
 0x24c   : > { %v9551_v53 = vadd.f32 %v1987_v48, %v1519_v40  ;;  %7331 = vmatprep.mubr.msk.bf16.mxu0 %vm8047_vm1, %v11088_v1  ;;  %v2550_v48 = vsel %vm2459_vm5, %v2545_v55, %v2549_v0  ;;  %v2551_v40 = vrot.slane %v11327_v44, 1  ;;  %v11328_v4 = vld [vmem:[#allocation29_spill] sm:$0xff]  ;;  %v11331_v55 = vld [vmem:[#allocation120_spill] sm:$0xff] }
 0x24d   : > { %v1526_v25 = vpop.f32.mrf.mxu1  ;;  %7198 = vmatmul.mubr.msk.bf16.gmra.mxu1 %vm782_vm3, %v11324_v37  ;;  %v7097_v7 = vpop.f32.mrf.mxu0  ;;  %v2552_v42 = vrot.slane %v11328_v4, 2 }
 0x24e   : > { %11323 = vst [vmem:[#allocation84_spill] sm:$0xff] %v9551_v53  ;;  %7201 = vmatprep.mubr.msk.bf16.mxu1 %vm8047_vm1, %v11088_v1  ;;  %v11329_v53 = vld [vmem:[#allocation109_spill] sm:$0xff] }
 0x24f   : > { %v6967_v31 = vpop.f32.mrf.mxu1  ;;  %v1990_v54 = vpop.f32.mrf.mxu0  ;;  %v1527_v37 = vadd.f32 %v1526_v25, %v11329_v53 }
 0x250   : > { %v9560_v59 = vadd.f32 %v1990_v54, %v1522_v46  ;;  %v2553_v46 = vor.u32 %v2552_v42, %v2551_v40  ;;  %v11332_v54 = vld [vmem:[#allocation111_spill] sm:$0xff] }
 0x251   : > { %v1529_v2 = vpop.f32.mrf.mxu1  ;;  %v7098_v34 = vpop.f32.mrf.mxu0 }
 0x252   : > { %11326 = vst [vmem:[#allocation79_spill] sm:$0xff] %v9560_v59  ;;  %v1530_v4 = vadd.f32 %v1529_v2, %v11332_v54 }
 0x253   : > { %v6968_v7 = vpop.f32.mrf.mxu1  ;;  %v1995_v17 = vpop.f32.mrf.mxu0  ;;  %7332 = vmatmul.mubr.msk.bf16.gmra.mxu0 %vm782_vm3, %v2550_v48  ;;  %v11334_v48 = vld [vmem:[#allocation36_spill] sm:$0xff] }
 0x254   : > { %v9567_v22 = vadd.f32 %v1995_v17, %v1527_v37  ;;  %7335 = vmatprep.mubr.msk.bf16.mxu0 %vm8047_vm1, %v11088_v1  ;;  %v2554_v17 = vsel %vm2459_vm5, %v2549_v0, %v2553_v46  ;;  %v2555_v37 = vrot.slane %v11334_v48, 1  ;;  %v11335_v7 = vld [vmem:[#allocation33_spill] sm:$0xff]  ;;  %v11338_v0 = vld [vmem:[#allocation124_spill] sm:$0xff] }
 0x255   : > { %v1534_v5 = vpop.f32.mrf.mxu1  ;;  %7202 = vmatmul.mubr.msk.bf16.gmra.mxu1 %vm782_vm3, %v11331_v55  ;;  %v7101_v31 = vpop.f32.mrf.mxu0  ;;  %v2556_v40 = vrot.slane %v11335_v7, 2 }
 0x256   : > { %11330 = vst [vmem:[#allocation80_spill] sm:$0xff] %v9567_v22  ;;  %7205 = vmatprep.mubr.msk.bf16.mxu1 %vm8047_vm1, %v11088_v1  ;;  %v11336_v22 = vld [vmem:[#allocation113_spill] sm:$0xff] }
 0x257   : > { %v6971_v34 = vpop.f32.mrf.mxu1  ;;  %v1998_v53 = vpop.f32.mrf.mxu0  ;;  %v1535_v55 = vadd.f32 %v1534_v5, %v11336_v22 }
 0x258   : > { %v9576_v25 = vadd.f32 %v1998_v53, %v1530_v4  ;;  %v2557_v4 = vor.u32 %v2556_v40, %v2555_v37  ;;  %v11339_v53 = vld [vmem:[#allocation116_spill] sm:$0xff] }
 0x259   : > { %v1537_v42 = vpop.f32.mrf.mxu1  ;;  %v7102_v44 = vpop.f32.mrf.mxu0 }
 0x25a   : > { %11333 = vst [vmem:[#allocation87_spill] sm:$0xff] %v9576_v25  ;;  %v1538_v7 = vadd.f32 %v1537_v42, %v11339_v53 }
 0x25b   : > { %v6972_v31 = vpop.f32.mrf.mxu1  ;;  %v2003_v59 = vpop.f32.mrf.mxu0  ;;  %7336 = vmatmul.mubr.msk.bf16.gmra.mxu0 %vm782_vm3, %v2554_v17  ;;  %v11340_v17 = vld [vmem:[#allocation40_spill] sm:$0xff] }
 0x25c   : > { %v9583_v2 = vadd.f32 %v2003_v59, %v1535_v55  ;;  %7339 = vmatprep.mubr.msk.bf16.mxu0 %vm8047_vm1, %v11088_v1  ;;  %v2558_v59 = vsel %vm2459_vm5, %v2553_v46, %v2557_v4  ;;  %v2559_v55 = vrot.slane %v11340_v17, 1  ;;  %v11341_v31 = vld [vmem:[#allocation37_spill] sm:$0xff] }
 0x25d   : > { %v1542_v54 = vpop.f32.mrf.mxu1  ;;  %7206 = vmatmul.mubr.msk.bf16.gmra.mxu1 %vm782_vm3, %v11338_v0  ;;  %v7105_v34 = vpop.f32.mrf.mxu0  ;;  %v2560_v37 = vrot.slane %v11341_v31, 2 }
 0x25e   : > { %11337 = vst [vmem:[#allocation82_spill] sm:$0xff] %v9583_v2  ;;  %7209 = vmatprep.mubr.msk.bf16.mxu1 %vm8047_vm1, %v11088_v1  ;;  %v11342_v2 = vld [vmem:[#allocation118_spill] sm:$0xff] }
 0x25f   : > { %v6975_v44 = vpop.f32.mrf.mxu1  ;;  %v2006_v22 = vpop.f32.mrf.mxu0  ;;  %v1543_v0 = vadd.f32 %v1542_v54, %v11342_v2 }
 0x260   : > { %v9592_v5 = vadd.f32 %v2006_v22, %v1538_v7  ;;  %v2561_v7 = vor.u32 %v2560_v37, %v2559_v55  ;;  %v11343_v44 = vld [vmem:[#allocation121_spill] sm:$0xff] }
 0x261   : > { %v1545_v40 = vpop.f32.mrf.mxu1  ;;  %v7106_v48 = vpop.f32.mrf.mxu0  ;;  %v11346_v37 = vld [vmem:[#allocation41_spill] sm:$0xff] }
 0x262   : > { %v1546_v22 = vadd.f32 %v1545_v40, %v11343_v44  ;;  %v11344_v48 = vld [vmem:[#allocation125_spill] sm:$0xff] }
 0x263   : > { %v6976_v34 = vpop.f32.mrf.mxu1  ;;  %v2011_v25 = vpop.f32.mrf.mxu0  ;;  %7340 = vmatmul.mubr.msk.bf16.gmra.mxu0 %vm782_vm3, %v2558_v59  ;;  %v2562_v59 = vsel %vm2459_vm5, %v2557_v4, %v2561_v7 }
 0x264   : > { %v9599_v42 = vadd.f32 %v2011_v25, %v1543_v0  ;;  %7343 = vmatprep.mubr.msk.bf16.mxu0 %vm8047_vm1, %v11088_v1  ;;  %v11345_v0 = vld [vmem:[#allocation44_spill] sm:$0xff]  ;;  %v2564_v34 = vrot.slane %v11346_v37, 2 }
 0x265   : > { %v2128_v53 = vpop.f32.mrf.mxu1  ;;  %7210 = vmatmul.mubr.msk.bf16.gmra.mxu1 %vm782_vm3, %v9071_v41  ;;  %v7109_v46 = vpop.f32.mrf.mxu0  ;;  %v2563_v55 = vrot.slane %v11345_v0, 1 }
 0x266   : > { %v2391_v31 = vadd.f32 %v2128_v53, %v11344_v48  ;;  %7213 = vmatprep.mubr.msk.bf16.mxu1 %vm8047_vm1, %v11088_v1 }
 0x267   : > { %v7115_v2 = vpop.f32.mrf.mxu1  ;;  %v2014_v54 = vpop.f32.mrf.mxu0 }
 0x268   : > { %v9609_v25 = vadd.f32 %v2014_v54, %v1546_v22  ;;  %v2565_v22 = vor.u32 %v2564_v34, %v2563_v55 }
 0x269   : > { %v2131_v17 = vpop.f32.mrf.mxu1  ;;  %v7110_v41 = vpop.f32.mrf.mxu0 }
 0x26a   : > { %v2392_v46 = vadd.f32 %v2131_v17, %v9068_v35 }
 0x26b   : > { %v7116_v40 = vpop.f32.mrf.mxu1  ;;  %v2738_v44 = vpop.f32.mrf.mxu0  ;;  %7344 = vmatmul.mubr.msk.bf16.gmra.mxu0 %vm782_vm3, %v2562_v59  ;;  %v11347_v59 = vld [vmem:[#allocation48_spill] sm:$0xff] }
 0x26c   : > { %v9616_v53 = vadd.f32 %v2738_v44, %v2391_v31  ;;  %7347 = vmatprep.mubr.msk.bf16.mxu0 %vm8047_vm1, %v11088_v1  ;;  %v2566_v31 = vsel %vm2459_vm5, %v2561_v7, %v2565_v22  ;;  %v2567_v41 = vrot.slane %v11347_v59, 1  ;;  %v11348_v40 = vld [vmem:[#allocation45_spill] sm:$0xff] }
 0x26d   : > { %v2136_v48 = vpop.f32.mrf.mxu1  ;;  %7214 = vmatmul.mubr.msk.bf16.gmra.mxu1 %vm782_vm3, %v9089_v51  ;;  %v7249_v4 = vpop.f32.mrf.mxu0  ;;  %v2568_v55 = vrot.slane %v11348_v40, 2 }
 0x26e   : > { %v2393_v2 = vadd.f32 %v2136_v48, %v9076_v12  ;;  %7217 = vmatprep.mubr.msk.bf16.mxu1 %vm8047_vm1, %v11088_v1 }
 0x26f   : > { %v7119_v35 = vpop.f32.mrf.mxu1  ;;  %v2741_v17 = vpop.f32.mrf.mxu0 }
 0x270   : > { %v9625_v54 = vadd.f32 %v2741_v17, %v2392_v46  ;;  %v2569_v46 = vor.u32 %v2568_v55, %v2567_v41 }
 0x271   : > { %v2139_v34 = vpop.f32.mrf.mxu1  ;;  %v7250_v44 = vpop.f32.mrf.mxu0 }
 0x272   : > { %v2394_v51 = vadd.f32 %v2139_v34, %v9086_v26  ;;  %v11350_v44 = vld [vmem:[#allocation49_spill] sm:$0xff] }
 0x273   : > { %v7120_v4 = vpop.f32.mrf.mxu1  ;;  %v2746_v37 = vpop.f32.mrf.mxu0  ;;  %7348 = vmatmul.mubr.msk.bf16.gmra.mxu0 %vm782_vm3, %v2566_v31  ;;  %v2572_v41 = vrot.slane %v11350_v44, 2 }
 0x274   : > { %v9632_v12 = vadd.f32 %v2746_v37, %v2393_v2  ;;  %7351 = vmatprep.mubr.msk.bf16.mxu0 %vm8047_vm1, %v11088_v1  ;;  %v2570_v37 = vsel %vm2459_vm5, %v2565_v22, %v2569_v46  ;;  %v11349_v2 = vld [vmem:[#allocation52_spill] sm:$0xff] }
 0x275   : > { %v2144_v48 = vpop.f32.mrf.mxu1  ;;  %7218 = vmatmul.mubr.msk.bf16.gmra.mxu1 %vm782_vm3, %v9107_v23  ;;  %v7253_v7 = vpop.f32.mrf.mxu0  ;;  %v2571_v31 = vrot.slane %v11349_v2, 1 }
 0x276   : > { %v2395_v35 = vadd.f32 %v2144_v48, %v9094_v61  ;;  %7221 = vmatprep.mubr.msk.bf16.mxu1 %vm8047_vm1, %v11088_v1 }
 0x277   : > { %v7123_v26 = vpop.f32.mrf.mxu1  ;;  %v2749_v17 = vpop.f32.mrf.mxu0 }
 0x278   : > { %v9641_v34 = vadd.f32 %v2749_v17, %v2394_v51  ;;  %v2573_v51 = vor.u32 %v2572_v41, %v2571_v31 }
 0x279   : > { %v2147_v55 = vpop.f32.mrf.mxu1  ;;  %v7254_v4 = vpop.f32.mrf.mxu0 }
 0x27a   : > { %v2396_v23 = vadd.f32 %v2147_v55, %v9104_v39  ;;  %v11352_v4 = vld [vmem:[#allocation53_spill] sm:$0xff] }
 0x27b   : > { %v7124_v7 = vpop.f32.mrf.mxu1  ;;  %v2754_v40 = vpop.f32.mrf.mxu0  ;;  %7352 = vmatmul.mubr.msk.bf16.gmra.mxu0 %vm782_vm3, %v2570_v37  ;;  %v2576_v31 = vrot.slane %v11352_v4, 2 }
 0x27c   : > { %v9648_v61 = vadd.f32 %v2754_v40, %v2395_v35  ;;  %7355 = vmatprep.mubr.msk.bf16.mxu0 %vm8047_vm1, %v11088_v1  ;;  %v2574_v40 = vsel %vm2459_vm5, %v2569_v46, %v2573_v51  ;;  %v11351_v35 = vld [vmem:[#allocation56_spill] sm:$0xff] }
 0x27d   : > { %v2152_v48 = vpop.f32.mrf.mxu1  ;;  %7222 = vmatmul.mubr.msk.bf16.gmra.mxu1 %vm782_vm3, %v9125_v8  ;;  %v7257_v22 = vpop.f32.mrf.mxu0  ;;  %v2575_v37 = vrot.slane %v11351_v35, 1 }
 0x27e   : > { %v2397_v26 = vadd.f32 %v2152_v48, %v9112_v9  ;;  %7225 = vmatprep.mubr.msk.bf16.mxu1 %vm8047_vm1, %v11088_v1 }
 0x27f   : > { %v7127_v39 = vpop.f32.mrf.mxu1  ;;  %v2757_v17 = vpop.f32.mrf.mxu0 }
 0x280   : > { %v9657_v55 = vadd.f32 %v2757_v17, %v2396_v23  ;;  %v2577_v23 = vor.u32 %v2576_v31, %v2575_v37 }
 0x281   : > { %v2155_v41 = vpop.f32.mrf.mxu1  ;;  %v7258_v7 = vpop.f32.mrf.mxu0 }
 0x282   : > { %v2398_v8 = vadd.f32 %v2155_v41, %v9122_v16  ;;  %v11354_v7 = vld [vmem:[#allocation57_spill] sm:$0xff] }
 0x283   : > { %v7128_v22 = vpop.f32.mrf.mxu1  ;;  %v2762_v44 = vpop.f32.mrf.mxu0  ;;  %7356 = vmatmul.mubr.msk.bf16.gmra.mxu0 %vm782_vm3, %v2574_v40  ;;  %v2580_v37 = vrot.slane %v11354_v7, 2 }
 0x284   : > { %v9664_v9 = vadd.f32 %v2762_v44, %v2397_v26  ;;  %7359 = vmatprep.mubr.msk.bf16.mxu0 %vm8047_vm1, %v11088_v1  ;;  %v2578_v44 = vsel %vm2459_vm5, %v2573_v51, %v2577_v23  ;;  %v11353_v26 = vld [vmem:[#allocation60_spill] sm:$0xff] }
 0x285   : > { %v2160_v48 = vpop.f32.mrf.mxu1  ;;  %7226 = vmatmul.mubr.msk.bf16.gmra.mxu1 %vm782_vm3, %v9143_v57  ;;  %v7261_v46 = vpop.f32.mrf.mxu0  ;;  %v2579_v40 = vrot.slane %v11353_v26, 1 }
 0x286   : > { %v2399_v39 = vadd.f32 %v2160_v48, %v9130_v32  ;;  %7229 = vmatprep.mubr.msk.bf16.mxu1 %vm8047_vm1, %v11088_v1 }
 0x287   : > { %v7131_v16 = vpop.f32.mrf.mxu1  ;;  %v2765_v17 = vpop.f32.mrf.mxu0 }
 0x288   : > { %v9673_v41 = vadd.f32 %v2765_v17, %v2398_v8  ;;  %v2581_v8 = vor.u32 %v2580_v37, %v2579_v40  ;;  %v11356_v40 = vld [vmem:[#allocation61_spill] sm:$0xff] }
 0x289   : > { %v2163_v31 = vpop.f32.mrf.mxu1  ;;  %v7262_v22 = vpop.f32.mrf.mxu0  ;;  %v2584_v37 = vrot.slane %v11356_v40, 2 }
 0x28a   : > { %v2400_v57 = vadd.f32 %v2163_v31, %v9140_v18 }
 0x28b   : > { %v7132_v46 = vpop.f32.mrf.mxu1  ;;  %v2770_v4 = vpop.f32.mrf.mxu0  ;;  %7360 = vmatmul.mubr.msk.bf16.gmra.mxu0 %vm782_vm3, %v2578_v44 }
 0x28c   : > { %v9680_v32 = vadd.f32 %v2770_v4, %v2399_v39  ;;  %7363 = vmatprep.mubr.msk.bf16.mxu0 %vm8047_vm1, %v11088_v1  ;;  %v2582_v4 = vsel %vm2459_vm5, %v2577_v23, %v2581_v8  ;;  %v11355_v39 = vld [vmem:[#allocation63_spill] sm:$0xff] }
 0x28d   : > { %v2168_v48 = vpop.f32.mrf.mxu1  ;;  %7230 = vmatmul.mubr.msk.bf16.gmra.mxu1 %vm782_vm3, %v9161_v58  ;;  %v7265_v51 = vpop.f32.mrf.mxu0  ;;  %v2583_v31 = vrot.slane %v11355_v39, 1 }
 0x28e   : > { %v2401_v16 = vadd.f32 %v2168_v48, %v9148_v28  ;;  %7233 = vmatprep.mubr.msk.bf16.mxu1 %vm8047_vm1, %v11088_v1 }
 0x28f   : > { %v7135_v18 = vpop.f32.mrf.mxu1  ;;  %v2773_v17 = vpop.f32.mrf.mxu0 }
 0x290   : > { %v9689_v44 = vadd.f32 %v2773_v17, %v2400_v57  ;;  %v2585_v57 = vor.u32 %v2584_v37, %v2583_v31  ;;  %v9701_v18 = vld [vmem:[%s8294_s8] sm:$0xff]  }
 0x291   : > { %v2171_v22 = vpop.f32.mrf.mxu1  ;;  %v7266_v46 = vpop.f32.mrf.mxu0  ;;  %11357 = vst [vmem:[#allocation83_spill] sm:$0xff] %v9701_v18  ;;  %v11082_v23 = vshrl.u32 %v9701_v18, 16 }
 0x292   : > { %v2402_v58 = vadd.f32 %v2171_v22, %v9158_v52  ;;  %v2586_v31 = vsel %vm2459_vm5, %v2581_v8, %v2585_v57 }
 0x293   : > { %v7136_v51 = vpop.f32.mrf.mxu1  ;;  %v2778_v28 = vpop.f32.mrf.mxu0  ;;  %7364 = vmatmul.mubr.msk.bf16.gmra.mxu0 %vm782_vm3, %v2582_v4  ;;  %v2589_v37 = vrot.slane %v11082_v23, 1 }
 0x294   : > { %v9696_v48 = vadd.f32 %v2778_v28, %v2401_v16  ;;  %7367 = vmatprep.mubr.msk.bf16.mxu0 %vm8047_vm1, %v11088_v1  ;;  %v11358_v51 = vld [vmem:[#allocation64_spill] sm:$0xff] }
 0x295   : > { %v2176_v17 = vpop.f32.mrf.mxu1  ;;  %7234 = vmatmul.mubr.msk.bf16.gmra.mxu1 %vm782_vm3, %v9179_v10  ;;  %v7269_v52 = vpop.f32.mrf.mxu0  ;;  %v2590_v28 = vrot.slane %v11358_v51, 2 }
 0x296   : > { %v2403_v22 = vadd.f32 %v2176_v17, %v9166_v56  ;;  %7237 = vmatprep.mubr.msk.bf16.mxu1 %vm8047_vm1, %v11088_v1  ;;  %v9717_v52 = vld [vmem:[%s8294_s8 + $0x8] sm:$0xff]  }
 0x297   : > { %v7139_v16 = vpop.f32.mrf.mxu1  ;;  %v2781_v4 = vpop.f32.mrf.mxu0  ;;  %11359 = vst [vmem:[#allocation90_spill] sm:$0xff] %v9717_v52  ;;  %v2591_v8 = vor.u32 %v2590_v28, %v2589_v37 }
 0x298   : > { %v9709_v46 = vadd.f32 %v2781_v4, %v2402_v58  ;;  %v11084_v58 = vshrl.u32 %v9717_v52, 16  ;;  %v11083_v4 = vshll.u32 %v9717_v52, 16 }
 0x299   : > { %v2179_v40 = vpop.f32.mrf.mxu1  ;;  %v7270_v39 = vpop.f32.mrf.mxu0  ;;  %v2592_v37 = vsel %vm2459_vm5, %v2585_v57, %v2591_v8 }
 0x29a   : > { %v2404_v10 = vadd.f32 %v2179_v40, %v9176_v20  ;;  %v2086_v40 = vrot.slane %v9717_v52, 1  ;;  %v2596_v28 = vrot.slane %v11084_v58, 1 }
 0x29b   : > { %v7140_v56 = vpop.f32.mrf.mxu1  ;;  %v2786_v17 = vpop.f32.mrf.mxu0  ;;  %7368 = vmatmul.mubr.msk.bf16.gmra.mxu0 %vm782_vm3, %v2586_v31 }
 0x29c   : > { %v9720_v16 = vadd.f32 %v2786_v17, %v2403_v22  ;;  %7371 = vmatprep.mubr.msk.bf16.mxu0 %vm8047_vm1, %v11088_v1 }
 0x29d   : > { %v2184_v23 = vpop.f32.mrf.mxu1  ;;  %7238 = vmatmul.mubr.msk.bf16.gmra.mxu1 %vm782_vm3, %v9199_v13  ;;  %v7273_v20 = vpop.f32.mrf.mxu0  ;;  %v2599_v13 = vrot.slane %v11083_v4, 2 }
 0x29e   : > { %v2405_v39 = vadd.f32 %v2184_v23, %v9184_v30  ;;  %7241 = vmatprep.mubr.msk.bf16.mxu1 %vm8047_vm1, %v11088_v1  ;;  %v11360_v20 = vrot.slane %v8576_v29, 1  ;;  %v7969_v29 = vld [vmem:[%s8102_s24 + $0x8] sm:$0xff]  }
 0x29f   : > { %v7143_v22 = vpop.f32.mrf.mxu1  ;;  %v2789_v31 = vpop.f32.mrf.mxu0  ;;  %v2600_v4 = vor.u32 %v2599_v13, %v2596_v28  ;;  %v6003_v13 = vld [vmem:[%s10941_s2 + $0xe] sm:$0x3] }
 0x2a0   : > { %v9732_v56 = vadd.f32 %v2789_v31, %v2404_v10  ;;  %v2087_v22 = vsel %vm1551_vm4, %v11360_v20, %v2086_v40  ;;  %v3070_v40 = vrot.slane %v7969_v29, 2 }
 0x2a1   : > { %v2187_v17 = vpop.f32.mrf.mxu1  ;;  %v7274_v30 = vpop.f32.mrf.mxu0  ;;  %v2601_v28 = vsel %vm2459_vm5, %v2591_v8, %v2600_v4  ;;  %v7971_v8 = vld [vmem:[%s8102_s24 + $0x18] sm:$0xff]  }
 0x2a2   : > { %v2406_v23 = vadd.f32 %v2187_v17, %v9194_v50  ;;  %v7970_v17 = vld [vmem:[%s8102_s24 + $0x10] sm:$0xff]   ;;  %v3073_v4 = vrot.slane %v7971_v8, 2 }
 0x2a3   : > { %v7144_v10 = vpop.f32.mrf.mxu1  ;;  %v2794_v31 = vpop.f32.mrf.mxu0  ;;  %7372 = vmatmul.mubr.msk.bf16.gmra.mxu0 %vm782_vm3, %v2592_v37  ;;  %v3071_v20 = vrot.slane %v7970_v17, 2  ;;  %v4218_v17 = vsel %vm882_vm0, %v6003_v13, 0 }
 0x2a4   : > { %v9744_v57 = vadd.f32 %v2794_v31, %v2405_v39  ;;  %7375 = vmatprep.mubr.msk.bf16.mxu0 %vm8047_vm1, %v11088_v1 }
 0x2a5   : > { %v2192_v58 = vpop.f32.mrf.mxu1  ;;  %7242 = vmatmul.mubr.msk.bf16.gmra.mxu1 %vm782_vm3, %v2087_v22  ;;  %v7277_v30 = vpop.f32.mrf.mxu0  ;;  %v3072_v31 = vsel %vm3069_vm6, %v3070_v40, %v3071_v20 }
 0x2a6   : > { %v2407_v50 = vadd.f32 %v2192_v58, %v9208_v60  ;;  %7381 = vmatprep.mubr.msk.bf16.mxu1 %vm8047_vm1, %v11088_v1 }
 0x2a7   : > { %v7147_v37 = vpop.f32.mrf.mxu1  ;;  %v2797_v39 = vpop.f32.mrf.mxu0 }
 0x2a8   : > { %v9754_v10 = vadd.f32 %v2797_v39, %v2406_v23 }
 0x2a9   : > { %v2195_v60 = vpop.f32.mrf.mxu1  ;;  %v7278_v58 = vpop.f32.mrf.mxu0 }
 0x2aa   : > { %v2408_v22 = vadd.f32 %v2195_v60, %v9221_v14  ;;  %v3074_v60 = vsel %vm3069_vm6, %v3071_v20, %v3073_v4 }
 0x2ab   : > { %v7148_v30 = vpop.f32.mrf.mxu1  ;;  %v2802_v29 = vpop.f32.mrf.mxu0  ;;  %7376 = vmatmul.mubr.msk.bf16.gmra.mxu0 %vm782_vm3, %v2601_v28 }
 0x2ac   : > { %v9764_v23 = vadd.f32 %v2802_v29, %v2407_v50  ;;  %7515 = vmatprep.mubr.msk.bf16.mxu0 %vm8047_vm1, %v11088_v1  ;;  %v6037_v50 = vld [vmem:[%s10941_s2 + $0x10] sm:$0x3] }
 0x2ad   : > { %v2200_v37 = vpop.f32.mrf.mxu1  ;;  %7382 = vmatmul.mubr.msk.bf16.vlgmr.msra.gmra.mxu1 %vm782_vm3, %v3072_v31  ;;  %v7281_v39 = vpop.f32.mrf.mxu0  ;;  %v4753_v30 = vsel %vm882_vm0, %v6037_v50, 0 }
 0x2ae   : > { %v2409_v14 = vadd.f32 %v2200_v37, %v9229_v6  ;;  %7648 = vmatpush3.bf16.msra.mxu1 %v4218_v17  ;;  %7385 = vmatprep.mubr.msk.bf16.mxu1 %vm8047_vm1, %v11088_v1 }
 0x2af   : > { %v7151_v40 = vpop.f32.mrf.mxu1  ;;  %v2805_v28 = vpop.f32.mrf.mxu0 }
 0x2b0   : > { %v9776_v13 = vadd.f32 %v2805_v28, %v2408_v22  ;;  %v7972_v22 = vld [vmem:[%s8102_s24 + $0x20] sm:$0xff]  }
 0x2b1   : > { %v2203_v58 = vpop.f32.mrf.mxu1  ;;  %v7282_v31 = vpop.f32.mrf.mxu0  ;;  %v3075_v37 = vrot.slane %v7972_v22, 2 }
 0x2b2   : > { %v2410_v6 = vadd.f32 %v2203_v58, %v9239_v11 }
 0x2b3   : > { %v7152_v29 = vpop.f32.mrf.mxu1  ;;  %v2810_v17 = vpop.f32.mrf.mxu0  ;;  %7516 = vmatmul.mubr.msk.bf16.vlgmr.msra.gmra.mxu0 %vm782_vm3, %v3074_v60  ;;  %v3076_v28 = vsel %vm3069_vm6, %v3073_v4, %v3075_v37 }
 0x2b4   : > { %v9782_v8 = vadd.f32 %v2810_v17, %v2409_v14  ;;  %7782 = vmatpush3.bf16.msra.mxu0 %v4753_v30  ;;  %7519 = vmatprep.mubr.msk.bf16.mxu0 %vm8047_vm1, %v11088_v1 }
 0x2b5   : > { %v2208_v39 = vpop.f32.mrf.mxu1  ;;  %7386 = vmatmul.mubr.msk.bf16.gmra.mxu1 %vm782_vm3, %v3074_v60  ;;  %v7285_v20 = vpop.f32.mrf.mxu0 }
 0x2b6   : > { %v2411_v50 = vadd.f32 %v2208_v39, %v9247_v63  ;;  %7389 = vmatprep.mubr.msk.bf16.mxu1 %vm8047_vm1, %v11088_v1  ;;  %v7973_v63 = vld [vmem:[%s8102_s24 + $0x28] sm:$0xff]  }
 0x2b7   : > { %v7155_v11 = vpop.f32.mrf.mxu1  ;;  %v2813_v40 = vpop.f32.mrf.mxu0  ;;  %v3077_v22 = vrot.slane %v7973_v63, 2 }
 0x2b8   : > { %v9791_v14 = vadd.f32 %v2813_v40, %v2410_v6 }
 0x2b9   : > { %v2211_v58 = vpop.f32.mrf.mxu1  ;;  %v7286_v31 = vpop.f32.mrf.mxu0 }
 0x2ba   : > { %v2412_v30 = vadd.f32 %v2211_v58, %v9256_v62 }
 0x2bb   : > { %v7156_v29 = vpop.f32.mrf.mxu1  ;;  %v2818_v17 = vpop.f32.mrf.mxu0  ;;  %7520 = vmatmul.mubr.msk.bf16.gmra.mxu0 %vm782_vm3, %v3076_v28 }
 0x2bc   : > { %v9796_v60 = vadd.f32 %v2818_v17, %v2411_v50  ;;  %7523 = vmatprep.mubr.msk.bf16.mxu0 %vm8047_vm1, %v11088_v1  ;;  %v3078_v50 = vsel %vm3069_vm6, %v3075_v37, %v3077_v22 }
 0x2bd   : > { %v2216_v39 = vpop.f32.mrf.mxu1  ;;  %7390 = vmatmul.mubr.msk.bf16.gmra.mxu1 %vm782_vm3, %v3076_v28  ;;  %v7289_v4 = vpop.f32.mrf.mxu0 }
 0x2be   : > { %v2413_v6 = vadd.f32 %v2216_v39, %v9263_v24  ;;  %7393 = vmatprep.mubr.msk.bf16.mxu1 %vm8047_vm1, %v11088_v1  ;;  %v7974_v24 = vld [vmem:[%s8102_s24 + $0x30] sm:$0xff]  }
 0x2bf   : > { %v7159_v62 = vpop.f32.mrf.mxu1  ;;  %v2821_v20 = vpop.f32.mrf.mxu0  ;;  %v3079_v63 = vrot.slane %v7974_v24, 2 }
 0x2c0   : > { %v9805_v11 = vadd.f32 %v2821_v20, %v2412_v30 }
 0x2c1   : > { %v2219_v40 = vpop.f32.mrf.mxu1  ;;  %v7290_v58 = vpop.f32.mrf.mxu0 }
 0x2c2   : > { %v2414_v31 = vadd.f32 %v2219_v40, %v9272_v47 }
 0x2c3   : > { %v7160_v29 = vpop.f32.mrf.mxu1  ;;  %v2826_v17 = vpop.f32.mrf.mxu0  ;;  %7524 = vmatmul.mubr.msk.bf16.gmra.mxu0 %vm782_vm3, %v3078_v50 }
 0x2c4   : > { %v9810_v28 = vadd.f32 %v2826_v17, %v2413_v6  ;;  %7527 = vmatprep.mubr.msk.bf16.mxu0 %vm8047_vm1, %v11088_v1  ;;  %v3080_v6 = vsel %vm3069_vm6, %v3077_v22, %v3079_v63 }
 0x2c5   : > { %v2224_v39 = vpop.f32.mrf.mxu1  ;;  %7394 = vmatmul.mubr.msk.bf16.gmra.mxu1 %vm782_vm3, %v3078_v50  ;;  %v7293_v37 = vpop.f32.mrf.mxu0 }
 0x2c6   : > { %v2415_v30 = vadd.f32 %v2224_v39, %v9279_v21  ;;  %7397 = vmatprep.mubr.msk.bf16.mxu1 %vm8047_vm1, %v11088_v1  ;;  %v7975_v21 = vld [vmem:[%s8102_s24 + $0x38] sm:$0xff]  }
 0x2c7   : > { %v7163_v47 = vpop.f32.mrf.mxu1  ;;  %v2829_v4 = vpop.f32.mrf.mxu0  ;;  %v3081_v24 = vrot.slane %v7975_v21, 2 }
 0x2c8   : > { %v9819_v62 = vadd.f32 %v2829_v4, %v2414_v31 }
 0x2c9   : > { %v2227_v20 = vpop.f32.mrf.mxu1  ;;  %v7294_v40 = vpop.f32.mrf.mxu0 }
 0x2ca   : > { %v2416_v58 = vadd.f32 %v2227_v20, %v9288_v45 }
 0x2cb   : > { %v7164_v29 = vpop.f32.mrf.mxu1  ;;  %v2834_v17 = vpop.f32.mrf.mxu0  ;;  %7528 = vmatmul.mubr.msk.bf16.gmra.mxu0 %vm782_vm3, %v3080_v6 }
 0x2cc   : > { %v9824_v50 = vadd.f32 %v2834_v17, %v2415_v30  ;;  %7531 = vmatprep.mubr.msk.bf16.mxu0 %vm8047_vm1, %v11088_v1  ;;  %v3082_v30 = vsel %vm3069_vm6, %v3079_v63, %v3081_v24 }
 0x2cd   : > { %v2232_v39 = vpop.f32.mrf.mxu1  ;;  %7398 = vmatmul.mubr.msk.bf16.gmra.mxu1 %vm782_vm3, %v3080_v6  ;;  %v7297_v22 = vpop.f32.mrf.mxu0 }
 0x2ce   : > { %v2417_v31 = vadd.f32 %v2232_v39, %v9295_v27  ;;  %7401 = vmatprep.mubr.msk.bf16.mxu1 %vm8047_vm1, %v11088_v1  ;;  %v7976_v27 = vld [vmem:[%s8102_s24 + $0x40] sm:$0xff]  }
 0x2cf   : > { %v7167_v45 = vpop.f32.mrf.mxu1  ;;  %v2837_v37 = vpop.f32.mrf.mxu0  ;;  %v3083_v21 = vrot.slane %v7976_v27, 2 }
 0x2d0   : > { %v9833_v47 = vadd.f32 %v2837_v37, %v2416_v58 }
 0x2d1   : > { %v2235_v4 = vpop.f32.mrf.mxu1  ;;  %v7298_v20 = vpop.f32.mrf.mxu0 }
 0x2d2   : > { %v2418_v40 = vadd.f32 %v2235_v4, %v9304_v38 }
 0x2d3   : > { %v7168_v29 = vpop.f32.mrf.mxu1  ;;  %v2842_v17 = vpop.f32.mrf.mxu0  ;;  %7532 = vmatmul.mubr.msk.bf16.gmra.mxu0 %vm782_vm3, %v3082_v30 }
 0x2d4   : > { %v9838_v6 = vadd.f32 %v2842_v17, %v2417_v31  ;;  %7535 = vmatprep.mubr.msk.bf16.mxu0 %vm8047_vm1, %v11088_v1  ;;  %v3084_v31 = vsel %vm3069_vm6, %v3081_v24, %v3083_v21 }
 0x2d5   : > { %v2240_v39 = vpop.f32.mrf.mxu1  ;;  %7402 = vmatmul.mubr.msk.bf16.gmra.mxu1 %vm782_vm3, %v3082_v30  ;;  %v7301_v63 = vpop.f32.mrf.mxu0 }
 0x2d6   : > { %v2419_v58 = vadd.f32 %v2240_v39, %v9311_v19  ;;  %7405 = vmatprep.mubr.msk.bf16.mxu1 %vm8047_vm1, %v11088_v1  ;;  %v7977_v19 = vld [vmem:[%s8102_s24 + $0x48] sm:$0xff]  }
 0x2d7   : > { %v7171_v38 = vpop.f32.mrf.mxu1  ;;  %v2845_v22 = vpop.f32.mrf.mxu0  ;;  %v3085_v27 = vrot.slane %v7977_v19, 2 }
 0x2d8   : > { %v9847_v45 = vadd.f32 %v2845_v22, %v2418_v40 }
 0x2d9   : > { %v2243_v37 = vpop.f32.mrf.mxu1  ;;  %v7302_v4 = vpop.f32.mrf.mxu0 }
 0x2da   : > { %v2420_v20 = vadd.f32 %v2243_v37, %v9320_v3 }
 0x2db   : > { %v7172_v29 = vpop.f32.mrf.mxu1  ;;  %v2850_v17 = vpop.f32.mrf.mxu0  ;;  %7536 = vmatmul.mubr.msk.bf16.gmra.mxu0 %vm782_vm3, %v3084_v31 }
 0x2dc   : > { %v9852_v30 = vadd.f32 %v2850_v17, %v2419_v58  ;;  %7539 = vmatprep.mubr.msk.bf16.mxu0 %vm8047_vm1, %v11088_v1  ;;  %v3086_v58 = vsel %vm3069_vm6, %v3083_v21, %v3085_v27 }
 0x2dd   : > { %v2248_v39 = vpop.f32.mrf.mxu1  ;;  %7406 = vmatmul.mubr.msk.bf16.gmra.mxu1 %vm782_vm3, %v3084_v31  ;;  %v7305_v24 = vpop.f32.mrf.mxu0 }
 0x2de   : > { %v2421_v40 = vadd.f32 %v2248_v39, %v9327_v43  ;;  %7409 = vmatprep.mubr.msk.bf16.mxu1 %vm8047_vm1, %v11088_v1  ;;  %v7978_v43 = vld [vmem:[%s8102_s24 + $0x50] sm:$0xff]  }
 0x2df   : > { %v7175_v3 = vpop.f32.mrf.mxu1  ;;  %v2853_v63 = vpop.f32.mrf.mxu0  ;;  %v3087_v19 = vrot.slane %v7978_v43, 2 }
 0x2e0   : > { %v9861_v38 = vadd.f32 %v2853_v63, %v2420_v20 }
 0x2e1   : > { %v2251_v22 = vpop.f32.mrf.mxu1  ;;  %v7306_v37 = vpop.f32.mrf.mxu0 }
 0x2e2   : > { %v2422_v4 = vadd.f32 %v2251_v22, %v9336_v49 }
 0x2e3   : > { %v7176_v29 = vpop.f32.mrf.mxu1  ;;  %v2858_v17 = vpop.f32.mrf.mxu0  ;;  %7540 = vmatmul.mubr.msk.bf16.gmra.mxu0 %vm782_vm3, %v3086_v58 }
 0x2e4   : > { %v9866_v31 = vadd.f32 %v2858_v17, %v2421_v40  ;;  %7543 = vmatprep.mubr.msk.bf16.mxu0 %vm8047_vm1, %v11088_v1  ;;  %v3088_v40 = vsel %vm3069_vm6, %v3085_v27, %v3087_v19 }
 0x2e5   : > { %v2256_v39 = vpop.f32.mrf.mxu1  ;;  %7410 = vmatmul.mubr.msk.bf16.gmra.mxu1 %vm782_vm3, %v3086_v58  ;;  %v7309_v21 = vpop.f32.mrf.mxu0 }
 0x2e6   : > { %v2423_v20 = vadd.f32 %v2256_v39, %v9343_v33  ;;  %7413 = vmatprep.mubr.msk.bf16.mxu1 %vm8047_vm1, %v11088_v1  ;;  %v7979_v33 = vld [vmem:[%s8102_s24 + $0x58] sm:$0xff]  }
 0x2e7   : > { %v7179_v49 = vpop.f32.mrf.mxu1  ;;  %v2861_v24 = vpop.f32.mrf.mxu0  ;;  %v3089_v43 = vrot.slane %v7979_v33, 2 }
 0x2e8   : > { %v9875_v3 = vadd.f32 %v2861_v24, %v2422_v4 }
 0x2e9   : > { %v2259_v63 = vpop.f32.mrf.mxu1  ;;  %v7310_v22 = vpop.f32.mrf.mxu0 }
 0x2ea   : > { %v2424_v37 = vadd.f32 %v2259_v63, %v9352_v36  ;;  %v11361_v22 = vld [vmem:[#allocation65_spill] sm:$0xff] }
 0x2eb   : > { %v7180_v29 = vpop.f32.mrf.mxu1  ;;  %v2866_v17 = vpop.f32.mrf.mxu0  ;;  %7544 = vmatmul.mubr.msk.bf16.gmra.mxu0 %vm782_vm3, %v3088_v40 }
 0x2ec   : > { %v9880_v58 = vadd.f32 %v2866_v17, %v2423_v20  ;;  %7547 = vmatprep.mubr.msk.bf16.mxu0 %vm8047_vm1, %v11088_v1  ;;  %v3090_v20 = vsel %vm3069_vm6, %v3087_v19, %v3089_v43 }
 0x2ed   : > { %v2264_v39 = vpop.f32.mrf.mxu1  ;;  %7414 = vmatmul.mubr.msk.bf16.gmra.mxu1 %vm782_vm3, %v3088_v40  ;;  %v7313_v27 = vpop.f32.mrf.mxu0 }
 0x2ee   : > { %v2425_v4 = vadd.f32 %v2264_v39, %v9359_v15  ;;  %7417 = vmatprep.mubr.msk.bf16.mxu1 %vm8047_vm1, %v11088_v1  ;;  %v7980_v15 = vld [vmem:[%s8102_s24 + $0x60] sm:$0xff]  }
 0x2ef   : > { %v7183_v36 = vpop.f32.mrf.mxu1  ;;  %v2869_v21 = vpop.f32.mrf.mxu0  ;;  %v3091_v39 = vrot.slane %v7980_v15, 2 }
 0x2f0   : > { %v9889_v49 = vadd.f32 %v2869_v21, %v2424_v37  ;;  %v11362_v37 = vld [vmem:[#allocation105_spill] sm:$0xff] }
 0x2f1   : > { %v2267_v24 = vpop.f32.mrf.mxu1  ;;  %v7314_v63 = vpop.f32.mrf.mxu0 }
 0x2f2   : > { %v2426_v29 = vadd.f32 %v2267_v24, %v11361_v22 }
 0x2f3   : > { %v7184_v17 = vpop.f32.mrf.mxu1  ;;  %v2874_v33 = vpop.f32.mrf.mxu0  ;;  %7548 = vmatmul.mubr.msk.bf16.gmra.mxu0 %vm782_vm3, %v3090_v20 }
 0x2f4   : > { %v9894_v40 = vadd.f32 %v2874_v33, %v2425_v4  ;;  %7551 = vmatprep.mubr.msk.bf16.mxu0 %vm8047_vm1, %v11088_v1  ;;  %v3092_v4 = vsel %vm3069_vm6, %v3089_v43, %v3091_v39  ;;  %v11363_v33 = vld [vmem:[#allocation108_spill] sm:$0xff] }
 0x2f5   : > { %v2272_v27 = vpop.f32.mrf.mxu1  ;;  %7418 = vmatmul.mubr.msk.bf16.gmra.mxu1 %vm782_vm3, %v3090_v20  ;;  %v7317_v19 = vpop.f32.mrf.mxu0 }
 0x2f6   : > { %v2427_v36 = vadd.f32 %v2272_v27, %v11362_v37  ;;  %7421 = vmatprep.mubr.msk.bf16.mxu1 %vm8047_vm1, %v11088_v1  ;;  %v7981_v27 = vld [vmem:[%s8102_s24 + $0x68] sm:$0xff]  }
 0x2f7   : > { %v7187_v21 = vpop.f32.mrf.mxu1  ;;  %v2877_v24 = vpop.f32.mrf.mxu0  ;;  %v3093_v19 = vrot.slane %v7981_v27, 2 }
 0x2f8   : > { %v9903_v63 = vadd.f32 %v2877_v24, %v2426_v29  ;;  %v11364_v29 = vld [vmem:[#allocation66_spill] sm:$0xff] }
 0x2f9   : > { %v2275_v22 = vpop.f32.mrf.mxu1  ;;  %v7318_v17 = vpop.f32.mrf.mxu0 }
 0x2fa   : > { %v2428_v15 = vadd.f32 %v2275_v22, %v11363_v33  ;;  %v11365_v33 = vld [vmem:[#allocation112_spill] sm:$0xff] }
 0x2fb   : > { %v7188_v52 = vpop.f32.mrf.mxu1  ;;  %v2882_v51 = vpop.f32.mrf.mxu0  ;;  %7552 = vmatmul.mubr.msk.bf16.gmra.mxu0 %vm782_vm3, %v3092_v4 }
 0x2fc   : > { %v9908_v20 = vadd.f32 %v2882_v51, %v2427_v36  ;;  %7555 = vmatprep.mubr.msk.bf16.mxu0 %vm8047_vm1, %v11088_v1  ;;  %v3094_v51 = vsel %vm3069_vm6, %v3091_v39, %v3093_v19 }
 0x2fd   : > { %v2280_v37 = vpop.f32.mrf.mxu1  ;;  %7422 = vmatmul.mubr.msk.bf16.gmra.mxu1 %vm782_vm3, %v3092_v4  ;;  %v7321_v43 = vpop.f32.mrf.mxu0 }
 0x2fe   : > { %v2429_v21 = vadd.f32 %v2280_v37, %v11364_v29  ;;  %7425 = vmatprep.mubr.msk.bf16.mxu1 %vm8047_vm1, %v11088_v1  ;;  %v7982_v37 = vld [vmem:[%s8102_s24 + $0x70] sm:$0xff]  }
 0x2ff   : > { %v7191_v52 = vpop.f32.mrf.mxu1  ;;  %v2885_v24 = vpop.f32.mrf.mxu0  ;;  %v3095_v43 = vrot.slane %v7982_v37, 2 }
 0x300   : > { %v9917_v22 = vadd.f32 %v2885_v24, %v2428_v15  ;;  %v11366_v15 = vld [vmem:[#allocation67_spill] sm:$0xff] }
 0x301   : > { %v2283_v36 = vpop.f32.mrf.mxu1  ;;  %v7322_v17 = vpop.f32.mrf.mxu0 }
 0x302   : > { %v2430_v27 = vadd.f32 %v2283_v36, %v11365_v33  ;;  %v11367_v33 = vld [vmem:[#allocation114_spill] sm:$0xff] }
 0x303   : > { %v7192_v18 = vpop.f32.mrf.mxu1  ;;  %v2890_v7 = vpop.f32.mrf.mxu0  ;;  %7556 = vmatmul.mubr.msk.bf16.gmra.mxu0 %vm782_vm3, %v3094_v51 }
 0x304   : > { %v9922_v4 = vadd.f32 %v2890_v7, %v2429_v21  ;;  %7559 = vmatprep.mubr.msk.bf16.mxu0 %vm8047_vm1, %v11088_v1  ;;  %v3096_v7 = vsel %vm3069_vm6, %v3093_v19, %v3095_v43 }
 0x305   : > { %v2288_v29 = vpop.f32.mrf.mxu1  ;;  %7426 = vmatmul.mubr.msk.bf16.gmra.mxu1 %vm782_vm3, %v3094_v51  ;;  %v7325_v39 = vpop.f32.mrf.mxu0 }
 0x306   : > { %v2431_v52 = vadd.f32 %v2288_v29, %v11366_v15  ;;  %7429 = vmatprep.mubr.msk.bf16.mxu1 %vm8047_vm1, %v11088_v1  ;;  %v7983_v29 = vld [vmem:[%s8102_s24 + $0x78] sm:$0xff]  }
 0x307   : > { %v7195_v18 = vpop.f32.mrf.mxu1  ;;  %v2893_v24 = vpop.f32.mrf.mxu0  ;;  %v3097_v39 = vrot.slane %v7983_v29, 2 }
 0x308   : > { %v9931_v36 = vadd.f32 %v2893_v24, %v2430_v27  ;;  %v11368_v27 = vld [vmem:[#allocation117_spill] sm:$0xff] }
 0x309   : > { %v2291_v21 = vpop.f32.mrf.mxu1  ;;  %v7326_v17 = vpop.f32.mrf.mxu0 }
 0x30a   : > { %v2432_v37 = vadd.f32 %v2291_v21, %v11367_v33  ;;  %v11370_v33 = vld [vmem:[#allocation69_spill] sm:$0xff] }
 0x30b   : > { %v7196_v26 = vpop.f32.mrf.mxu1  ;;  %v2898_v35 = vpop.f32.mrf.mxu0  ;;  %7560 = vmatmul.mubr.msk.bf16.gmra.mxu0 %vm782_vm3, %v3096_v7 }
 0x30c   : > { %v9936_v51 = vadd.f32 %v2898_v35, %v2431_v52  ;;  %7563 = vmatprep.mubr.msk.bf16.mxu0 %vm8047_vm1, %v11088_v1  ;;  %v3098_v35 = vsel %vm3069_vm6, %v3095_v43, %v3097_v39 }
 0x30d   : > { %v2296_v15 = vpop.f32.mrf.mxu1  ;;  %7430 = vmatmul.mubr.msk.bf16.gmra.mxu1 %vm782_vm3, %v3096_v7  ;;  %v7329_v19 = vpop.f32.mrf.mxu0 }
 0x30e   : > { %v2433_v18 = vadd.f32 %v2296_v15, %v11368_v27  ;;  %7433 = vmatprep.mubr.msk.bf16.mxu1 %vm8047_vm1, %v11088_v1  ;;  %v7984_v15 = vld [vmem:[%s8102_s24 + $0x80] sm:$0xff]  }
 0x30f   : > { %v7199_v26 = vpop.f32.mrf.mxu1  ;;  %v2901_v24 = vpop.f32.mrf.mxu0  ;;  %v3099_v19 = vrot.slane %v7984_v15, 2 }
 0x310   : > { %v9945_v21 = vadd.f32 %v2901_v24, %v2432_v37  ;;  %v11372_v37 = vld [vmem:[#allocation119_spill] sm:$0xff] }
 0x311   : > { %v2299_v52 = vpop.f32.mrf.mxu1  ;;  %v7330_v17 = vpop.f32.mrf.mxu0 }
 0x312   : > { %11369 = vst [vmem:[#allocation85_spill] sm:$0xff] %v9945_v21  ;;  %v2434_v29 = vadd.f32 %v2299_v52, %v11370_v33  ;;  %v11374_v33 = vld [vmem:[#allocation122_spill] sm:$0xff] }
 0x313   : > { %v7200_v2 = vpop.f32.mrf.mxu1  ;;  %v2906_v59 = vpop.f32.mrf.mxu0  ;;  %7564 = vmatmul.mubr.msk.bf16.gmra.mxu0 %vm782_vm3, %v3098_v35 }
 0x314   : > { %v9950_v7 = vadd.f32 %v2906_v59, %v2433_v18  ;;  %7567 = vmatprep.mubr.msk.bf16.mxu0 %vm8047_vm1, %v11088_v1  ;;  %v3100_v59 = vsel %vm3069_vm6, %v3097_v39, %v3099_v19 }
 0x315   : > { %v2304_v27 = vpop.f32.mrf.mxu1  ;;  %7434 = vmatmul.mubr.msk.bf16.gmra.mxu1 %vm782_vm3, %v3098_v35  ;;  %v7333_v43 = vpop.f32.mrf.mxu0 }
 0x316   : > { %11371 = vst [vmem:[#allocation86_spill] sm:$0xff] %v9950_v7  ;;  %v2435_v26 = vadd.f32 %v2304_v27, %v11372_v37  ;;  %7437 = vmatprep.mubr.msk.bf16.mxu1 %vm8047_vm1, %v11088_v1  ;;  %v7985_v27 = vld [vmem:[%s8102_s24 + $0x88] sm:$0xff]  }
 0x317   : > { %v7203_v2 = vpop.f32.mrf.mxu1  ;;  %v2909_v24 = vpop.f32.mrf.mxu0  ;;  %v3101_v43 = vrot.slane %v7985_v27, 2 }
 0x318   : > { %v9959_v52 = vadd.f32 %v2909_v24, %v2434_v29  ;;  %v11376_v29 = vld [vmem:[#allocation72_spill] sm:$0xff] }
 0x319   : > { %v2307_v18 = vpop.f32.mrf.mxu1  ;;  %v7334_v17 = vpop.f32.mrf.mxu0 }
 0x31a   : > { %11373 = vst [vmem:[#allocation93_spill] sm:$0xff] %v9959_v52  ;;  %v2436_v15 = vadd.f32 %v2307_v18, %v11374_v33  ;;  %v11378_v33 = vld [vmem:[#allocation123_spill] sm:$0xff] }
 0x31b   : > { %v7204_v0 = vpop.f32.mrf.mxu1  ;;  %v2914_v7 = vpop.f32.mrf.mxu0  ;;  %7568 = vmatmul.mubr.msk.bf16.gmra.mxu0 %vm782_vm3, %v3100_v59 }
 0x31c   : > { %v9964_v35 = vadd.f32 %v2914_v7, %v2435_v26  ;;  %7571 = vmatprep.mubr.msk.bf16.mxu0 %vm8047_vm1, %v11088_v1  ;;  %v3102_v7 = vsel %vm3069_vm6, %v3099_v19, %v3101_v43 }
 0x31d   : > { %v2312_v37 = vpop.f32.mrf.mxu1  ;;  %7438 = vmatmul.mubr.msk.bf16.gmra.mxu1 %vm782_vm3, %v3100_v59  ;;  %v7337_v39 = vpop.f32.mrf.mxu0 }
 0x31e   : > { %11375 = vst [vmem:[#allocation88_spill] sm:$0xff] %v9964_v35  ;;  %v2437_v2 = vadd.f32 %v2312_v37, %v11376_v29  ;;  %7441 = vmatprep.mubr.msk.bf16.mxu1 %vm8047_vm1, %v11088_v1  ;;  %v7986_v37 = vld [vmem:[%s8102_s24 + $0x90] sm:$0xff]  }
 0x31f   : > { %v7207_v0 = vpop.f32.mrf.mxu1  ;;  %v2917_v24 = vpop.f32.mrf.mxu0  ;;  %v3103_v39 = vrot.slane %v7986_v37, 2 }
 0x320   : > { %v9973_v18 = vadd.f32 %v2917_v24, %v2436_v15  ;;  %v11380_v15 = vld [vmem:[#allocation68_spill] sm:$0xff] }
 0x321   : > { %v2315_v26 = vpop.f32.mrf.mxu1  ;;  %v7338_v17 = vpop.f32.mrf.mxu0 }
 0x322   : > { %11377 = vst [vmem:[#allocation89_spill] sm:$0xff] %v9973_v18  ;;  %v2438_v27 = vadd.f32 %v2315_v26, %v11378_v33  ;;  %v11382_v33 = vld [vmem:[#allocation75_spill] sm:$0xff] }
 0x323   : > { %v7208_v35 = vpop.f32.mrf.mxu1  ;;  %v2922_v52 = vpop.f32.mrf.mxu0  ;;  %7572 = vmatmul.mubr.msk.bf16.gmra.mxu0 %vm782_vm3, %v3102_v7 }
 0x324   : > { %v9978_v59 = vadd.f32 %v2922_v52, %v2437_v2  ;;  %7575 = vmatprep.mubr.msk.bf16.mxu0 %vm8047_vm1, %v11088_v1  ;;  %v3104_v52 = vsel %vm3069_vm6, %v3101_v43, %v3103_v39  ;;  %v11384_v43 = vld [vmem:[#allocation5_spill] sm:$0xff] }
 0x325   : > { %v2320_v29 = vpop.f32.mrf.mxu1  ;;  %7442 = vmatmul.mubr.msk.bf16.gmra.mxu1 %vm782_vm3, %v3102_v7  ;;  %v7341_v19 = vpop.f32.mrf.mxu0 }
 0x326   : > { %11379 = vst [vmem:[#allocation96_spill] sm:$0xff] %v9978_v59  ;;  %v2439_v0 = vadd.f32 %v2320_v29, %v11380_v15  ;;  %7445 = vmatprep.mubr.msk.bf16.mxu1 %vm8047_vm1, %v11088_v1  ;;  %v7987_v29 = vld [vmem:[%s8102_s24 + $0x98] sm:$0xff]  }
 0x327   : > { %v7211_v35 = vpop.f32.mrf.mxu1  ;;  %v2925_v24 = vpop.f32.mrf.mxu0  ;;  %v3105_v19 = vrot.slane %v7987_v29, 2 }
 0x328   : > { %v9987_v26 = vadd.f32 %v2925_v24, %v2438_v27  ;;  %v3979_v35 = vrot.slane %v11384_v43, 3  ;;  %v11385_v24 = vld [vmem:[#allocation8_spill] sm:$0xff] }
 0x329   : > { %v2323_v2 = vpop.f32.mrf.mxu1  ;;  %v7342_v17 = vpop.f32.mrf.mxu0  ;;  %v3106_v29 = vsel %vm3069_vm6, %v3103_v39, %v3105_v19 }
 0x32a   : > { %11381 = vst [vmem:[#allocation91_spill] sm:$0xff] %v9987_v26  ;;  %v2440_v37 = vadd.f32 %v2323_v2, %v11382_v33  ;;  %v3978_v17 = vrot.slane %v11385_v24, 2  ;;  %v11386_v2 = vld [vmem:[#allocation70_spill] sm:$0xff] }
 0x32b   : > { %v7212_v59 = vpop.f32.mrf.mxu1  ;;  %v2930_v18 = vpop.f32.mrf.mxu0  ;;  %7576 = vmatmul.mubr.msk.bf16.gmra.mxu0 %vm782_vm3, %v3104_v52 }
 0x32c   : > { %v9992_v7 = vadd.f32 %v2930_v18, %v2439_v0  ;;  %7579 = vmatprep.mubr.msk.bf16.mxu0 %vm8047_vm1, %v11088_v1  ;;  %v10007_v21 = vor.u32 %v3979_v35, %v3978_v17 }
 0x32d   : > { %v2328_v15 = vpop.f32.mrf.mxu1  ;;  %7446 = vmatmul.mubr.msk.bf16.gmra.mxu1 %vm782_vm3, %v3104_v52  ;;  %v7345_v27 = vpop.f32.mrf.mxu0  ;;  %v11388_v52 = vld [vmem:[#allocation71_spill] sm:$0xff] }
 0x32e   : > { %11383 = vst [vmem:[#allocation92_spill] sm:$0xff] %v9992_v7  ;;  %v2441_v59 = vadd.f32 %v2328_v15, %v11386_v2  ;;  %7449 = vmatprep.mubr.msk.bf16.mxu1 %vm8047_vm1, %v11088_v1  ;;  %v7988_v2 = vld [vmem:[%s8102_s24 + $0xa0] sm:$0xff]  }
 0x32f   : > { %v7215_v18 = vpop.f32.mrf.mxu1  ;;  %v2933_v0 = vpop.f32.mrf.mxu0 }
 0x330   : > { %v10003_v33 = vadd.f32 %v2933_v0, %v2440_v37  ;;  %v3107_v37 = vrot.slane %v7988_v2, 2 }
 0x331   : > { %v2331_v7 = vpop.f32.mrf.mxu1  ;;  %v7346_v26 = vpop.f32.mrf.mxu0 }
 0x332   : > { %11387 = vst [vmem:[#allocation99_spill] sm:$0xff] %v10003_v33  ;;  %v2442_v27 = vadd.f32 %v2331_v7, %v11388_v52  ;;  %v11390_v26 = vld [vmem:[#allocation78_spill] sm:$0xff] }
 0x333   : > { %v7216_v43 = vpop.f32.mrf.mxu1  ;;  %v2938_v24 = vpop.f32.mrf.mxu0  ;;  %7580 = vmatmul.mubr.msk.bf16.gmra.mxu0 %vm782_vm3, %v3106_v29 }
 0x334   : > { %v10010_v15 = vadd.f32 %v2938_v24, %v2441_v59  ;;  %7583 = vmatprep.mubr.msk.bf16.mxu0 %vm8047_vm1, %v11088_v1  ;;  %v3108_v59 = vsel %vm3069_vm6, %v3105_v19, %v3107_v37  ;;  %v11392_v24 = vld [vmem:[#allocation73_spill] sm:$0xff] }
 0x335   : > { %v2336_v18 = vpop.f32.mrf.mxu1  ;;  %7450 = vmatmul.mubr.msk.bf16.gmra.mxu1 %vm782_vm3, %v3106_v29  ;;  %v7349_v39 = vpop.f32.mrf.mxu0 }
 0x336   : > { %11389 = vst [vmem:[#allocation94_spill] sm:$0xff] %v10010_v15  ;;  %v2443_v7 = vadd.f32 %v2336_v18, %v11390_v26  ;;  %7453 = vmatprep.mubr.msk.bf16.mxu1 %vm8047_vm1, %v11088_v1  ;;  %v7989_v18 = vld [vmem:[%s8102_s24 + $0xa8] sm:$0xff]  }
 0x337   : > { %v7219_v35 = vpop.f32.mrf.mxu1  ;;  %v2941_v17 = vpop.f32.mrf.mxu0  ;;  %v3109_v39 = vrot.slane %v7989_v18, 2 }
 0x338   : > { %v10019_v0 = vadd.f32 %v2941_v17, %v2442_v27  ;;  %v11394_v27 = vld [vmem:[#allocation74_spill] sm:$0xff] }
 0x339   : > { %v2339_v52 = vpop.f32.mrf.mxu1  ;;  %v7350_v43 = vpop.f32.mrf.mxu0 }
 0x33a   : > { %11391 = vst [vmem:[#allocation95_spill] sm:$0xff] %v10019_v0  ;;  %v2444_v2 = vadd.f32 %v2339_v52, %v11392_v24  ;;  %v11396_v24 = vld [vmem:[#allocation81_spill] sm:$0xff] }
 0x33b   : > { %v7220_v15 = vpop.f32.mrf.mxu1  ;;  %v2946_v33 = vpop.f32.mrf.mxu0  ;;  %7584 = vmatmul.mubr.msk.bf16.gmra.mxu0 %vm782_vm3, %v3108_v59 }
 0x33c   : > { %v10024_v29 = vadd.f32 %v2946_v33, %v2443_v7  ;;  %7587 = vmatprep.mubr.msk.bf16.mxu0 %vm8047_vm1, %v11088_v1  ;;  %v3110_v33 = vsel %vm3069_vm6, %v3107_v37, %v3109_v39 }
 0x33d   : > { %v2344_v26 = vpop.f32.mrf.mxu1  ;;  %7454 = vmatmul.mubr.msk.bf16.gmra.mxu1 %vm782_vm3, %v3108_v59  ;;  %v7353_v19 = vpop.f32.mrf.mxu0 }
 0x33e   : > { %11393 = vst [vmem:[#allocation102_spill] sm:$0xff] %v10024_v29  ;;  %v2445_v35 = vadd.f32 %v2344_v26, %v11394_v27  ;;  %7457 = vmatprep.mubr.msk.bf16.mxu1 %vm8047_vm1, %v11088_v1  ;;  %v7990_v26 = vld [vmem:[%s8102_s24 + $0xb0] sm:$0xff]  }
 0x33f   : > { %v7223_v15 = vpop.f32.mrf.mxu1  ;;  %v2949_v17 = vpop.f32.mrf.mxu0  ;;  %v3111_v19 = vrot.slane %v7990_v26, 2 }
 0x340   : > { %v10033_v52 = vadd.f32 %v2949_v17, %v2444_v2  ;;  %v11398_v2 = vld [vmem:[#allocation76_spill] sm:$0xff] }
 0x341   : > { %v2347_v7 = vpop.f32.mrf.mxu1  ;;  %v7354_v43 = vpop.f32.mrf.mxu0 }
 0x342   : > { %11395 = vst [vmem:[#allocation97_spill] sm:$0xff] %v10033_v52  ;;  %v2446_v18 = vadd.f32 %v2347_v7, %v11396_v24  ;;  %v11400_v24 = vld [vmem:[#allocation77_spill] sm:$0xff] }
 0x343   : > { %v7224_v29 = vpop.f32.mrf.mxu1  ;;  %v2954_v0 = vpop.f32.mrf.mxu0  ;;  %7588 = vmatmul.mubr.msk.bf16.gmra.mxu0 %vm782_vm3, %v3110_v33 }
 0x344   : > { %v10038_v59 = vadd.f32 %v2954_v0, %v2445_v35  ;;  %7591 = vmatprep.mubr.msk.bf16.mxu0 %vm8047_vm1, %v11088_v1  ;;  %v3112_v0 = vsel %vm3069_vm6, %v3109_v39, %v3111_v19 }
 0x345   : > { %v2352_v27 = vpop.f32.mrf.mxu1  ;;  %7458 = vmatmul.mubr.msk.bf16.gmra.mxu1 %vm782_vm3, %v3110_v33  ;;  %v7357_v37 = vpop.f32.mrf.mxu0 }
 0x346   : > { %11397 = vst [vmem:[#allocation98_spill] sm:$0xff] %v10038_v59  ;;  %v2447_v15 = vadd.f32 %v2352_v27, %v11398_v2  ;;  %7461 = vmatprep.mubr.msk.bf16.mxu1 %vm8047_vm1, %v11088_v1  ;;  %v7991_v27 = vld [vmem:[%s8102_s24 + $0xb8] sm:$0xff]  }
 0x347   : > { %v7227_v29 = vpop.f32.mrf.mxu1  ;;  %v2957_v17 = vpop.f32.mrf.mxu0  ;;  %v3113_v37 = vrot.slane %v7991_v27, 2 }
 0x348   : > { %v10047_v7 = vadd.f32 %v2957_v17, %v2446_v18  ;;  %v11402_v18 = vld [vmem:[#allocation84_spill] sm:$0xff] }
 0x349   : > { %v2355_v35 = vpop.f32.mrf.mxu1  ;;  %v7358_v43 = vpop.f32.mrf.mxu0 }
 0x34a   : > { %11399 = vst [vmem:[#allocation106_spill] sm:$0xff] %v10047_v7  ;;  %v2448_v26 = vadd.f32 %v2355_v35, %v11400_v24  ;;  %v11404_v24 = vld [vmem:[#allocation79_spill] sm:$0xff] }
 0x34b   : > { %v7228_v59 = vpop.f32.mrf.mxu1  ;;  %v2962_v52 = vpop.f32.mrf.mxu0  ;;  %7592 = vmatmul.mubr.msk.bf16.gmra.mxu0 %vm782_vm3, %v3112_v0 }
 0x34c   : > { %v10052_v33 = vadd.f32 %v2962_v52, %v2447_v15  ;;  %7595 = vmatprep.mubr.msk.bf16.mxu0 %vm8047_vm1, %v11088_v1  ;;  %v3114_v52 = vsel %vm3069_vm6, %v3111_v19, %v3113_v37 }
 0x34d   : > { %v2360_v2 = vpop.f32.mrf.mxu1  ;;  %7462 = vmatmul.mubr.msk.bf16.gmra.mxu1 %vm782_vm3, %v3112_v0  ;;  %v7361_v39 = vpop.f32.mrf.mxu0 }
 0x34e   : > { %11401 = vst [vmem:[#allocation100_spill] sm:$0xff] %v10052_v33  ;;  %v2449_v29 = vadd.f32 %v2360_v2, %v11402_v18  ;;  %7465 = vmatprep.mubr.msk.bf16.mxu1 %vm8047_vm1, %v11088_v1  ;;  %v7992_v2 = vld [vmem:[%s8102_s24 + $0xc0] sm:$0xff]  }
 0x34f   : > { %v7231_v59 = vpop.f32.mrf.mxu1  ;;  %v2965_v17 = vpop.f32.mrf.mxu0  ;;  %v3115_v39 = vrot.slane %v7992_v2, 2 }
 0x350   : > { %v10061_v35 = vadd.f32 %v2965_v17, %v2448_v26  ;;  %v11406_v26 = vld [vmem:[#allocation80_spill] sm:$0xff] }
 0x351   : > { %v2363_v15 = vpop.f32.mrf.mxu1  ;;  %v7362_v43 = vpop.f32.mrf.mxu0 }
 0x352   : > { %11403 = vst [vmem:[#allocation101_spill] sm:$0xff] %v10061_v35  ;;  %v2450_v27 = vadd.f32 %v2363_v15, %v11404_v24  ;;  %v11407_v24 = vld [vmem:[#allocation87_spill] sm:$0xff] }
 0x353   : > { %v7232_v33 = vpop.f32.mrf.mxu1  ;;  %v2970_v7 = vpop.f32.mrf.mxu0  ;;  %7596 = vmatmul.mubr.msk.bf16.gmra.mxu0 %vm782_vm3, %v3114_v52 }
 0x354   : > { %v10066_v0 = vadd.f32 %v2970_v7, %v2449_v29  ;;  %7599 = vmatprep.mubr.msk.bf16.mxu0 %vm8047_vm1, %v11088_v1  ;;  %v3116_v7 = vsel %vm3069_vm6, %v3113_v37, %v3115_v39 }
 0x355   : > { %v2368_v18 = vpop.f32.mrf.mxu1  ;;  %7466 = vmatmul.mubr.msk.bf16.gmra.mxu1 %vm782_vm3, %v3114_v52  ;;  %v7365_v19 = vpop.f32.mrf.mxu0 }
 0x356   : > { %11405 = vst [vmem:[#allocation110_spill] sm:$0xff] %v10066_v0  ;;  %v2451_v59 = vadd.f32 %v2368_v18, %v11406_v26  ;;  %7469 = vmatprep.mubr.msk.bf16.mxu1 %vm8047_vm1, %v11088_v1  ;;  %v7993_v18 = vld [vmem:[%s8102_s24 + $0xc8] sm:$0xff]  }
 0x357   : > { %v7235_v33 = vpop.f32.mrf.mxu1  ;;  %v2973_v17 = vpop.f32.mrf.mxu0  ;;  %v3117_v19 = vrot.slane %v7993_v18, 2 }
 0x358   : > { %v10075_v15 = vadd.f32 %v2973_v17, %v2450_v27  ;;  %v11409_v27 = vld [vmem:[#allocation82_spill] sm:$0xff] }
 0x359   : > { %v2371_v29 = vpop.f32.mrf.mxu1  ;;  %v7366_v43 = vpop.f32.mrf.mxu0 }
 0x35a   : > { %v2452_v2 = vadd.f32 %v2371_v29, %v11407_v24 }
 0x35b   : > { %v7236_v0 = vpop.f32.mrf.mxu1  ;;  %v2978_v35 = vpop.f32.mrf.mxu0  ;;  %7600 = vmatmul.mubr.msk.bf16.gmra.mxu0 %vm782_vm3, %v3116_v7 }
 0x35c   : > { %v10080_v52 = vadd.f32 %v2978_v35, %v2451_v59  ;;  %7603 = vmatprep.mubr.msk.bf16.mxu0 %vm8047_vm1, %v11088_v1  ;;  %v3118_v35 = vsel %vm3069_vm6, %v3115_v39, %v3117_v19 }
 0x35d   : > { %v2376_v26 = vpop.f32.mrf.mxu1  ;;  %7470 = vmatmul.mubr.msk.bf16.gmra.mxu1 %vm782_vm3, %v3116_v7  ;;  %v7369_v37 = vpop.f32.mrf.mxu0 }
 0x35e   : > { %11408 = vst [vmem:[#allocation103_spill] sm:$0xff] %v10080_v52  ;;  %v2453_v33 = vadd.f32 %v2376_v26, %v11409_v27  ;;  %7473 = vmatprep.mubr.msk.bf16.mxu1 %vm8047_vm1, %v11088_v1  ;;  %v7994_v26 = vld [vmem:[%s8102_s24 + $0xd0] sm:$0xff]  }
 0x35f   : > { %v7239_v0 = vpop.f32.mrf.mxu1  ;;  %v2981_v17 = vpop.f32.mrf.mxu0  ;;  %v3119_v37 = vrot.slane %v7994_v26, 2 }
 0x360   : > { %v10089_v29 = vadd.f32 %v2981_v17, %v2452_v2 }
 0x361   : > { %v2379_v59 = vpop.f32.mrf.mxu1  ;;  %v7370_v43 = vpop.f32.mrf.mxu0 }
 0x362   : > { %v2454_v24 = vadd.f32 %v2379_v59, %v9592_v5 }
 0x363   : > { %v7240_v18 = vpop.f32.mrf.mxu1  ;;  %v2986_v52 = vpop.f32.mrf.mxu0  ;;  %7604 = vmatmul.mubr.msk.bf16.gmra.mxu0 %vm782_vm3, %v3118_v35 }
 0x364   : > { %v10094_v7 = vadd.f32 %v2986_v52, %v2453_v33  ;;  %7607 = vmatprep.mubr.msk.bf16.mxu0 %vm8047_vm1, %v11088_v1  ;;  %v3120_v52 = vsel %vm3069_vm6, %v3117_v19, %v3119_v37 }
 0x365   : > { %v2384_v27 = vpop.f32.mrf.mxu1  ;;  %7474 = vmatmul.mubr.msk.bf16.gmra.mxu1 %vm782_vm3, %v3118_v35  ;;  %v7373_v39 = vpop.f32.mrf.mxu0 }
 0x366   : > { %v2455_v2 = vadd.f32 %v2384_v27, %v9599_v42  ;;  %7477 = vmatprep.mubr.msk.bf16.mxu1 %vm8047_vm1, %v11088_v1  ;;  %v7995_v42 = vld [vmem:[%s8102_s24 + $0xd8] sm:$0xff]  }
 0x367   : > { %v7243_v5 = vpop.f32.mrf.mxu1  ;;  %v2989_v0 = vpop.f32.mrf.mxu0  ;;  %v3121_v27 = vrot.slane %v7995_v42, 2 }
 0x368   : > { %v10103_v17 = vadd.f32 %v2989_v0, %v2454_v24 }
 0x369   : > { %v2387_v33 = vpop.f32.mrf.mxu1  ;;  %v7374_v59 = vpop.f32.mrf.mxu0 }
 0x36a   : > { %v2456_v43 = vadd.f32 %v2387_v33, %v9609_v25 }
 0x36b   : > { %v7244_v18 = vpop.f32.mrf.mxu1  ;;  %v2994_v26 = vpop.f32.mrf.mxu0  ;;  %7608 = vmatmul.mubr.msk.bf16.gmra.mxu0 %vm782_vm3, %v3120_v52 }
 0x36c   : > { %v10108_v35 = vadd.f32 %v2994_v26, %v2455_v2  ;;  %7611 = vmatprep.mubr.msk.bf16.mxu0 %vm8047_vm1, %v11088_v1  ;;  %v3122_v2 = vsel %vm3069_vm6, %v3119_v37, %v3121_v27 }
 0x36d   : > { %v3273_v39 = vpop.f32.mrf.mxu1  ;;  %7478 = vmatmul.mubr.msk.bf16.gmra.mxu1 %vm782_vm3, %v3120_v52  ;;  %v7377_v19 = vpop.f32.mrf.mxu0 }
 0x36e   : > { %v3536_v24 = vadd.f32 %v3273_v39, %v9616_v53  ;;  %7481 = vmatprep.mubr.msk.bf16.mxu1 %vm8047_vm1, %v11088_v1  ;;  %v7996_v53 = vld [vmem:[%s8102_s24 + $0xe0] sm:$0xff]  }
 0x36f   : > { %v7383_v25 = vpop.f32.mrf.mxu1  ;;  %v2997_v5 = vpop.f32.mrf.mxu0  ;;  %v3123_v39 = vrot.slane %v7996_v53, 2 }
 0x370   : > { %v10117_v0 = vadd.f32 %v2997_v5, %v2456_v43 }
 0x371   : > { %v3276_v33 = vpop.f32.mrf.mxu1  ;;  %v7378_v59 = vpop.f32.mrf.mxu0 }
 0x372   : > { %v3537_v18 = vadd.f32 %v3276_v33, %v9625_v54 }
 0x373   : > { %v7384_v26 = vpop.f32.mrf.mxu1  ;;  %v3646_v42 = vpop.f32.mrf.mxu0  ;;  %7612 = vmatmul.mubr.msk.bf16.gmra.mxu0 %vm782_vm3, %v3122_v2 }
 0x374   : > { %v10122_v52 = vadd.f32 %v3646_v42, %v3536_v24  ;;  %7615 = vmatprep.mubr.msk.bf16.mxu0 %vm8047_vm1, %v11088_v1  ;;  %v3124_v24 = vsel %vm3069_vm6, %v3121_v27, %v3123_v39 }
 0x375   : > { %v3281_v19 = vpop.f32.mrf.mxu1  ;;  %7482 = vmatmul.mubr.msk.bf16.gmra.mxu1 %vm782_vm3, %v3122_v2  ;;  %v7517_v37 = vpop.f32.mrf.mxu0 }
 0x376   : > { %v3538_v43 = vadd.f32 %v3281_v19, %v9632_v12  ;;  %7485 = vmatprep.mubr.msk.bf16.mxu1 %vm8047_vm1, %v11088_v1  ;;  %v7997_v12 = vld [vmem:[%s8102_s24 + $0xe8] sm:$0xff]  }
 0x377   : > { %v7387_v54 = vpop.f32.mrf.mxu1  ;;  %v3649_v25 = vpop.f32.mrf.mxu0  ;;  %v3125_v19 = vrot.slane %v7997_v12, 2 }
 0x378   : > { %v10131_v5 = vadd.f32 %v3649_v25, %v3537_v18 }
 0x379   : > { %v3284_v33 = vpop.f32.mrf.mxu1  ;;  %v7518_v59 = vpop.f32.mrf.mxu0 }
 0x37a   : > { %v3539_v26 = vadd.f32 %v3284_v33, %v9641_v34 }
 0x37b   : > { %v7388_v42 = vpop.f32.mrf.mxu1  ;;  %v3654_v53 = vpop.f32.mrf.mxu0  ;;  %7616 = vmatmul.mubr.msk.bf16.gmra.mxu0 %vm782_vm3, %v3124_v24 }
 0x37c   : > { %v10136_v2 = vadd.f32 %v3654_v53, %v3538_v43  ;;  %7619 = vmatprep.mubr.msk.bf16.mxu0 %vm8047_vm1, %v11088_v1  ;;  %v3126_v43 = vsel %vm3069_vm6, %v3123_v39, %v3125_v19 }
 0x37d   : > { %v3289_v37 = vpop.f32.mrf.mxu1  ;;  %7486 = vmatmul.mubr.msk.bf16.gmra.mxu1 %vm782_vm3, %v3124_v24  ;;  %v7521_v27 = vpop.f32.mrf.mxu0 }
 0x37e   : > { %v3540_v18 = vadd.f32 %v3289_v37, %v9648_v61  ;;  %7489 = vmatprep.mubr.msk.bf16.mxu1 %vm8047_vm1, %v11088_v1  ;;  %v7998_v61 = vld [vmem:[%s8102_s24 + $0xf0] sm:$0xff]  }
 0x37f   : > { %v7391_v34 = vpop.f32.mrf.mxu1  ;;  %v3657_v54 = vpop.f32.mrf.mxu0  ;;  %v3127_v37 = vrot.slane %v7998_v61, 2 }
 0x380   : > { %v10145_v25 = vadd.f32 %v3657_v54, %v3539_v26 }
 0x381   : > { %v3292_v33 = vpop.f32.mrf.mxu1  ;;  %v7522_v59 = vpop.f32.mrf.mxu0 }
 0x382   : > { %v3541_v42 = vadd.f32 %v3292_v33, %v9657_v55 }
 0x383   : > { %v7392_v53 = vpop.f32.mrf.mxu1  ;;  %v3662_v12 = vpop.f32.mrf.mxu0  ;;  %7620 = vmatmul.mubr.msk.bf16.gmra.mxu0 %vm782_vm3, %v3126_v43 }
 0x384   : > { %v10150_v24 = vadd.f32 %v3662_v12, %v3540_v18  ;;  %7623 = vmatprep.mubr.msk.bf16.mxu0 %vm8047_vm1, %v11088_v1  ;;  %v3128_v18 = vsel %vm3069_vm6, %v3125_v19, %v3127_v37 }
 0x385   : > { %v3297_v27 = vpop.f32.mrf.mxu1  ;;  %7490 = vmatmul.mubr.msk.bf16.gmra.mxu1 %vm782_vm3, %v3126_v43  ;;  %v7525_v39 = vpop.f32.mrf.mxu0 }
 0x386   : > { %v3542_v26 = vadd.f32 %v3297_v27, %v9664_v9  ;;  %7493 = vmatprep.mubr.msk.bf16.mxu1 %vm8047_vm1, %v11088_v1  ;;  %v7999_v9 = vld [vmem:[%s8102_s24 + $0xf8] sm:$0xff]  }
 0x387   : > { %v7395_v55 = vpop.f32.mrf.mxu1  ;;  %v3665_v34 = vpop.f32.mrf.mxu0  ;;  %v3129_v27 = vrot.slane %v7999_v9, 2 }
 0x388   : > { %v10159_v54 = vadd.f32 %v3665_v34, %v3541_v42 }
 0x389   : > { %v3300_v33 = vpop.f32.mrf.mxu1  ;;  %v7526_v59 = vpop.f32.mrf.mxu0 }
 0x38a   : > { %v3543_v53 = vadd.f32 %v3300_v33, %v9673_v41 }
 0x38b   : > { %v7396_v12 = vpop.f32.mrf.mxu1  ;;  %v3670_v61 = vpop.f32.mrf.mxu0  ;;  %7624 = vmatmul.mubr.msk.bf16.gmra.mxu0 %vm782_vm3, %v3128_v18 }
 0x38c   : > { %v10164_v43 = vadd.f32 %v3670_v61, %v3542_v26  ;;  %7627 = vmatprep.mubr.msk.bf16.mxu0 %vm8047_vm1, %v11088_v1  ;;  %v3130_v26 = vsel %vm3069_vm6, %v3127_v37, %v3129_v27 }
 0x38d   : > { %v3305_v39 = vpop.f32.mrf.mxu1  ;;  %7494 = vmatmul.mubr.msk.bf16.gmra.mxu1 %vm782_vm3, %v3128_v18  ;;  %v7529_v19 = vpop.f32.mrf.mxu0 }
 0x38e   : > { %v3544_v42 = vadd.f32 %v3305_v39, %v9680_v32  ;;  %7497 = vmatprep.mubr.msk.bf16.mxu1 %vm8047_vm1, %v11088_v1  ;;  %v8000_v32 = vld [vmem:[%s8102_s24 + $0x100] sm:$0xff]  }
 0x38f   : > { %v7399_v41 = vpop.f32.mrf.mxu1  ;;  %v3673_v55 = vpop.f32.mrf.mxu0  ;;  %v3131_v39 = vrot.slane %v8000_v32, 2 }
 0x390   : > { %v10173_v34 = vadd.f32 %v3673_v55, %v3543_v53 }
 0x391   : > { %v3308_v33 = vpop.f32.mrf.mxu1  ;;  %v7530_v59 = vpop.f32.mrf.mxu0 }
 0x392   : > { %v3545_v12 = vadd.f32 %v3308_v33, %v9689_v44 }
 0x393   : > { %v7400_v61 = vpop.f32.mrf.mxu1  ;;  %v3678_v9 = vpop.f32.mrf.mxu0  ;;  %7628 = vmatmul.mubr.msk.bf16.gmra.mxu0 %vm782_vm3, %v3130_v26 }
 0x394   : > { %v10178_v18 = vadd.f32 %v3678_v9, %v3544_v42  ;;  %7631 = vmatprep.mubr.msk.bf16.mxu0 %vm8047_vm1, %v11088_v1  ;;  %v3132_v42 = vsel %vm3069_vm6, %v3129_v27, %v3131_v39 }
 0x395   : > { %v3313_v19 = vpop.f32.mrf.mxu1  ;;  %7498 = vmatmul.mubr.msk.bf16.gmra.mxu1 %vm782_vm3, %v3130_v26  ;;  %v7533_v37 = vpop.f32.mrf.mxu0 }
 0x396   : > { %v3546_v53 = vadd.f32 %v3313_v19, %v9696_v48  ;;  %7501 = vmatprep.mubr.msk.bf16.mxu1 %vm8047_vm1, %v11088_v1  ;;  %v8001_v48 = vld [vmem:[%s8294_s8] sm:$0xff]  }
 0x397   : > { %v7403_v44 = vpop.f32.mrf.mxu1  ;;  %v3681_v41 = vpop.f32.mrf.mxu0  ;;  %v3133_v19 = vrot.slane %v8001_v48, 2 }
 0x398   : > { %v10187_v55 = vadd.f32 %v3681_v41, %v3545_v12 }
 0x399   : > { %v3316_v33 = vpop.f32.mrf.mxu1  ;;  %v7534_v59 = vpop.f32.mrf.mxu0 }
 0x39a   : > { %v3547_v61 = vadd.f32 %v3316_v33, %v9709_v46 }
 0x39b   : > { %v7404_v9 = vpop.f32.mrf.mxu1  ;;  %v3686_v32 = vpop.f32.mrf.mxu0  ;;  %7632 = vmatmul.mubr.msk.bf16.gmra.mxu0 %vm782_vm3, %v3132_v42 }
 0x39c   : > { %v10192_v26 = vadd.f32 %v3686_v32, %v3546_v53  ;;  %7635 = vmatprep.mubr.msk.bf16.mxu0 %vm8047_vm1, %v11088_v1  ;;  %v3134_v53 = vsel %vm3069_vm6, %v3131_v39, %v3133_v19 }
 0x39d   : > { %v3321_v37 = vpop.f32.mrf.mxu1  ;;  %7502 = vmatmul.mubr.msk.bf16.gmra.mxu1 %vm782_vm3, %v3132_v42  ;;  %v7537_v27 = vpop.f32.mrf.mxu0 }
 0x39e   : > { %v3548_v12 = vadd.f32 %v3321_v37, %v9720_v16  ;;  %7505 = vmatprep.mubr.msk.bf16.mxu1 %vm8047_vm1, %v11088_v1  ;;  %v8002_v16 = vld [vmem:[%s8294_s8 + $0x8] sm:$0xff]  }
 0x39f   : > { %v7407_v46 = vpop.f32.mrf.mxu1  ;;  %v3689_v44 = vpop.f32.mrf.mxu0  ;;  %v3135_v37 = vrot.slane %v8002_v16, 2 }
 0x3a0   : > { %v10201_v41 = vadd.f32 %v3689_v44, %v3547_v61 }
 0x3a1   : > { %v3324_v33 = vpop.f32.mrf.mxu1  ;;  %v7538_v59 = vpop.f32.mrf.mxu0 }
 0x3a2   : > { %11410 = vst [vmem:[#allocation104_spill] sm:$0xff] %v10201_v41  ;;  %v3549_v9 = vadd.f32 %v3324_v33, %v9732_v56  ;;  %v7962_v33 = vld [vmem:[%s8294_s8 + $0x10] sm:$0xff]  }
 0x3a3   : > { %v7408_v32 = vpop.f32.mrf.mxu1  ;;  %v3694_v42 = vpop.f32.mrf.mxu0  ;;  %7636 = vmatmul.mubr.msk.bf16.gmra.mxu0 %vm782_vm3, %v3134_v53 }
 0x3a4   : > { %v10206_v48 = vadd.f32 %v3694_v42, %v3548_v12  ;;  %7639 = vmatprep.mubr.msk.bf16.mxu0 %vm8047_vm1, %v11088_v1  ;;  %v3136_v12 = vsel %vm3069_vm6, %v3133_v19, %v3135_v37  ;;  %v11412_v42 = vld [vmem:[#allocation9_spill] sm:$0xff] }
 0x3a5   : > { %v3329_v61 = vpop.f32.mrf.mxu1  ;;  %7506 = vmatmul.mubr.msk.bf16.gmra.mxu1 %vm782_vm3, %v3134_v53  ;;  %v7541_v39 = vpop.f32.mrf.mxu0  ;;  %v3982_v16 = vrot.slane %v11412_v42, 3 }
 0x3a6   : > { %11411 = vst [vmem:[#allocation115_spill] sm:$0xff] %v10206_v48  ;;  %v3550_v27 = vadd.f32 %v3329_v61, %v9744_v57  ;;  %7509 = vmatprep.mubr.msk.bf16.mxu1 %vm8047_vm1, %v11088_v1  ;;  %v11413_v48 = vld [vmem:[#allocation12_spill] sm:$0xff] }
 0x3a7   : > { %v7411_v56 = vpop.f32.mrf.mxu1  ;;  %v3697_v46 = vpop.f32.mrf.mxu0  ;;  %v3981_v41 = vrot.slane %v11413_v48, 2 }
 0x3a8   : > { %v10215_v44 = vadd.f32 %v3697_v46, %v3549_v9  ;;  %v3604_v9 = vrot.slane %v7962_v33, 2 }
 0x3a9   : > { %v3332_v59 = vpop.f32.mrf.mxu1  ;;  %v7542_v32 = vpop.f32.mrf.mxu0 }
 0x3aa   : > { %v3551_v53 = vadd.f32 %v3332_v59, %v9754_v10  ;;  %v3983_v10 = vor.u32 %v3982_v16, %v3981_v41  ;;  %v3605_v32 = vsel %vm3069_vm6, %v3135_v37, %v3604_v9  ;;  %v8003_v37 = vld [vmem:[%s8102_s24 + $0x10] sm:$0xff]   ;;  %v8004_v9 = vld [vmem:[%s8102_s24 + $0x18] sm:$0xff]  }
 0x3ab   : > { %v7412_v39 = vpop.f32.mrf.mxu1  ;;  %v3702_v57 = vpop.f32.mrf.mxu0  ;;  %7640 = vmatmul.mubr.msk.bf16.gmra.mxu0 %vm782_vm3, %v3136_v12 }
 0x3ac   : > { %v10223_v61 = vadd.f32 %v3702_v57, %v3550_v27  ;;  %7643 = vmatprep.mubr.msk.bf16.mxu0 %vm8047_vm1, %v11088_v1  ;;  %v11414_v39 = vld [vmem:[#allocation16_spill] sm:$0xff] }
 0x3ad   : > { %v3337_v19 = vpop.f32.mrf.mxu1  ;;  %7510 = vmatmul.mubr.msk.bf16.gmra.mxu1 %vm782_vm3, %v3136_v12  ;;  %v7545_v56 = vpop.f32.mrf.mxu0  ;;  %v3985_v57 = vrot.slane %v11414_v39, 2 }
 0x3ae   : > { %v3552_v46 = vadd.f32 %v3337_v19, %v9764_v23  ;;  %7649 = vmatprep.mubr.msk.bf16.mxu1 %vm8047_vm1, %v11088_v1  ;;  %v3984_v23 = vsel %vm3977_vm7, %v10007_v21, %v3983_v10  ;;  %v11415_v19 = vld [vmem:[#allocation13_spill] sm:$0xff] }
 0x3af   : > { %v7415_v48 = vpop.f32.mrf.mxu1  ;;  %v3705_v59 = vpop.f32.mrf.mxu0  ;;  %v3986_v41 = vrot.slane %v11415_v19, 3 }
 0x3b0   : > { %v10231_v27 = vadd.f32 %v3705_v59, %v3551_v53  ;;  %v4586_v53 = vrot.slane %v8003_v37, 3 }
 0x3b1   : > { %v3340_v33 = vpop.f32.mrf.mxu1  ;;  %v7546_v42 = vpop.f32.mrf.mxu0 }
 0x3b2   : > { %v3553_v12 = vadd.f32 %v3340_v33, %v9776_v13  ;;  %v4587_v13 = vrot.slane %v8004_v9, 3  ;;  %v11417_v9 = vld [vmem:[#allocation20_spill] sm:$0xff] }
 0x3b3   : > { %v7416_v16 = vpop.f32.mrf.mxu1  ;;  %v3710_v56 = vpop.f32.mrf.mxu0  ;;  %7644 = vmatmul.mubr.msk.bf16.gmra.mxu0 %vm782_vm3, %v3605_v32  ;;  %v3987_v32 = vor.u32 %v3986_v41, %v3985_v57  ;;  %v8005_v41 = vld [vmem:[%s8102_s24 + $0x20] sm:$0xff]  }
 0x3b4   : > { %v10240_v48 = vadd.f32 %v3710_v56, %v3552_v46  ;;  %7783 = vmatprep.mubr.msk.bf16.mxu0 %vm8047_vm1, %v11088_v1  ;;  %v4588_v19 = vsel %vm4585_vm8, %v4586_v53, %v4587_v13  ;;  %v4589_v53 = vrot.slane %v8005_v41, 3 }
 0x3b5   : > { %v3345_v59 = vpop.f32.mrf.mxu1  ;;  %7650 = vmatmul.mubr.msk.bf16.vlgmr.msra.gmra.mxu1 %vm782_vm3, %v3984_v23  ;;  %v7549_v21 = vpop.f32.mrf.mxu0  ;;  %v3988_v23 = vsel %vm3977_vm7, %v3983_v10, %v3987_v32 }
 0x3b6   : > { %11416 = vst [vmem:[#allocation107_spill] sm:$0xff] %v10240_v48  ;;  %v3554_v33 = vadd.f32 %v3345_v59, %v9782_v8  ;;  %7653 = vmatprep.mubr.msk.bf16.mxu1 %vm8047_vm1, %v11088_v1  ;;  %v3989_v21 = vrot.slane %v11417_v9, 2  ;;  %v11418_v8 = vld [vmem:[#allocation17_spill] sm:$0xff] }
 0x3b7   : > { %v7419_v46 = vpop.f32.mrf.mxu1  ;;  %v3713_v42 = vpop.f32.mrf.mxu0  ;;  %v3990_v59 = vrot.slane %v11418_v8, 3  ;;  %v11421_v8 = vld [vmem:[#allocation25_spill] sm:$0xff] }
 0x3b8   : > { %v10250_v39 = vadd.f32 %v3713_v42, %v3553_v12  ;;  %v11420_v12 = vmov 0.0   ;;  %v3993_v41 = vrot.slane %v11421_v8, 2 }
 0x3b9   : > { %v3348_v16 = vpop.f32.mrf.mxu1  ;;  %v7550_v56 = vpop.f32.mrf.mxu0 }
 0x3ba   : > { %v3555_v37 = vadd.f32 %v3348_v16, %v9791_v14 }
 0x3bb   : > { %v7420_v48 = vpop.f32.mrf.mxu1  ;;  %v3718_v1 = vpop.f32.mrf.mxu0  ;;  %7784 = vmatmul.mubr.msk.bf16.vlgmr.msra.gmra.mxu0 %vm782_vm3, %v4588_v19 }
 0x3bc   : > { %v10258_v57 = vadd.f32 %v3718_v1, %v3554_v33  ;;  %7787 = vmatprep.mubr.msk.bf16.mxu0 %vm8047_vm1, %v11420_v12  ;;  %v3991_v48 = vor.u32 %v3990_v59, %v3989_v21  ;;  %v4590_v33 = vsel %vm4585_vm8, %v4587_v13, %v4589_v53  ;;  %v8006_v13 = vld [vmem:[%s8102_s24 + $0x28] sm:$0xff]  }
 0x3bd   : > { %v3353_v46 = vpop.f32.mrf.mxu1  ;;  %7654 = vmatmul.mubr.msk.bf16.gmra.mxu1 %vm782_vm3, %v3988_v23  ;;  %v7553_v14 = vpop.f32.mrf.mxu0 }
 0x3be   : > { %11419 = vst [vmem:[#allocation109_spill] sm:$0xff] %v10258_v57  ;;  %v3556_v10 = vadd.f32 %v3353_v46, %v9796_v60  ;;  %7657 = vmatprep.mubr.msk.bf16.mxu1 %vm8047_vm1, %v11420_v12  ;;  %v3992_v23 = vsel %vm3977_vm7, %v3987_v32, %v3991_v48  ;;  %v11422_v60 = vld [vmem:[#allocation21_spill] sm:$0xff] }
 0x3bf   : > { %v7423_v42 = vpop.f32.mrf.mxu1  ;;  %v3721_v19 = vpop.f32.mrf.mxu0  ;;  %v3994_v46 = vrot.slane %v11422_v60, 3  ;;  %v11423_v60 = vld [vmem:[#allocation30_spill] sm:$0xff] }
 0x3c0   : > { %v10267_v1 = vadd.f32 %v3721_v19, %v3555_v37  ;;  %v4591_v37 = vrot.slane %v8006_v13, 3 }
 0x3c1   : > { %v3356_v16 = vpop.f32.mrf.mxu1  ;;  %v7554_v56 = vpop.f32.mrf.mxu0  ;;  %v3995_v42 = vor.u32 %v3994_v46, %v3993_v41 }
 0x3c2   : > { %v3557_v9 = vadd.f32 %v3356_v16, %v9805_v11 }
 0x3c3   : > { %v7424_v14 = vpop.f32.mrf.mxu1  ;;  %v3726_v57 = vpop.f32.mrf.mxu0  ;;  %7788 = vmatmul.mubr.msk.bf16.gmra.mxu0 %vm782_vm3, %v4590_v33 }
 0x3c4   : > { %v10275_v21 = vadd.f32 %v3726_v57, %v3556_v10  ;;  %7791 = vmatprep.mubr.msk.bf16.mxu0 %vm8047_vm1, %v11420_v12  ;;  %v4592_v10 = vsel %vm4585_vm8, %v4589_v53, %v4591_v37  ;;  %v3997_v14 = vrot.slane %v11423_v60, 2  ;;  %v8007_v53 = vld [vmem:[%s8102_s24 + $0x30] sm:$0xff]  }
 0x3c5   : > { %v3361_v59 = vpop.f32.mrf.mxu1  ;;  %7658 = vmatmul.mubr.msk.bf16.gmra.mxu1 %vm782_vm3, %v3992_v23  ;;  %v7557_v11 = vpop.f32.mrf.mxu0  ;;  %v3996_v23 = vsel %vm3977_vm7, %v3991_v48, %v3995_v42 }
 0x3c6   : > { %v3558_v32 = vadd.f32 %v3361_v59, %v9810_v28  ;;  %7661 = vmatprep.mubr.msk.bf16.mxu1 %vm8047_vm1, %v11420_v12  ;;  %v11424_v28 = vld [vmem:[#allocation26_spill] sm:$0xff] }
 0x3c7   : > { %v7427_v19 = vpop.f32.mrf.mxu1  ;;  %v3729_v33 = vpop.f32.mrf.mxu0  ;;  %v3998_v13 = vrot.slane %v11424_v28, 3 }
 0x3c8   : > { %v10284_v57 = vadd.f32 %v3729_v33, %v3557_v9  ;;  %v4593_v9 = vrot.slane %v8007_v53, 3 }
 0x3c9   : > { %v3364_v16 = vpop.f32.mrf.mxu1  ;;  %v7558_v56 = vpop.f32.mrf.mxu0  ;;  %v3999_v19 = vor.u32 %v3998_v13, %v3997_v14 }
 0x3ca   : > { %v3559_v8 = vadd.f32 %v3364_v16, %v9819_v62  ;;  %v4594_v16 = vsel %vm4585_vm8, %v4591_v37, %v4593_v9  ;;  %v8008_v37 = vld [vmem:[%s8102_s24 + $0x38] sm:$0xff]  }
 0x3cb   : > { %v7428_v59 = vpop.f32.mrf.mxu1  ;;  %v3734_v11 = vpop.f32.mrf.mxu0  ;;  %7792 = vmatmul.mubr.msk.bf16.gmra.mxu0 %vm782_vm3, %v4592_v10 }
 0x3cc   : > { %v10292_v41 = vadd.f32 %v3734_v11, %v3558_v32  ;;  %7795 = vmatprep.mubr.msk.bf16.mxu0 %vm8047_vm1, %v11420_v12  ;;  %v11425_v59 = vld [vmem:[#allocation34_spill] sm:$0xff] }
 0x3cd   : > { %v3369_v46 = vpop.f32.mrf.mxu1  ;;  %7662 = vmatmul.mubr.msk.bf16.gmra.mxu1 %vm782_vm3, %v3996_v23  ;;  %v7561_v62 = vpop.f32.mrf.mxu0  ;;  %v4000_v23 = vsel %vm3977_vm7, %v3995_v42, %v3999_v19  ;;  %v4001_v11 = vrot.slane %v11425_v59, 2 }
 0x3ce   : > { %v3560_v48 = vadd.f32 %v3369_v46, %v9824_v50  ;;  %7665 = vmatprep.mubr.msk.bf16.mxu1 %vm8047_vm1, %v11420_v12  ;;  %v11426_v50 = vld [vmem:[#allocation31_spill] sm:$0xff] }
 0x3cf   : > { %v7431_v33 = vpop.f32.mrf.mxu1  ;;  %v3737_v10 = vpop.f32.mrf.mxu0  ;;  %v4002_v53 = vrot.slane %v11426_v50, 3 }
 0x3d0   : > { %v10301_v32 = vadd.f32 %v3737_v10, %v3559_v8  ;;  %v4595_v8 = vrot.slane %v8008_v37, 3 }
 0x3d1   : > { %v3372_v56 = vpop.f32.mrf.mxu1  ;;  %v7562_v60 = vpop.f32.mrf.mxu0  ;;  %v4003_v33 = vor.u32 %v4002_v53, %v4001_v11 }
 0x3d2   : > { %v3561_v28 = vadd.f32 %v3372_v56, %v9833_v47  ;;  %v4596_v56 = vsel %vm4585_vm8, %v4593_v9, %v4595_v8  ;;  %v8009_v9 = vld [vmem:[%s8102_s24 + $0x40] sm:$0xff]  }
 0x3d3   : > { %v7432_v46 = vpop.f32.mrf.mxu1  ;;  %v3742_v62 = vpop.f32.mrf.mxu0  ;;  %7796 = vmatmul.mubr.msk.bf16.gmra.mxu0 %vm782_vm3, %v4594_v16 }
 0x3d4   : > { %v10309_v14 = vadd.f32 %v3742_v62, %v3560_v48  ;;  %7799 = vmatprep.mubr.msk.bf16.mxu0 %vm8047_vm1, %v11420_v12  ;;  %v11427_v46 = vld [vmem:[#allocation38_spill] sm:$0xff] }
 0x3d5   : > { %v3377_v13 = vpop.f32.mrf.mxu1  ;;  %7666 = vmatmul.mubr.msk.bf16.gmra.mxu1 %vm782_vm3, %v4000_v23  ;;  %v7565_v47 = vpop.f32.mrf.mxu0  ;;  %v4004_v23 = vsel %vm3977_vm7, %v3999_v19, %v4003_v33  ;;  %v4005_v62 = vrot.slane %v11427_v46, 2 }
 0x3d6   : > { %v3562_v42 = vadd.f32 %v3377_v13, %v9838_v6  ;;  %7669 = vmatprep.mubr.msk.bf16.mxu1 %vm8047_vm1, %v11420_v12  ;;  %v11428_v6 = vld [vmem:[#allocation35_spill] sm:$0xff] }
 0x3d7   : > { %v7435_v10 = vpop.f32.mrf.mxu1  ;;  %v3745_v16 = vpop.f32.mrf.mxu0  ;;  %v4006_v37 = vrot.slane %v11428_v6, 3 }
 0x3d8   : > { %v10318_v48 = vadd.f32 %v3745_v16, %v3561_v28  ;;  %v4597_v28 = vrot.slane %v8009_v9, 3 }
 0x3d9   : > { %v3380_v60 = vpop.f32.mrf.mxu1  ;;  %v7566_v59 = vpop.f32.mrf.mxu0  ;;  %v4007_v10 = vor.u32 %v4006_v37, %v4005_v62 }
 0x3da   : > { %v3563_v50 = vadd.f32 %v3380_v60, %v9847_v45  ;;  %v4598_v60 = vsel %vm4585_vm8, %v4595_v8, %v4597_v28  ;;  %v8010_v8 = vld [vmem:[%s8102_s24 + $0x48] sm:$0xff]  }
 0x3db   : > { %v7436_v13 = vpop.f32.mrf.mxu1  ;;  %v3750_v47 = vpop.f32.mrf.mxu0  ;;  %7800 = vmatmul.mubr.msk.bf16.gmra.mxu0 %vm782_vm3, %v4596_v56 }
 0x3dc   : > { %v10326_v11 = vadd.f32 %v3750_v47, %v3562_v42  ;;  %7803 = vmatprep.mubr.msk.bf16.mxu0 %vm8047_vm1, %v11420_v12  ;;  %v11429_v13 = vld [vmem:[#allocation42_spill] sm:$0xff] }
 0x3dd   : > { %v3385_v53 = vpop.f32.mrf.mxu1  ;;  %7670 = vmatmul.mubr.msk.bf16.gmra.mxu1 %vm782_vm3, %v4004_v23  ;;  %v7569_v45 = vpop.f32.mrf.mxu0  ;;  %v4008_v23 = vsel %vm3977_vm7, %v4003_v33, %v4007_v10  ;;  %v4009_v47 = vrot.slane %v11429_v13, 2 }
 0x3de   : > { %v3564_v19 = vadd.f32 %v3385_v53, %v9852_v30  ;;  %7673 = vmatprep.mubr.msk.bf16.mxu1 %vm8047_vm1, %v11420_v12  ;;  %v11430_v30 = vld [vmem:[#allocation39_spill] sm:$0xff] }
 0x3df   : > { %v7439_v16 = vpop.f32.mrf.mxu1  ;;  %v3753_v56 = vpop.f32.mrf.mxu0  ;;  %v4010_v9 = vrot.slane %v11430_v30, 3 }
 0x3e0   : > { %v10335_v42 = vadd.f32 %v3753_v56, %v3563_v50  ;;  %v4599_v50 = vrot.slane %v8010_v8, 3 }
 0x3e1   : > { %v3388_v59 = vpop.f32.mrf.mxu1  ;;  %v7570_v46 = vpop.f32.mrf.mxu0  ;;  %v4011_v16 = vor.u32 %v4010_v9, %v4009_v47 }
 0x3e2   : > { %v3565_v6 = vadd.f32 %v3388_v59, %v9861_v38  ;;  %v4600_v59 = vsel %vm4585_vm8, %v4597_v28, %v4599_v50  ;;  %v8011_v28 = vld [vmem:[%s8102_s24 + $0x50] sm:$0xff]  }
 0x3e3   : > { %v7440_v53 = vpop.f32.mrf.mxu1  ;;  %v3758_v45 = vpop.f32.mrf.mxu0  ;;  %7804 = vmatmul.mubr.msk.bf16.gmra.mxu0 %vm782_vm3, %v4598_v60 }
 0x3e4   : > { %v10343_v62 = vadd.f32 %v3758_v45, %v3564_v19  ;;  %7807 = vmatprep.mubr.msk.bf16.mxu0 %vm8047_vm1, %v11420_v12  ;;  %v11431_v53 = vld [vmem:[#allocation46_spill] sm:$0xff] }
 0x3e5   : > { %v3393_v37 = vpop.f32.mrf.mxu1  ;;  %7674 = vmatmul.mubr.msk.bf16.gmra.mxu1 %vm782_vm3, %v4008_v23  ;;  %v7573_v38 = vpop.f32.mrf.mxu0  ;;  %v4012_v23 = vsel %vm3977_vm7, %v4007_v10, %v4011_v16  ;;  %v4013_v45 = vrot.slane %v11431_v53, 2 }
 0x3e6   : > { %v3566_v33 = vadd.f32 %v3393_v37, %v9866_v31  ;;  %7677 = vmatprep.mubr.msk.bf16.mxu1 %vm8047_vm1, %v11420_v12  ;;  %v11432_v31 = vld [vmem:[#allocation43_spill] sm:$0xff] }
 0x3e7   : > { %v7443_v56 = vpop.f32.mrf.mxu1  ;;  %v3761_v60 = vpop.f32.mrf.mxu0  ;;  %v4014_v8 = vrot.slane %v11432_v31, 3 }
 0x3e8   : > { %v10352_v19 = vadd.f32 %v3761_v60, %v3565_v6  ;;  %v4601_v6 = vrot.slane %v8011_v28, 3 }
 0x3e9   : > { %v3396_v46 = vpop.f32.mrf.mxu1  ;;  %v7574_v13 = vpop.f32.mrf.mxu0  ;;  %v4015_v56 = vor.u32 %v4014_v8, %v4013_v45 }
 0x3ea   : > { %v3567_v30 = vadd.f32 %v3396_v46, %v9875_v3  ;;  %v4602_v46 = vsel %vm4585_vm8, %v4599_v50, %v4601_v6  ;;  %v8012_v50 = vld [vmem:[%s8102_s24 + $0x58] sm:$0xff]  }
 0x3eb   : > { %v7444_v37 = vpop.f32.mrf.mxu1  ;;  %v3766_v38 = vpop.f32.mrf.mxu0  ;;  %7808 = vmatmul.mubr.msk.bf16.gmra.mxu0 %vm782_vm3, %v4600_v59 }
 0x3ec   : > { %v10360_v47 = vadd.f32 %v3766_v38, %v3566_v33  ;;  %7811 = vmatprep.mubr.msk.bf16.mxu0 %vm8047_vm1, %v11420_v12  ;;  %v11433_v37 = vld [vmem:[#allocation50_spill] sm:$0xff] }
 0x3ed   : > { %v3401_v9 = vpop.f32.mrf.mxu1  ;;  %7678 = vmatmul.mubr.msk.bf16.gmra.mxu1 %vm782_vm3, %v4012_v23  ;;  %v7577_v3 = vpop.f32.mrf.mxu0  ;;  %v4016_v23 = vsel %vm3977_vm7, %v4011_v16, %v4015_v56  ;;  %v4017_v38 = vrot.slane %v11433_v37, 2 }
 0x3ee   : > { %v3568_v10 = vadd.f32 %v3401_v9, %v9880_v58  ;;  %7681 = vmatprep.mubr.msk.bf16.mxu1 %vm8047_vm1, %v11420_v12  ;;  %v11434_v58 = vld [vmem:[#allocation47_spill] sm:$0xff] }
 0x3ef   : > { %v7447_v60 = vpop.f32.mrf.mxu1  ;;  %v3769_v59 = vpop.f32.mrf.mxu0  ;;  %v4018_v28 = vrot.slane %v11434_v58, 3 }
 0x3f0   : > { %v10369_v33 = vadd.f32 %v3769_v59, %v3567_v30  ;;  %v4603_v30 = vrot.slane %v8012_v50, 3 }
 0x3f1   : > { %v3404_v13 = vpop.f32.mrf.mxu1  ;;  %v7578_v53 = vpop.f32.mrf.mxu0  ;;  %v4019_v60 = vor.u32 %v4018_v28, %v4017_v38 }
 0x3f2   : > { %v3569_v31 = vadd.f32 %v3404_v13, %v9889_v49  ;;  %v4604_v13 = vsel %vm4585_vm8, %v4601_v6, %v4603_v30  ;;  %v8013_v6 = vld [vmem:[%s8102_s24 + $0x60] sm:$0xff]  }
 0x3f3   : > { %v7448_v9 = vpop.f32.mrf.mxu1  ;;  %v3774_v3 = vpop.f32.mrf.mxu0  ;;  %7812 = vmatmul.mubr.msk.bf16.gmra.mxu0 %vm782_vm3, %v4602_v46 }
 0x3f4   : > { %v10377_v45 = vadd.f32 %v3774_v3, %v3568_v10  ;;  %7815 = vmatprep.mubr.msk.bf16.mxu0 %vm8047_vm1, %v11420_v12  ;;  %v11435_v9 = vld [vmem:[#allocation54_spill] sm:$0xff] }
 0x3f5   : > { %v3409_v8 = vpop.f32.mrf.mxu1  ;;  %7682 = vmatmul.mubr.msk.bf16.gmra.mxu1 %vm782_vm3, %v4016_v23  ;;  %v7581_v49 = vpop.f32.mrf.mxu0  ;;  %v4020_v23 = vsel %vm3977_vm7, %v4015_v56, %v4019_v60  ;;  %v4021_v3 = vrot.slane %v11435_v9, 2 }
 0x3f6   : > { %v3570_v16 = vadd.f32 %v3409_v8, %v9894_v40  ;;  %7685 = vmatprep.mubr.msk.bf16.mxu1 %vm8047_vm1, %v11420_v12  ;;  %v11436_v40 = vld [vmem:[#allocation51_spill] sm:$0xff] }
 0x3f7   : > { %v7451_v59 = vpop.f32.mrf.mxu1  ;;  %v3777_v46 = vpop.f32.mrf.mxu0  ;;  %v4022_v50 = vrot.slane %v11436_v40, 3 }
 0x3f8   : > { %v10386_v10 = vadd.f32 %v3777_v46, %v3569_v31  ;;  %v4605_v31 = vrot.slane %v8013_v6, 3 }
 0x3f9   : > { %v3412_v53 = vpop.f32.mrf.mxu1  ;;  %v7582_v37 = vpop.f32.mrf.mxu0  ;;  %v4023_v59 = vor.u32 %v4022_v50, %v4021_v3 }
 0x3fa   : > { %v3571_v58 = vadd.f32 %v3412_v53, %v9903_v63  ;;  %v4606_v53 = vsel %vm4585_vm8, %v4603_v30, %v4605_v31  ;;  %v8014_v30 = vld [vmem:[%s8102_s24 + $0x68] sm:$0xff]  }
 0x3fb   : > { %v7452_v8 = vpop.f32.mrf.mxu1  ;;  %v3782_v49 = vpop.f32.mrf.mxu0  ;;  %7816 = vmatmul.mubr.msk.bf16.gmra.mxu0 %vm782_vm3, %v4604_v13 }
 0x3fc   : > { %v10394_v38 = vadd.f32 %v3782_v49, %v3570_v16  ;;  %7819 = vmatprep.mubr.msk.bf16.mxu0 %vm8047_vm1, %v11420_v12  ;;  %v11437_v8 = vld [vmem:[#allocation58_spill] sm:$0xff] }
 0x3fd   : > { %v3417_v28 = vpop.f32.mrf.mxu1  ;;  %7686 = vmatmul.mubr.msk.bf16.gmra.mxu1 %vm782_vm3, %v4020_v23  ;;  %v7585_v63 = vpop.f32.mrf.mxu0  ;;  %v4024_v23 = vsel %vm3977_vm7, %v4019_v60, %v4023_v59  ;;  %v4025_v49 = vrot.slane %v11437_v8, 2 }
 0x3fe   : > { %v3572_v56 = vadd.f32 %v3417_v28, %v9908_v20  ;;  %7689 = vmatprep.mubr.msk.bf16.mxu1 %vm8047_vm1, %v11420_v12  ;;  %v11438_v20 = vld [vmem:[#allocation55_spill] sm:$0xff] }
 0x3ff   : > { %v7455_v46 = vpop.f32.mrf.mxu1  ;;  %v3785_v13 = vpop.f32.mrf.mxu0  ;;  %v4026_v6 = vrot.slane %v11438_v20, 3 }
 0x400   : > { %v10403_v16 = vadd.f32 %v3785_v13, %v3571_v58  ;;  %v4607_v58 = vrot.slane %v8014_v30, 3 }
 0x401   : > { %v3420_v37 = vpop.f32.mrf.mxu1  ;;  %v7586_v9 = vpop.f32.mrf.mxu0  ;;  %v4027_v46 = vor.u32 %v4026_v6, %v4025_v49 }
 0x402   : > { %v3573_v40 = vadd.f32 %v3420_v37, %v9917_v22  ;;  %v4608_v37 = vsel %vm4585_vm8, %v4605_v31, %v4607_v58  ;;  %v8015_v31 = vld [vmem:[%s8102_s24 + $0x70] sm:$0xff]  }
 0x403   : > { %v7456_v28 = vpop.f32.mrf.mxu1  ;;  %v3790_v63 = vpop.f32.mrf.mxu0  ;;  %7820 = vmatmul.mubr.msk.bf16.gmra.mxu0 %vm782_vm3, %v4606_v53 }
 0x404   : > { %v10411_v3 = vadd.f32 %v3790_v63, %v3572_v56  ;;  %7823 = vmatprep.mubr.msk.bf16.mxu0 %vm8047_vm1, %v11420_v12  ;;  %v11439_v28 = vld [vmem:[#allocation62_spill] sm:$0xff] }
 0x405   : > { %v3425_v50 = vpop.f32.mrf.mxu1  ;;  %7690 = vmatmul.mubr.msk.bf16.gmra.mxu1 %vm782_vm3, %v4024_v23  ;;  %v7589_v22 = vpop.f32.mrf.mxu0  ;;  %v4028_v23 = vsel %vm3977_vm7, %v4023_v59, %v4027_v46  ;;  %v4029_v63 = vrot.slane %v11439_v28, 2 }
 0x406   : > { %v3574_v60 = vadd.f32 %v3425_v50, %v9922_v4  ;;  %7693 = vmatprep.mubr.msk.bf16.mxu1 %vm8047_vm1, %v11420_v12  ;;  %v11440_v4 = vld [vmem:[#allocation59_spill] sm:$0xff] }
 0x407   : > { %v7459_v13 = vpop.f32.mrf.mxu1  ;;  %v3793_v53 = vpop.f32.mrf.mxu0  ;;  %v4030_v30 = vrot.slane %v11440_v4, 3  ;;  %v11443_v4 = vld [vmem:[#allocation85_spill] sm:$0xff] }
 0x408   : > { %v10420_v56 = vadd.f32 %v3793_v53, %v3573_v40  ;;  %v4609_v40 = vrot.slane %v8015_v31, 3 }
 0x409   : > { %v3428_v9 = vpop.f32.mrf.mxu1  ;;  %v7590_v8 = vpop.f32.mrf.mxu0  ;;  %v4031_v13 = vor.u32 %v4030_v30, %v4029_v63 }
 0x40a   : > { %v3575_v20 = vadd.f32 %v3428_v9, %v9931_v36  ;;  %v4610_v9 = vsel %vm4585_vm8, %v4607_v58, %v4609_v40  ;;  %v8016_v58 = vld [vmem:[%s8102_s24 + $0x78] sm:$0xff]  }
 0x40b   : > { %v7460_v50 = vpop.f32.mrf.mxu1  ;;  %v3798_v22 = vpop.f32.mrf.mxu0  ;;  %7824 = vmatmul.mubr.msk.bf16.gmra.mxu0 %vm782_vm3, %v4608_v37 }
 0x40c   : > { %v10428_v49 = vadd.f32 %v3798_v22, %v3574_v60  ;;  %7827 = vmatprep.mubr.msk.bf16.mxu0 %vm8047_vm1, %v11420_v12  ;;  %v11444_v22 = vld [vmem:[#allocation27_spill] sm:$0xff] }
 0x40d   : > { %v3433_v6 = vpop.f32.mrf.mxu1  ;;  %7694 = vmatmul.mubr.msk.bf16.gmra.mxu1 %vm782_vm3, %v4028_v23  ;;  %v7593_v36 = vpop.f32.mrf.mxu0  ;;  %v4032_v23 = vsel %vm3977_vm7, %v4027_v46, %v4031_v13  ;;  %v4033_v31 = vrot.slane %v11444_v22, 2  ;;  %v11447_v46 = vld [vmem:[#allocation86_spill] sm:$0xff] }
 0x40e   : > { %11441 = vst [vmem:[#allocation120_spill] sm:$0xff] %v10428_v49  ;;  %v3576_v59 = vadd.f32 %v3433_v6, %v9936_v51  ;;  %7697 = vmatprep.mubr.msk.bf16.mxu1 %vm8047_vm1, %v11420_v12  ;;  %v11445_v51 = vld [vmem:[#allocation24_spill] sm:$0xff] }
 0x40f   : > { %v7463_v53 = vpop.f32.mrf.mxu1  ;;  %v3801_v37 = vpop.f32.mrf.mxu0  ;;  %v4034_v6 = vrot.slane %v11445_v51, 3  ;;  %v11449_v51 = vld [vmem:[#allocation93_spill] sm:$0xff] }
 0x410   : > { %v10437_v60 = vadd.f32 %v3801_v37, %v3575_v20  ;;  %v4611_v20 = vrot.slane %v8016_v58, 3  ;;  %v11450_v58 = vld [vmem:[#allocation3_spill] sm:$0xff] }
 0x411   : > { %v3436_v8 = vpop.f32.mrf.mxu1  ;;  %v7594_v28 = vpop.f32.mrf.mxu0 }
 0x412   : > { %11442 = vst [vmem:[#allocation111_spill] sm:$0xff] %v10437_v60  ;;  %v3577_v50 = vadd.f32 %v3436_v8, %v11443_v4  ;;  %v4035_v8 = vor.u32 %v4034_v6, %v4033_v31 }
 0x413   : > { %v7464_v36 = vpop.f32.mrf.mxu1  ;;  %v3806_v49 = vpop.f32.mrf.mxu0  ;;  %7828 = vmatmul.mubr.msk.bf16.gmra.mxu0 %vm782_vm3, %v4610_v9 }
 0x414   : > { %v10445_v63 = vadd.f32 %v3806_v49, %v3576_v59  ;;  %7831 = vmatprep.mubr.msk.bf16.mxu0 %vm8047_vm1, %v11420_v12  ;;  %v4612_v59 = vsel %vm4585_vm8, %v4609_v40, %v4611_v20  ;;  %v8017_v40 = vld [vmem:[%s8102_s24 + $0x80] sm:$0xff]  }
 0x415   : > { %v3441_v30 = vpop.f32.mrf.mxu1  ;;  %7698 = vmatmul.mubr.msk.bf16.gmra.mxu1 %vm782_vm3, %v4032_v23  ;;  %v7597_v53 = vpop.f32.mrf.mxu0  ;;  %v4036_v23 = vsel %vm3977_vm7, %v4031_v13, %v4035_v8  ;;  %v11453_v13 = vld [vmem:[#allocation88_spill] sm:$0xff] }
 0x416   : > { %11446 = vst [vmem:[#allocation113_spill] sm:$0xff] %v10445_v63  ;;  %v3578_v37 = vadd.f32 %v3441_v30, %v11447_v46  ;;  %7701 = vmatprep.mubr.msk.bf16.mxu1 %vm8047_vm1, %v11420_v12  ;;  %v4037_v53 = vrot.slane %v11450_v58, 2  ;;  %v11451_v30 = vld [vmem:[#allocation2_spill] sm:$0xff]  ;;  %v11455_v58 = vld [vmem:[#allocation89_spill] sm:$0xff] }
 0x417   : > { %v7467_v28 = vpop.f32.mrf.mxu1  ;;  %v3809_v9 = vpop.f32.mrf.mxu0  ;;  %v4038_v46 = vrot.slane %v11451_v30, 3 }
 0x418   : > { %v10454_v49 = vadd.f32 %v3809_v9, %v3577_v50  ;;  %v4613_v50 = vrot.slane %v8017_v40, 3  ;;  %v11456_v40 = vld [vmem:[#allocation6_spill] sm:$0xff] }
 0x419   : > { %v3444_v4 = vpop.f32.mrf.mxu1  ;;  %v7598_v22 = vpop.f32.mrf.mxu0 }
 0x41a   : > { %11448 = vst [vmem:[#allocation124_spill] sm:$0xff] %v10454_v49  ;;  %v3579_v36 = vadd.f32 %v3444_v4, %v11449_v51 }
 0x41b   : > { %v7468_v63 = vpop.f32.mrf.mxu1  ;;  %v3814_v60 = vpop.f32.mrf.mxu0  ;;  %7832 = vmatmul.mubr.msk.bf16.gmra.mxu0 %vm782_vm3, %v4612_v59 }
 0x41c   : > { %v10462_v31 = vadd.f32 %v3814_v60, %v3578_v37  ;;  %7835 = vmatprep.mubr.msk.bf16.mxu0 %vm8047_vm1, %v11420_v12  ;;  %v4039_v63 = vor.u32 %v4038_v46, %v4037_v53  ;;  %v4614_v37 = vsel %vm4585_vm8, %v4611_v20, %v4613_v50  ;;  %v8018_v20 = vld [vmem:[%s8102_s24 + $0x88] sm:$0xff]  }
 0x41d   : > { %v3449_v6 = vpop.f32.mrf.mxu1  ;;  %7702 = vmatmul.mubr.msk.bf16.gmra.mxu1 %vm782_vm3, %v4036_v23  ;;  %v7601_v28 = vpop.f32.mrf.mxu0 }
 0x41e   : > { %11452 = vst [vmem:[#allocation116_spill] sm:$0xff] %v10462_v31  ;;  %v3580_v9 = vadd.f32 %v3449_v6, %v11453_v13  ;;  %7705 = vmatprep.mubr.msk.bf16.mxu1 %vm8047_vm1, %v11420_v12  ;;  %v4040_v23 = vsel %vm3977_vm7, %v4035_v8, %v4039_v63  ;;  %v4041_v28 = vrot.slane %v11456_v40, 2  ;;  %v11457_v6 = vld [vmem:[#allocation4_spill] sm:$0xff]  ;;  %v11461_v40 = vld [vmem:[#allocation91_spill] sm:$0xff] }
 0x41f   : > { %v7471_v4 = vpop.f32.mrf.mxu1  ;;  %v3817_v59 = vpop.f32.mrf.mxu0  ;;  %v4042_v13 = vrot.slane %v11457_v6, 3  ;;  %v11459_v8 = vld [vmem:[#allocation96_spill] sm:$0xff] }
 0x420   : > { %v10471_v60 = vadd.f32 %v3817_v59, %v3579_v36  ;;  %v4615_v36 = vrot.slane %v8018_v20, 3  ;;  %v11462_v20 = vld [vmem:[#allocation10_spill] sm:$0xff] }
 0x421   : > { %v3452_v22 = vpop.f32.mrf.mxu1  ;;  %v7602_v51 = vpop.f32.mrf.mxu0 }
 0x422   : > { %11454 = vst [vmem:[#allocation118_spill] sm:$0xff] %v10471_v60  ;;  %v3581_v30 = vadd.f32 %v3452_v22, %v11455_v58 }
 0x423   : > { %v7472_v31 = vpop.f32.mrf.mxu1  ;;  %v3822_v49 = vpop.f32.mrf.mxu0  ;;  %7836 = vmatmul.mubr.msk.bf16.gmra.mxu0 %vm782_vm3, %v4614_v37 }
 0x424   : > { %v10479_v53 = vadd.f32 %v3822_v49, %v3580_v9  ;;  %7839 = vmatprep.mubr.msk.bf16.mxu0 %vm8047_vm1, %v11420_v12  ;;  %v4043_v31 = vor.u32 %v4042_v13, %v4041_v28  ;;  %v4616_v9 = vsel %vm4585_vm8, %v4613_v50, %v4615_v36  ;;  %v8019_v50 = vld [vmem:[%s8102_s24 + $0x90] sm:$0xff]  }
 0x425   : > { %v3457_v46 = vpop.f32.mrf.mxu1  ;;  %7706 = vmatmul.mubr.msk.bf16.gmra.mxu1 %vm782_vm3, %v4040_v23  ;;  %v7605_v4 = vpop.f32.mrf.mxu0 }
 0x426   : > { %11458 = vst [vmem:[#allocation121_spill] sm:$0xff] %v10479_v53  ;;  %v3582_v59 = vadd.f32 %v3457_v46, %v11459_v8  ;;  %7709 = vmatprep.mubr.msk.bf16.mxu1 %vm8047_vm1, %v11420_v12  ;;  %v4044_v23 = vsel %vm3977_vm7, %v4039_v63, %v4043_v31  ;;  %v4045_v4 = vrot.slane %v11462_v20, 2  ;;  %v11463_v46 = vld [vmem:[#allocation7_spill] sm:$0xff]  ;;  %v11465_v63 = vld [vmem:[#allocation92_spill] sm:$0xff] }
 0x427   : > { %v7475_v22 = vpop.f32.mrf.mxu1  ;;  %v3825_v37 = vpop.f32.mrf.mxu0  ;;  %v4046_v8 = vrot.slane %v11463_v46, 3  ;;  %v11467_v20 = vld [vmem:[#allocation99_spill] sm:$0xff] }
 0x428   : > { %v10488_v49 = vadd.f32 %v3825_v37, %v3581_v30  ;;  %v4617_v30 = vrot.slane %v8019_v50, 3  ;;  %v11468_v50 = vld [vmem:[#allocation14_spill] sm:$0xff] }
 0x429   : > { %v3460_v51 = vpop.f32.mrf.mxu1  ;;  %v7606_v58 = vpop.f32.mrf.mxu0 }
 0x42a   : > { %11460 = vst [vmem:[#allocation125_spill] sm:$0xff] %v10488_v49  ;;  %v3583_v6 = vadd.f32 %v3460_v51, %v11461_v40 }
 0x42b   : > { %v7476_v53 = vpop.f32.mrf.mxu1  ;;  %v3830_v60 = vpop.f32.mrf.mxu0  ;;  %7840 = vmatmul.mubr.msk.bf16.gmra.mxu0 %vm782_vm3, %v4616_v9 }
 0x42c   : > { %v10496_v28 = vadd.f32 %v3830_v60, %v3582_v59  ;;  %7843 = vmatprep.mubr.msk.bf16.mxu0 %vm8047_vm1, %v11420_v12  ;;  %v4047_v53 = vor.u32 %v4046_v8, %v4045_v4  ;;  %v4618_v59 = vsel %vm4585_vm8, %v4615_v36, %v4617_v30  ;;  %v8020_v36 = vld [vmem:[%s8102_s24 + $0x98] sm:$0xff]  }
 0x42d   : > { %v3465_v13 = vpop.f32.mrf.mxu1  ;;  %7710 = vmatmul.mubr.msk.bf16.gmra.mxu1 %vm782_vm3, %v4044_v23  ;;  %v7609_v22 = vpop.f32.mrf.mxu0 }
 0x42e   : > { %11464 = vst [vmem:[#allocation65_spill] sm:$0xff] %v10496_v28  ;;  %v3584_v37 = vadd.f32 %v3465_v13, %v11465_v63  ;;  %7713 = vmatprep.mubr.msk.bf16.mxu1 %vm8047_vm1, %v11420_v12  ;;  %v4048_v23 = vsel %vm3977_vm7, %v4043_v31, %v4047_v53  ;;  %v4049_v22 = vrot.slane %v11468_v50, 2  ;;  %v11469_v13 = vld [vmem:[#allocation11_spill] sm:$0xff]  ;;  %v11471_v31 = vld [vmem:[#allocation94_spill] sm:$0xff] }
 0x42f   : > { %v7479_v51 = vpop.f32.mrf.mxu1  ;;  %v3833_v9 = vpop.f32.mrf.mxu0  ;;  %v4050_v63 = vrot.slane %v11469_v13, 3  ;;  %v11473_v50 = vld [vmem:[#allocation95_spill] sm:$0xff] }
 0x430   : > { %v10505_v60 = vadd.f32 %v3833_v9, %v3583_v6  ;;  %v4619_v6 = vrot.slane %v8020_v36, 3  ;;  %v11474_v36 = vld [vmem:[#allocation18_spill] sm:$0xff] }
 0x431   : > { %v3468_v58 = vpop.f32.mrf.mxu1  ;;  %v7610_v40 = vpop.f32.mrf.mxu0 }
 0x432   : > { %11466 = vst [vmem:[#allocation105_spill] sm:$0xff] %v10505_v60  ;;  %v3585_v46 = vadd.f32 %v3468_v58, %v11467_v20 }
 0x433   : > { %v7480_v28 = vpop.f32.mrf.mxu1  ;;  %v3838_v49 = vpop.f32.mrf.mxu0  ;;  %7844 = vmatmul.mubr.msk.bf16.gmra.mxu0 %vm782_vm3, %v4618_v59 }
 0x434   : > { %v10513_v4 = vadd.f32 %v3838_v49, %v3584_v37  ;;  %7847 = vmatprep.mubr.msk.bf16.mxu0 %vm8047_vm1, %v11420_v12  ;;  %v4051_v28 = vor.u32 %v4050_v63, %v4049_v22  ;;  %v4620_v37 = vsel %vm4585_vm8, %v4617_v30, %v4619_v6  ;;  %v8021_v30 = vld [vmem:[%s8102_s24 + $0xa0] sm:$0xff]  }
 0x435   : > { %v3473_v8 = vpop.f32.mrf.mxu1  ;;  %7714 = vmatmul.mubr.msk.bf16.gmra.mxu1 %vm782_vm3, %v4048_v23  ;;  %v7613_v51 = vpop.f32.mrf.mxu0 }
 0x436   : > { %11470 = vst [vmem:[#allocation108_spill] sm:$0xff] %v10513_v4  ;;  %v3586_v9 = vadd.f32 %v3473_v8, %v11471_v31  ;;  %7717 = vmatprep.mubr.msk.bf16.mxu1 %vm8047_vm1, %v11420_v12  ;;  %v4052_v23 = vsel %vm3977_vm7, %v4047_v53, %v4051_v28  ;;  %v4053_v51 = vrot.slane %v11474_v36, 2  ;;  %v11475_v8 = vld [vmem:[#allocation15_spill] sm:$0xff]  ;;  %v11477_v53 = vld [vmem:[#allocation102_spill] sm:$0xff]  ;;  %v11479_v36 = vld [vmem:[#allocation97_spill] sm:$0xff] }
 0x437   : > { %v7483_v58 = vpop.f32.mrf.mxu1  ;;  %v3841_v59 = vpop.f32.mrf.mxu0  ;;  %v4054_v31 = vrot.slane %v11475_v8, 3 }
 0x438   : > { %v10522_v49 = vadd.f32 %v3841_v59, %v3585_v46  ;;  %v4621_v46 = vrot.slane %v8021_v30, 3  ;;  %v11480_v30 = vld [vmem:[#allocation22_spill] sm:$0xff] }
 0x439   : > { %v3476_v40 = vpop.f32.mrf.mxu1  ;;  %v7614_v20 = vpop.f32.mrf.mxu0 }
 0x43a   : > { %11472 = vst [vmem:[#allocation66_spill] sm:$0xff] %v10522_v49  ;;  %v3587_v13 = vadd.f32 %v3476_v40, %v11473_v50 }
 0x43b   : > { %v7484_v4 = vpop.f32.mrf.mxu1  ;;  %v3846_v60 = vpop.f32.mrf.mxu0  ;;  %7848 = vmatmul.mubr.msk.bf16.gmra.mxu0 %vm782_vm3, %v4620_v37 }
 0x43c   : > { %v10530_v22 = vadd.f32 %v3846_v60, %v3586_v9  ;;  %7851 = vmatprep.mubr.msk.bf16.mxu0 %vm8047_vm1, %v11420_v12  ;;  %v4055_v4 = vor.u32 %v4054_v31, %v4053_v51  ;;  %v4622_v9 = vsel %vm4585_vm8, %v4619_v6, %v4621_v46  ;;  %v8022_v6 = vld [vmem:[%s8102_s24 + $0xa8] sm:$0xff]  }
 0x43d   : > { %v3481_v63 = vpop.f32.mrf.mxu1  ;;  %7718 = vmatmul.mubr.msk.bf16.gmra.mxu1 %vm782_vm3, %v4052_v23  ;;  %v7617_v58 = vpop.f32.mrf.mxu0 }
 0x43e   : > { %11476 = vst [vmem:[#allocation112_spill] sm:$0xff] %v10530_v22  ;;  %v3588_v59 = vadd.f32 %v3481_v63, %v11477_v53  ;;  %7721 = vmatprep.mubr.msk.bf16.mxu1 %vm8047_vm1, %v11420_v12  ;;  %v4056_v23 = vsel %vm3977_vm7, %v4051_v28, %v4055_v4  ;;  %v4057_v58 = vrot.slane %v11480_v30, 2  ;;  %v11481_v63 = vld [vmem:[#allocation19_spill] sm:$0xff]  ;;  %v11483_v28 = vld [vmem:[#allocation98_spill] sm:$0xff] }
 0x43f   : > { %v7487_v40 = vpop.f32.mrf.mxu1  ;;  %v3849_v37 = vpop.f32.mrf.mxu0  ;;  %v4058_v53 = vrot.slane %v11481_v63, 3  ;;  %v11485_v30 = vld [vmem:[#allocation106_spill] sm:$0xff] }
 0x440   : > { %v10539_v60 = vadd.f32 %v3849_v37, %v3587_v13  ;;  %v4623_v13 = vrot.slane %v8022_v6, 3  ;;  %v11486_v6 = vld [vmem:[#allocation28_spill] sm:$0xff] }
 0x441   : > { %v3484_v20 = vpop.f32.mrf.mxu1  ;;  %v7618_v50 = vpop.f32.mrf.mxu0 }
 0x442   : > { %11478 = vst [vmem:[#allocation67_spill] sm:$0xff] %v10539_v60  ;;  %v3589_v8 = vadd.f32 %v3484_v20, %v11479_v36 }
 0x443   : > { %v7488_v22 = vpop.f32.mrf.mxu1  ;;  %v3854_v49 = vpop.f32.mrf.mxu0  ;;  %7852 = vmatmul.mubr.msk.bf16.gmra.mxu0 %vm782_vm3, %v4622_v9 }
 0x444   : > { %v10547_v51 = vadd.f32 %v3854_v49, %v3588_v59  ;;  %7855 = vmatprep.mubr.msk.bf16.mxu0 %vm8047_vm1, %v11420_v12  ;;  %v4059_v22 = vor.u32 %v4058_v53, %v4057_v58  ;;  %v4624_v59 = vsel %vm4585_vm8, %v4621_v46, %v4623_v13  ;;  %v8023_v46 = vld [vmem:[%s8102_s24 + $0xb0] sm:$0xff]  }
 0x445   : > { %v3489_v31 = vpop.f32.mrf.mxu1  ;;  %7722 = vmatmul.mubr.msk.bf16.gmra.mxu1 %vm782_vm3, %v4056_v23  ;;  %v7621_v40 = vpop.f32.mrf.mxu0 }
 0x446   : > { %11482 = vst [vmem:[#allocation114_spill] sm:$0xff] %v10547_v51  ;;  %v3590_v37 = vadd.f32 %v3489_v31, %v11483_v28  ;;  %7725 = vmatprep.mubr.msk.bf16.mxu1 %vm8047_vm1, %v11420_v12  ;;  %v4060_v23 = vsel %vm3977_vm7, %v4055_v4, %v4059_v22  ;;  %v4061_v40 = vrot.slane %v11486_v6, 2  ;;  %v11487_v31 = vld [vmem:[#allocation23_spill] sm:$0xff]  ;;  %v11489_v4 = vld [vmem:[#allocation100_spill] sm:$0xff]  ;;  %v11490_v6 = vld [vmem:[#allocation101_spill] sm:$0xff] }
 0x447   : > { %v7491_v20 = vpop.f32.mrf.mxu1  ;;  %v3857_v9 = vpop.f32.mrf.mxu0  ;;  %v4062_v28 = vrot.slane %v11487_v31, 3 }
 0x448   : > { %v10556_v49 = vadd.f32 %v3857_v9, %v3589_v8  ;;  %v4625_v8 = vrot.slane %v8023_v46, 3  ;;  %v11491_v46 = vld [vmem:[#allocation32_spill] sm:$0xff] }
 0x449   : > { %v3492_v50 = vpop.f32.mrf.mxu1  ;;  %v7622_v36 = vpop.f32.mrf.mxu0 }
 0x44a   : > { %11484 = vst [vmem:[#allocation117_spill] sm:$0xff] %v10556_v49  ;;  %v3591_v63 = vadd.f32 %v3492_v50, %v11485_v30 }
 0x44b   : > { %v7492_v51 = vpop.f32.mrf.mxu1  ;;  %v3862_v60 = vpop.f32.mrf.mxu0  ;;  %7856 = vmatmul.mubr.msk.bf16.gmra.mxu0 %vm782_vm3, %v4624_v59 }
 0x44c   : > { %v10564_v58 = vadd.f32 %v3862_v60, %v3590_v37  ;;  %7859 = vmatprep.mubr.msk.bf16.mxu0 %vm8047_vm1, %v11420_v12  ;;  %v4063_v51 = vor.u32 %v4062_v28, %v4061_v40  ;;  %v4626_v37 = vsel %vm4585_vm8, %v4623_v13, %v4625_v8  ;;  %v8024_v13 = vld [vmem:[%s8102_s24 + $0xb8] sm:$0xff]  }
 0x44d   : > { %v3497_v53 = vpop.f32.mrf.mxu1  ;;  %7726 = vmatmul.mubr.msk.bf16.gmra.mxu1 %vm782_vm3, %v4060_v23  ;;  %v7625_v20 = vpop.f32.mrf.mxu0 }
 0x44e   : > { %11488 = vst [vmem:[#allocation69_spill] sm:$0xff] %v10564_v58  ;;  %v3592_v9 = vadd.f32 %v3497_v53, %v11489_v4  ;;  %7729 = vmatprep.mubr.msk.bf16.mxu1 %vm8047_vm1, %v11420_v12  ;;  %v4064_v23 = vsel %vm3977_vm7, %v4059_v22, %v4063_v51  ;;  %v4065_v20 = vrot.slane %v11491_v46, 2  ;;  %v11492_v53 = vld [vmem:[#allocation29_spill] sm:$0xff]  ;;  %v11494_v22 = vld [vmem:[#allocation110_spill] sm:$0xff] }
 0x44f   : > { %v7495_v50 = vpop.f32.mrf.mxu1  ;;  %v3865_v59 = vpop.f32.mrf.mxu0  ;;  %v4066_v4 = vrot.slane %v11492_v53, 3  ;;  %v11495_v53 = vld [vmem:[#allocation36_spill] sm:$0xff] }
 0x450   : > { %v10573_v60 = vadd.f32 %v3865_v59, %v3591_v63  ;;  %v4627_v63 = vrot.slane %v8024_v13, 3  ;;  %v4069_v13 = vrot.slane %v11495_v53, 2 }
 0x451   : > { %v3500_v36 = vpop.f32.mrf.mxu1  ;;  %v7626_v30 = vpop.f32.mrf.mxu0 }
 0x452   : > { %v3593_v31 = vadd.f32 %v3500_v36, %v11490_v6 }
 0x453   : > { %v7496_v58 = vpop.f32.mrf.mxu1  ;;  %v3870_v49 = vpop.f32.mrf.mxu0  ;;  %7860 = vmatmul.mubr.msk.bf16.gmra.mxu0 %vm782_vm3, %v4626_v37 }
 0x454   : > { %v10581_v40 = vadd.f32 %v3870_v49, %v3592_v9  ;;  %7863 = vmatprep.mubr.msk.bf16.mxu0 %vm8047_vm1, %v11420_v12  ;;  %v4067_v58 = vor.u32 %v4066_v4, %v4065_v20  ;;  %v4628_v9 = vsel %vm4585_vm8, %v4625_v8, %v4627_v63  ;;  %v8025_v8 = vld [vmem:[%s8102_s24 + $0xc0] sm:$0xff]  }
 0x455   : > { %v3505_v28 = vpop.f32.mrf.mxu1  ;;  %7730 = vmatmul.mubr.msk.bf16.gmra.mxu1 %vm782_vm3, %v4064_v23  ;;  %v7629_v50 = vpop.f32.mrf.mxu0 }
 0x456   : > { %11493 = vst [vmem:[#allocation119_spill] sm:$0xff] %v10581_v40  ;;  %v3594_v59 = vadd.f32 %v3505_v28, %v11494_v22  ;;  %7733 = vmatprep.mubr.msk.bf16.mxu1 %vm8047_vm1, %v11420_v12  ;;  %v4068_v23 = vsel %vm3977_vm7, %v4063_v51, %v4067_v58  ;;  %v11496_v28 = vld [vmem:[#allocation33_spill] sm:$0xff]  ;;  %v11498_v51 = vld [vmem:[#allocation103_spill] sm:$0xff] }
 0x457   : > { %v7499_v36 = vpop.f32.mrf.mxu1  ;;  %v3873_v37 = vpop.f32.mrf.mxu0  ;;  %v4070_v50 = vrot.slane %v11496_v28, 3 }
 0x458   : > { %v10590_v49 = vadd.f32 %v3873_v37, %v3593_v31  ;;  %v4629_v31 = vrot.slane %v8025_v8, 3 }
 0x459   : > { %v3508_v30 = vpop.f32.mrf.mxu1  ;;  %v7630_v6 = vpop.f32.mrf.mxu0  ;;  %v4071_v37 = vor.u32 %v4070_v50, %v4069_v13 }
 0x45a   : > { %v3595_v46 = vadd.f32 %v3508_v30, %v10075_v15 }
 0x45b   : > { %v7500_v22 = vpop.f32.mrf.mxu1  ;;  %v3878_v40 = vpop.f32.mrf.mxu0  ;;  %7864 = vmatmul.mubr.msk.bf16.gmra.mxu0 %vm782_vm3, %v4628_v9 }
 0x45c   : > { %v10598_v20 = vadd.f32 %v3878_v40, %v3594_v59  ;;  %7867 = vmatprep.mubr.msk.bf16.mxu0 %vm8047_vm1, %v11420_v12  ;;  %v4630_v59 = vsel %vm4585_vm8, %v4627_v63, %v4629_v31  ;;  %v11499_v22 = vld [vmem:[#allocation40_spill] sm:$0xff]  ;;  %v8026_v63 = vld [vmem:[%s8102_s24 + $0xc8] sm:$0xff]  }
 0x45d   : > { %v3513_v4 = vpop.f32.mrf.mxu1  ;;  %7734 = vmatmul.mubr.msk.bf16.gmra.mxu1 %vm782_vm3, %v4068_v23  ;;  %v7633_v15 = vpop.f32.mrf.mxu0  ;;  %v4072_v23 = vsel %vm3977_vm7, %v4067_v58, %v4071_v37  ;;  %v4073_v8 = vrot.slane %v11499_v22, 2 }
 0x45e   : > { %11497 = vst [vmem:[#allocation122_spill] sm:$0xff] %v10598_v20  ;;  %v3596_v36 = vadd.f32 %v3513_v4, %v11498_v51  ;;  %7737 = vmatprep.mubr.msk.bf16.mxu1 %vm8047_vm1, %v11420_v12  ;;  %v11500_v4 = vld [vmem:[#allocation37_spill] sm:$0xff] }
 0x45f   : > { %v7503_v30 = vpop.f32.mrf.mxu1  ;;  %v3881_v9 = vpop.f32.mrf.mxu0  ;;  %v4074_v15 = vrot.slane %v11500_v4, 3  ;;  %v11501_v4 = vld [vmem:[#allocation44_spill] sm:$0xff] }
 0x460   : > { %v10607_v40 = vadd.f32 %v3881_v9, %v3595_v46  ;;  %v4631_v46 = vrot.slane %v8026_v63, 3 }
 0x461   : > { %v3516_v6 = vpop.f32.mrf.mxu1  ;;  %v7634_v53 = vpop.f32.mrf.mxu0  ;;  %v4075_v30 = vor.u32 %v4074_v15, %v4073_v8 }
 0x462   : > { %v3597_v28 = vadd.f32 %v3516_v6, %v10089_v29 }
 0x463   : > { %v7504_v51 = vpop.f32.mrf.mxu1  ;;  %v3886_v20 = vpop.f32.mrf.mxu0  ;;  %7868 = vmatmul.mubr.msk.bf16.gmra.mxu0 %vm782_vm3, %v4630_v59 }
 0x464   : > { %v10615_v13 = vadd.f32 %v3886_v20, %v3596_v36  ;;  %7871 = vmatprep.mubr.msk.bf16.mxu0 %vm8047_vm1, %v11420_v12  ;;  %v4632_v36 = vsel %vm4585_vm8, %v4629_v31, %v4631_v46  ;;  %v4077_v51 = vrot.slane %v11501_v4, 2  ;;  %v8027_v31 = vld [vmem:[%s8102_s24 + $0xd0] sm:$0xff]  }
 0x465   : > { %v3521_v50 = vpop.f32.mrf.mxu1  ;;  %7738 = vmatmul.mubr.msk.bf16.gmra.mxu1 %vm782_vm3, %v4072_v23  ;;  %v7637_v29 = vpop.f32.mrf.mxu0  ;;  %v4076_v23 = vsel %vm3977_vm7, %v4071_v37, %v4075_v30 }
 0x466   : > { %v3598_v58 = vadd.f32 %v3521_v50, %v10094_v7  ;;  %7741 = vmatprep.mubr.msk.bf16.mxu1 %vm8047_vm1, %v11420_v12  ;;  %v11502_v7 = vld [vmem:[#allocation41_spill] sm:$0xff] }
 0x467   : > { %v7507_v9 = vpop.f32.mrf.mxu1  ;;  %v3889_v59 = vpop.f32.mrf.mxu0  ;;  %v4078_v63 = vrot.slane %v11502_v7, 3 }
 0x468   : > { %v10624_v20 = vadd.f32 %v3889_v59, %v3597_v28  ;;  %v4633_v28 = vrot.slane %v8027_v31, 3 }
 0x469   : > { %v3524_v6 = vpop.f32.mrf.mxu1  ;;  %v7638_v53 = vpop.f32.mrf.mxu0  ;;  %v4079_v9 = vor.u32 %v4078_v63, %v4077_v51 }
 0x46a   : > { %v3599_v22 = vadd.f32 %v3524_v6, %v10103_v17  ;;  %v4634_v6 = vsel %vm4585_vm8, %v4631_v46, %v4633_v28  ;;  %v8028_v46 = vld [vmem:[%s8102_s24 + $0xd8] sm:$0xff]  }
 0x46b   : > { %v7508_v50 = vpop.f32.mrf.mxu1  ;;  %v3894_v29 = vpop.f32.mrf.mxu0  ;;  %7872 = vmatmul.mubr.msk.bf16.gmra.mxu0 %vm782_vm3, %v4632_v36 }
 0x46c   : > { %v10632_v8 = vadd.f32 %v3894_v29, %v3598_v58  ;;  %7875 = vmatprep.mubr.msk.bf16.mxu0 %vm8047_vm1, %v11420_v12  ;;  %v11503_v50 = vld [vmem:[#allocation48_spill] sm:$0xff] }
 0x46d   : > { %v3529_v15 = vpop.f32.mrf.mxu1  ;;  %7742 = vmatmul.mubr.msk.bf16.gmra.mxu1 %vm782_vm3, %v4076_v23  ;;  %v7641_v17 = vpop.f32.mrf.mxu0  ;;  %v4080_v23 = vsel %vm3977_vm7, %v4075_v30, %v4079_v9  ;;  %v4081_v29 = vrot.slane %v11503_v50, 2 }
 0x46e   : > { %v3600_v37 = vadd.f32 %v3529_v15, %v10108_v35  ;;  %7745 = vmatprep.mubr.msk.bf16.mxu1 %vm8047_vm1, %v11420_v12  ;;  %v11504_v35 = vld [vmem:[#allocation45_spill] sm:$0xff] }
 0x46f   : > { %v7511_v59 = vpop.f32.mrf.mxu1  ;;  %v3897_v36 = vpop.f32.mrf.mxu0  ;;  %v4082_v31 = vrot.slane %v11504_v35, 3 }
 0x470   : > { %v10641_v58 = vadd.f32 %v3897_v36, %v3599_v22  ;;  %v4635_v22 = vrot.slane %v8028_v46, 3 }
 0x471   : > { %v3532_v53 = vpop.f32.mrf.mxu1  ;;  %v7642_v4 = vpop.f32.mrf.mxu0  ;;  %v4083_v30 = vor.u32 %v4082_v31, %v4081_v29  ;;  %v10667_v31 = vld [vmem:[%s10942_s3] ss:$0 sm:$0xff] }
 0x472   : > { %v3601_v7 = vadd.f32 %v3532_v53, %v10117_v0 }
 0x473   : > { %v7512_v15 = vpop.f32.mrf.mxu1  ;;  %v3902_v17 = vpop.f32.mrf.mxu0  ;;  %7876 = vmatmul.mubr.msk.bf16.gmra.mxu0 %vm782_vm3, %v4634_v6  ;;  %v4084_v35 = vsel %vm3977_vm7, %v4079_v9, %v4083_v30 }
 0x474   : > { %v10649_v51 = vadd.f32 %v3902_v17, %v3600_v37  ;;  %7879 = vmatprep.mubr.msk.bf16.mxu0 %vm8047_vm1, %v11420_v12  ;;  %v4636_v37 = vsel %vm4585_vm8, %v4633_v28, %v4635_v22  ;;  %v11507_v17 = vld [vmem:[#allocation49_spill] sm:$0xff] }
 0x475   : > { %v4254_v63 = vpop.f32.mrf.mxu1  ;;  %7746 = vmatmul.mubr.msk.bf16.gmra.mxu1 %vm782_vm3, %v4080_v23  ;;  %v7645_v0 = vpop.f32.mrf.mxu0  ;;  %v11506_v23 = vld [vmem:[#allocation52_spill] sm:$0xff]  ;;  %v4086_v46 = vrot.slane %v11507_v17, 3 }
 0x476   : > { %7749 = vmatprep.mubr.msk.bf16.mxu1 %vm8047_vm1, %v11420_v12  ;;  %v4517_v50 = vadd.f32 %v4254_v63, %v10122_v52  ;;  %v4085_v15 = vrot.slane %v11506_v23, 2  ;;  %v8029_v52 = vld [vmem:[%s8102_s24 + $0xe0] sm:$0xff]  }
 0x477   : > { %v7651_v59 = vpop.f32.mrf.mxu1  ;;  %v3905_v36 = vpop.f32.mrf.mxu0  ;;  %v4637_v9 = vrot.slane %v8029_v52, 3 }
 0x478   : > { %v10657_v6 = vadd.f32 %v3905_v36, %v3601_v7 }
 0x479   : > { %v4257_v53 = vpop.f32.mrf.mxu1  ;;  %v7646_v4 = vpop.f32.mrf.mxu0  ;;  %v4638_v17 = vsel %vm4585_vm8, %v4635_v22, %v4637_v9 }
 0x47a   : > { %11505 = vst [vmem:[#allocation72_spill] sm:$0xff] %v10657_v6  ;;  %v4518_v59 = vadd.f32 %v4257_v53, %v10131_v5  ;;  %v4087_v4 = vor.u32 %v4086_v46, %v4085_v15  ;;  %v11509_v5 = vld [vmem:[#allocation53_spill] sm:$0xff] }
 0x47b   : > { %v7652_v0 = vpop.f32.mrf.mxu1  ;;  %v4789_v29 = vpop.f32.mrf.mxu0  ;;  %7880 = vmatmul.mubr.msk.bf16.gmra.mxu0 %vm782_vm3, %v4636_v37  ;;  %v4090_v53 = vrot.slane %v11509_v5, 3 }
 0x47c   : > { %v5052_v28 = vadd.f32 %v4789_v29, %v4517_v50  ;;  %7883 = vmatprep.mubr.msk.bf16.mxu0 %vm8047_vm1, %v11420_v12  ;;  %v11508_v29 = vld [vmem:[#allocation56_spill] sm:$0xff]  ;;  %v4088_v46 = vsel %vm3977_vm7, %v4083_v30, %v4087_v4 }
 0x47d   : > { %v4262_v7 = vpop.f32.mrf.mxu1  ;;  %7750 = vmatmul.mubr.msk.bf16.gmra.mxu1 %vm782_vm3, %v4084_v35  ;;  %v7785_v63 = vpop.f32.mrf.mxu0  ;;  %v4089_v52 = vrot.slane %v11508_v29, 2 }
 0x47e   : > { %v5125_v36 = vadd.f32 %v10667_v31, %v5052_v28  ;;  %7753 = vmatprep.mubr.msk.bf16.mxu1 %vm8047_vm1, %v11420_v12  ;;  %v4519_v28 = vadd.f32 %v4262_v7, %v10136_v2 }
 0x47f   : > { %v7655_v37 = vpop.f32.mrf.mxu1  ;;  %v4792_v50 = vpop.f32.mrf.mxu0  ;;  %v4091_v7 = vor.u32 %v4090_v53, %v4089_v52  ;;  %v11510_v52 = vld [vmem:[#allocation60_spill] sm:$0xff] }
 0x480   : > { %v5053_v23 = vadd.f32 %v4792_v50, %v4518_v59  ;;  %v5191_v63 = vmul.f32 0.1, %v5125_v36  ;;  %v8030_v50 = vld [vmem:[%s8102_s24 + $0xe8] sm:$0xff]   ;;  %v4093_v53 = vrot.slane %v11510_v52, 2 }
 0x481   : > { %v4265_v0 = vpop.f32.mrf.mxu1  ;;  %v7786_v35 = vpop.f32.mrf.mxu0 }
 0x482   : > { %v5126_v15 = vadd.f32 %v10667_v31, %v5053_v23  ;;  %v4639_v35 = vrot.slane %v8030_v50, 3  ;;  %v5257_v23 = vmax.f32 %v5125_v36, %v5191_v63  ;;  %v4520_v30 = vadd.f32 %v4265_v0, %v10145_v25  ;;  %v11511_v63 = vld [vmem:[#allocation57_spill] sm:$0xff] }
 0x483   : > { %v7656_v37 = vpop.f32.mrf.mxu1  ;;  %v4797_v6 = vpop.f32.mrf.mxu0  ;;  %7884 = vmatmul.mubr.msk.bf16.gmra.mxu0 %vm782_vm3, %v4638_v17 }
 0x484   : > { %v5192_v22 = vmul.f32 0.1, %v5126_v15  ;;  %v5054_v59 = vadd.f32 %v4797_v6, %v4519_v28  ;;  %7887 = vmatprep.mubr.msk.bf16.mxu0 %vm8047_vm1, %v11420_v12  ;;  %v4640_v36 = vsel %vm4585_vm8, %v4637_v9, %v4639_v35 }
 0x485   : > { %v4270_v29 = vpop.f32.mrf.mxu1  ;;  %7754 = vmatmul.mubr.msk.bf16.gmra.mxu1 %vm782_vm3, %v4088_v46  ;;  %v7789_v2 = vpop.f32.mrf.mxu0 }
 0x486   : > { %v5258_v5 = vmax.f32 %v5126_v15, %v5192_v22  ;;  %v5127_v37 = vadd.f32 %v10667_v31, %v5054_v59  ;;  %7757 = vmatprep.mubr.msk.bf16.mxu1 %vm8047_vm1, %v11420_v12  ;;  %v4094_v15 = vrot.slane %v11511_v63, 3  ;;  %v4521_v22 = vadd.f32 %v4270_v29, %v10150_v24 }
 0x487   : > { %v7659_v6 = vpop.f32.mrf.mxu1  ;;  %v4800_v17 = vpop.f32.mrf.mxu0  ;;  %v4092_v2 = vsel %vm3977_vm7, %v4087_v4, %v4091_v7 }
 0x488   : > { %v6209_v28 = vpack.c.bf16 %v5258_v5, %v5257_v23  ;;  %v5055_v46 = vadd.f32 %v4800_v17, %v4520_v30  ;;  %v5193_v59 = vmul.f32 0.1, %v5127_v37  ;;  %v8031_v5 = vld [vmem:[%s8102_s24 + $0xf0] sm:$0xff]   ;;  %v4095_v29 = vor.u32 %v4094_v15, %v4093_v53 }
 0x489   : > { %v4273_v25 = vpop.f32.mrf.mxu1  ;;  %v7790_v0 = vpop.f32.mrf.mxu0  ;;  %v4641_v17 = vrot.slane %v8031_v5, 3 }
 0x48a   : > { %6210 = vst [vmem:[%s10701_s28] sm:$0xff] %v6209_v28   ;;  %v5128_v50 = vadd.f32 %v10667_v31, %v5055_v46  ;;  %v5259_v28 = vmax.f32 %v5127_v37, %v5193_v59  ;;  %v4522_v4 = vadd.f32 %v4273_v25, %v10159_v54  ;;  %v11513_v37 = vld [vmem:[#allocation61_spill] sm:$0xff] }
 0x48b   : > { %v7660_v6 = vpop.f32.mrf.mxu1  ;;  %v4805_v23 = vpop.f32.mrf.mxu0  ;;  %7888 = vmatmul.mubr.msk.bf16.gmra.mxu0 %vm782_vm3, %v4640_v36  ;;  %v4098_v15 = vrot.slane %v11513_v37, 3 }
 0x48c   : > { %v5194_v9 = vmul.f32 0.1, %v5128_v50  ;;  %v5056_v30 = vadd.f32 %v4805_v23, %v4521_v22  ;;  %7891 = vmatprep.mubr.msk.bf16.mxu0 %vm8047_vm1, %v11420_v12  ;;  %v4642_v23 = vsel %vm4585_vm8, %v4639_v35, %v4641_v17 }
 0x48d   : > { %v4278_v0 = vpop.f32.mrf.mxu1  ;;  %7758 = vmatmul.mubr.msk.bf16.gmra.mxu1 %vm782_vm3, %v4092_v2  ;;  %v7793_v24 = vpop.f32.mrf.mxu0 }
 0x48e   : > { %v5260_v46 = vmax.f32 %v5128_v50, %v5194_v9  ;;  %v5129_v52 = vadd.f32 %v10667_v31, %v5056_v30  ;;  %7761 = vmatprep.mubr.msk.bf16.mxu1 %vm8047_vm1, %v11420_v12  ;;  %v11512_v24 = vld [vmem:[#allocation63_spill] sm:$0xff]  ;;  %v4523_v54 = vadd.f32 %v4278_v0, %v10164_v43  ;;  %v4096_v50 = vsel %vm3977_vm7, %v4091_v7, %v4095_v29 }
 0x48f   : > { %v7663_v36 = vpop.f32.mrf.mxu1  ;;  %v4808_v63 = vpop.f32.mrf.mxu0  ;;  %v4097_v53 = vrot.slane %v11512_v24, 2 }
 0x490   : > { %v6214_v22 = vpack.c.bf16 %v5260_v46, %v5259_v28  ;;  %v5057_v6 = vadd.f32 %v4808_v63, %v4522_v4  ;;  %v5195_v25 = vmul.f32 0.1, %v5129_v52  ;;  %v8032_v4 = vld [vmem:[%s8102_s24 + $0xf8] sm:$0xff]  }
 0x491   : > { %v4281_v2 = vpop.f32.mrf.mxu1  ;;  %v7794_v5 = vpop.f32.mrf.mxu0  ;;  %v4643_v46 = vrot.slane %v8032_v4, 3  ;;  %v4099_v0 = vor.u32 %v4098_v15, %v4097_v53  ;;  %v11516_v15 = vld [vmem:[#allocation64_spill] sm:$0xff] }
 0x492   : > { %6371 = vst [vmem:[%s10701_s28 + $0x8] sm:$0xff] %v6214_v22   ;;  %v5130_v59 = vadd.f32 %v10667_v31, %v5057_v6  ;;  %v5261_v63 = vmax.f32 %v5129_v52, %v5195_v25  ;;  %v4524_v7 = vadd.f32 %v4281_v2, %v10173_v34  ;;  %v4102_v34 = vrot.slane %v11516_v15, 3 }
 0x493   : > { %v7664_v9 = vpop.f32.mrf.mxu1  ;;  %v4813_v30 = vpop.f32.mrf.mxu0  ;;  %7892 = vmatmul.mubr.msk.bf16.gmra.mxu0 %vm782_vm3, %v4642_v23 }
 0x494   : > { %v5196_v35 = vmul.f32 0.1, %v5130_v59  ;;  %v5058_v28 = vadd.f32 %v4813_v30, %v4523_v54  ;;  %7895 = vmatprep.mubr.msk.bf16.mxu0 %vm8047_vm1, %v11420_v12  ;;  %v4644_v54 = vsel %vm4585_vm8, %v4641_v17, %v4643_v46  ;;  %v11514_v30 = vld [vmem:[#allocation83_spill] sm:$0xff] }
 0x495   : > { %v4286_v36 = vpop.f32.mrf.mxu1  ;;  %7762 = vmatmul.mubr.msk.bf16.gmra.mxu1 %vm782_vm3, %v4096_v50  ;;  %v7797_v43 = vpop.f32.mrf.mxu0  ;;  %v11515_v53 = vshrl.u32 %v11514_v30, 16 }
 0x496   : > { %v5262_v22 = vmax.f32 %v5130_v59, %v5196_v35  ;;  %v5131_v6 = vadd.f32 %v10667_v31, %v5058_v28  ;;  %7765 = vmatprep.mubr.msk.bf16.mxu1 %vm8047_vm1, %v11420_v12  ;;  %v4525_v2 = vadd.f32 %v4286_v36, %v10178_v18  ;;  %v4100_v35 = vsel %vm3977_vm7, %v4095_v29, %v4099_v0 }
 0x497   : > { %v7667_v23 = vpop.f32.mrf.mxu1  ;;  %v4816_v5 = vpop.f32.mrf.mxu0  ;;  %v4101_v52 = vrot.slane %v11515_v53, 2 }
 0x498   : > { %v6219_v24 = vpack.c.bf16 %v5262_v22, %v5261_v63  ;;  %v5059_v37 = vadd.f32 %v4816_v5, %v4524_v7  ;;  %v5197_v25 = vmul.f32 0.1, %v5131_v6  ;;  %v8033_v63 = vld [vmem:[%s8102_s24 + $0x100] sm:$0xff]  }
 0x499   : > { %v4289_v50 = vpop.f32.mrf.mxu1  ;;  %v7798_v9 = vpop.f32.mrf.mxu0  ;;  %v4645_v7 = vrot.slane %v8033_v63, 3  ;;  %v4103_v36 = vor.u32 %v4102_v34, %v4101_v52  ;;  %v8034_v63 = vld [vmem:[%s8294_s8] sm:$0xff]  }
 0x49a   : > { %6372 = vst [vmem:[%s10701_s28 + $0x10] sm:$0xff] %v6219_v24   ;;  %v5132_v59 = vadd.f32 %v10667_v31, %v5059_v37  ;;  %v5263_v23 = vmax.f32 %v5131_v6, %v5197_v25  ;;  %v4526_v29 = vadd.f32 %v4289_v50, %v10187_v55 }
 0x49b   : > { %v7668_v28 = vpop.f32.mrf.mxu1  ;;  %v4821_v4 = vpop.f32.mrf.mxu0  ;;  %7896 = vmatmul.mubr.msk.bf16.gmra.mxu0 %vm782_vm3, %v4644_v54  ;;  %v4646_v53 = vsel %vm4585_vm8, %v4643_v46, %v4645_v7 }
 0x49c   : > { %v5198_v17 = vmul.f32 0.1, %v5132_v59  ;;  %v5060_v43 = vadd.f32 %v4821_v4, %v4525_v2  ;;  %7899 = vmatprep.mubr.msk.bf16.mxu0 %vm8047_vm1, %v11420_v12  ;;  %v4104_v28 = vsel %vm3977_vm7, %v4099_v0, %v4103_v36 }
 0x49d   : > { %v4294_v22 = vpop.f32.mrf.mxu1  ;;  %7766 = vmatmul.mubr.msk.bf16.gmra.mxu1 %vm782_vm3, %v4100_v35  ;;  %v7801_v18 = vpop.f32.mrf.mxu0  ;;  %v11517_v35 = vld [vmem:[#allocation90_spill] sm:$0xff] }
 0x49e   : > { %v5264_v5 = vmax.f32 %v5132_v59, %v5198_v17  ;;  %v5133_v24 = vadd.f32 %v10667_v31, %v5060_v43  ;;  %7769 = vmatprep.mubr.msk.bf16.mxu1 %vm8047_vm1, %v11420_v12  ;;  %v11518_v52 = vshrl.u32 %v11517_v35, 16  ;;  %v11519_v55 = vshll.u32 %v11517_v35, 16 }
 0x49f   : > { %v7671_v37 = vpop.f32.mrf.mxu1  ;;  %v4824_v54 = vpop.f32.mrf.mxu0  ;;  %v4527_v34 = vadd.f32 %v4294_v22, %v10192_v26  ;;  %v4647_v18 = vrot.slane %v8034_v63, 3 }
 0x4a0   : > { %v6224_v9 = vpack.c.bf16 %v5264_v5, %v5263_v23  ;;  %v5061_v30 = vadd.f32 %v4824_v54, %v4526_v29  ;;  %v4105_v6 = vrot.slane %v11518_v52, 2  ;;  %v4106_v50 = vrot.slane %v11519_v55, 3  ;;  %v10767_v29 = vld [vmem:[%s8294_s8 + $0x10] sm:$0xff]  }
 0x4a1   : > { %v4297_v15 = vpop.f32.mrf.mxu1  ;;  %v7802_v2 = vpop.f32.mrf.mxu0  ;;  %v5199_v25 = vmul.f32 0.1, %v5133_v24  ;;  %v4110_v0 = vshrl.u32 %v10767_v29, 16  ;;  %v4113_v5 = vshll.u32 %v10767_v29, 16  ;;  %v11520_v54 = vld [vmem:[#allocation104_spill] sm:$0xff]  ;;  %v4648_v55 = vsel %vm4585_vm8, %v4645_v7, %v4647_v18  ;;  %v8036_v7 = vld [vmem:[%s8294_s8 + $0x8] sm:$0xff]  }
 0x4a2   : > { %6373 = vst [vmem:[%s10701_s28 + $0x18] sm:$0xff] %v6224_v9   ;;  %v5134_v59 = vadd.f32 %v10667_v31, %v5061_v30  ;;  %v4107_v22 = vor.u32 %v4106_v50, %v4105_v6  ;;  %v4528_v9 = vadd.f32 %v4297_v15, %v11520_v54 }
 0x4a3   : > { %v7672_v4 = vpop.f32.mrf.mxu1  ;;  %v4829_v46 = vpop.f32.mrf.mxu0  ;;  %7900 = vmatmul.mubr.msk.bf16.gmra.mxu0 %vm782_vm3, %v4646_v53  ;;  %v5265_v37 = vmax.f32 %v5133_v24, %v5199_v25  ;;  %v11521_v24 = vld [vmem:[#allocation115_spill] sm:$0xff] }
 0x4a4   : > { %v5200_v17 = vmul.f32 0.1, %v5134_v59  ;;  %v5062_v43 = vadd.f32 %v4829_v46, %v4527_v34  ;;  %7903 = vmatprep.mubr.msk.bf16.mxu0 %vm8047_vm1, %v11420_v12  ;;  %v4115_v4 = vrot.slane %v4113_v5, 3  ;;  %v4108_v46 = vsel %vm3977_vm7, %v4103_v36, %v4107_v22 }
 0x4a5   : > { %v4302_v23 = vpop.f32.mrf.mxu1  ;;  %7770 = vmatmul.mubr.msk.bf16.gmra.mxu1 %vm782_vm3, %v4104_v28  ;;  %v7805_v26 = vpop.f32.mrf.mxu0  ;;  %v4112_v28 = vrot.slane %v4110_v0, 2  ;;  %v4649_v0 = vrot.slane %v8036_v7, 3 }
 0x4a6   : > { %v5266_v30 = vmax.f32 %v5134_v59, %v5200_v17  ;;  %v5135_v53 = vadd.f32 %v10667_v31, %v5062_v43  ;;  %7773 = vmatprep.mubr.msk.bf16.mxu1 %vm8047_vm1, %v11420_v12  ;;  %v4529_v15 = vadd.f32 %v4302_v23, %v11521_v24 }
 0x4a7   : > { %v7675_v2 = vpop.f32.mrf.mxu1  ;;  %v4832_v35 = vpop.f32.mrf.mxu0 }
 0x4a8   : > { %v6229_v52 = vpack.c.bf16 %v5266_v30, %v5265_v37  ;;  %v5063_v6 = vadd.f32 %v4832_v35, %v4528_v9  ;;  %v5201_v25 = vmul.f32 0.1, %v5135_v53  ;;  %v4116_v37 = vor.u32 %v4115_v4, %v4112_v28 }
 0x4a9   : > { %v4305_v50 = vpop.f32.mrf.mxu1  ;;  %v7806_v34 = vpop.f32.mrf.mxu0 }
 0x4aa   : > { %6374 = vst [vmem:[%s10701_s28 + $0x20] sm:$0xff] %v6229_v52   ;;  %v5136_v59 = vadd.f32 %v10667_v31, %v5063_v6  ;;  %v5267_v54 = vmax.f32 %v5135_v53, %v5201_v25  ;;  %v4530_v36 = vadd.f32 %v4305_v50, %v10215_v44  ;;  %v4117_v50 = vsel %vm3977_vm7, %v4107_v22, %v4116_v37 }
 0x4ab   : > { %v7676_v17 = vpop.f32.mrf.mxu1  ;;  %v4837_v43 = vpop.f32.mrf.mxu0  ;;  %7904 = vmatmul.mubr.msk.bf16.gmra.mxu0 %vm782_vm3, %v4648_v55  ;;  %v4650_v55 = vsel %vm4585_vm8, %v4647_v18, %v4649_v0  ;;  %v4651_v18 = vrot.slane %v10767_v29, 3  ;;  %v11522_v29 = vld [vmem:[#allocation107_spill] sm:$0xff] }
 0x4ac   : > { %v5202_v63 = vmul.f32 0.1, %v5136_v59  ;;  %v5064_v26 = vadd.f32 %v4837_v43, %v4529_v15  ;;  %7907 = vmatprep.mubr.msk.bf16.mxu0 %vm8047_vm1, %v11420_v12 }
 0x4ad   : > { %v4310_v5 = vpop.f32.mrf.mxu1  ;;  %7774 = vmatmul.mubr.msk.bf16.gmra.mxu1 %vm782_vm3, %v4108_v46  ;;  %v7809_v23 = vpop.f32.mrf.mxu0  ;;  %v4652_v37 = vsel %vm4585_vm8, %v4649_v0, %v4651_v18 }
 0x4ae   : > { %v5268_v9 = vmax.f32 %v5136_v59, %v5202_v63  ;;  %v5137_v30 = vadd.f32 %v10667_v31, %v5064_v26  ;;  %7777 = vmatprep.mubr.msk.bf16.mxu1 %vm8047_vm1, %v11420_v12  ;;  %v4531_v28 = vadd.f32 %v4310_v5, %v10223_v61 }
 0x4af   : > { %v7679_v2 = vpop.f32.mrf.mxu1  ;;  %v4840_v35 = vpop.f32.mrf.mxu0 }
 0x4b0   : > { %v6234_v52 = vpack.c.bf16 %v5268_v9, %v5267_v54  ;;  %v5065_v6 = vadd.f32 %v4840_v35, %v4530_v36  ;;  %v5203_v53 = vmul.f32 0.1, %v5137_v30 }
 0x4b1   : > { %v4313_v34 = vpop.f32.mrf.mxu1  ;;  %v7810_v24 = vpop.f32.mrf.mxu0 }
 0x4b2   : > { %6375 = vst [vmem:[%s10701_s28 + $0x28] sm:$0xff] %v6234_v52   ;;  %v5138_v44 = vadd.f32 %v10667_v31, %v5065_v6  ;;  %v5269_v17 = vmax.f32 %v5137_v30, %v5203_v53  ;;  %v4532_v43 = vadd.f32 %v4313_v34, %v10231_v27 }
 0x4b3   : > { %v7680_v4 = vpop.f32.mrf.mxu1  ;;  %v4845_v15 = vpop.f32.mrf.mxu0  ;;  %7908 = vmatmul.mubr.msk.bf16.gmra.mxu0 %vm782_vm3, %v4650_v55 }
 0x4b4   : > { %v5204_v25 = vmul.f32 0.1, %v5138_v44  ;;  %v5066_v59 = vadd.f32 %v4845_v15, %v4531_v28  ;;  %7911 = vmatprep.mubr.msk.bf16.mxu0 %vm8047_vm1, %v11420_v12 }
 0x4b5   : > { %v4318_v46 = vpop.f32.mrf.mxu1  ;;  %7778 = vmatmul.mubr.msk.bf16.gmra.mxu1 %vm782_vm3, %v4117_v50  ;;  %v7813_v61 = vpop.f32.mrf.mxu0 }
 0x4b6   : > { %v5270_v22 = vmax.f32 %v5138_v44, %v5204_v25  ;;  %v5139_v63 = vadd.f32 %v10667_v31, %v5066_v59  ;;  %v4533_v36 = vadd.f32 %v4318_v46, %v11522_v29  ;;  %v11523_v59 = vld [vmem:[#allocation109_spill] sm:$0xff] }
 0x4b7   : > { %v7683_v26 = vpop.f32.mrf.mxu1  ;;  %v4848_v7 = vpop.f32.mrf.mxu0 }
 0x4b8   : > { %v6239_v5 = vpack.c.bf16 %v5270_v22, %v5269_v17  ;;  %v5067_v23 = vadd.f32 %v4848_v7, %v4532_v43  ;;  %v5205_v9 = vmul.f32 0.1, %v5139_v63 }
 0x4b9   : > { %v4321_v12 = vpop.f32.mrf.mxu1  ;;  %v7814_v54 = vpop.f32.mrf.mxu0 }
 0x4ba   : > { %6376 = vst [vmem:[%s10701_s28 + $0x30] sm:$0xff] %v6239_v5   ;;  %v5140_v2 = vadd.f32 %v10667_v31, %v5067_v23  ;;  %v5271_v34 = vmax.f32 %v5139_v63, %v5205_v9  ;;  %v4534_v0 = vadd.f32 %v4321_v12, %v10250_v39 }
 0x4bb   : > { %v7684_v30 = vpop.f32.mrf.mxu1  ;;  %v4853_v35 = vpop.f32.mrf.mxu0  ;;  %7912 = vmatmul.mubr.msk.bf16.gmra.mxu0 %vm782_vm3, %v4652_v37 }
 0x4bc   : > { %v5206_v27 = vmul.f32 0.1, %v5140_v2  ;;  %v5068_v52 = vadd.f32 %v4853_v35, %v4533_v36 }
 0x4bd   : > { %v4326_v6 = vpop.f32.mrf.mxu1  ;;  %v7817_v55 = vpop.f32.mrf.mxu0 }
 0x4be   : > { %v5272_v24 = vmax.f32 %v5140_v2, %v5206_v27  ;;  %v5141_v28 = vadd.f32 %v10667_v31, %v5068_v52  ;;  %v4535_v18 = vadd.f32 %v4326_v6, %v11523_v59 }
 0x4bf   : > { %v7687_v53 = vpop.f32.mrf.mxu1  ;;  %v4856_v44 = vpop.f32.mrf.mxu0 }
 0x4c0   : > { %v6244_v50 = vpack.c.bf16 %v5272_v24, %v5271_v34  ;;  %v5069_v4 = vadd.f32 %v4856_v44, %v4534_v0  ;;  %v5207_v46 = vmul.f32 0.1, %v5141_v28 }
 0x4c1   : > { %v4329_v15 = vpop.f32.mrf.mxu1  ;;  %v7818_v25 = vpop.f32.mrf.mxu0 }
 0x4c2   : > { %6377 = vst [vmem:[%s10701_s28 + $0x38] sm:$0xff] %v6244_v50   ;;  %v5142_v61 = vadd.f32 %v10667_v31, %v5069_v4  ;;  %v5273_v7 = vmax.f32 %v5141_v28, %v5207_v46  ;;  %v4536_v5 = vadd.f32 %v4329_v15, %v10267_v1 }
 0x4c3   : > { %v7688_v17 = vpop.f32.mrf.mxu1  ;;  %v4861_v43 = vpop.f32.mrf.mxu0 }
 0x4c4   : > { %v5208_v22 = vmul.f32 0.1, %v5142_v61  ;;  %v5070_v39 = vadd.f32 %v4861_v43, %v4535_v18 }
 0x4c5   : > { %v4334_v63 = vpop.f32.mrf.mxu1  ;;  %v7821_v26 = vpop.f32.mrf.mxu0 }
 0x4c6   : > { %v5274_v23 = vmax.f32 %v5142_v61, %v5208_v22  ;;  %v5143_v37 = vadd.f32 %v10667_v31, %v5070_v39  ;;  %v4537_v30 = vadd.f32 %v4334_v63, %v10275_v21 }
 0x4c7   : > { %v7691_v12 = vpop.f32.mrf.mxu1  ;;  %v4864_v54 = vpop.f32.mrf.mxu0 }
 0x4c8   : > { %v6249_v29 = vpack.c.bf16 %v5274_v23, %v5273_v7  ;;  %v5071_v36 = vadd.f32 %v4864_v54, %v4536_v5  ;;  %v5209_v35 = vmul.f32 0.1, %v5143_v37 }
 0x4c9   : > { %v4337_v9 = vpop.f32.mrf.mxu1  ;;  %v7822_v2 = vpop.f32.mrf.mxu0 }
 0x4ca   : > { %6378 = vst [vmem:[%s10701_s28 + $0x40] sm:$0xff] %v6249_v29   ;;  %v5144_v27 = vadd.f32 %v10667_v31, %v5071_v36  ;;  %v5275_v24 = vmax.f32 %v5143_v37, %v5209_v35  ;;  %v4538_v28 = vadd.f32 %v4337_v9, %v10284_v57 }
 0x4cb   : > { %v7692_v52 = vpop.f32.mrf.mxu1  ;;  %v4869_v6 = vpop.f32.mrf.mxu0 }
 0x4cc   : > { %v5210_v55 = vmul.f32 0.1, %v5144_v27  ;;  %v5072_v1 = vadd.f32 %v4869_v6, %v4537_v30 }
 0x4cd   : > { %v4342_v34 = vpop.f32.mrf.mxu1  ;;  %v7825_v0 = vpop.f32.mrf.mxu0 }
 0x4ce   : > { %v5276_v53 = vmax.f32 %v5144_v27, %v5210_v55  ;;  %v5145_v44 = vadd.f32 %v10667_v31, %v5072_v1  ;;  %v4539_v18 = vadd.f32 %v4342_v34, %v10292_v41 }
 0x4cf   : > { %v7695_v50 = vpop.f32.mrf.mxu1  ;;  %v4872_v4 = vpop.f32.mrf.mxu0 }
 0x4d0   : > { %v6254_v15 = vpack.c.bf16 %v5276_v53, %v5275_v24  ;;  %v5073_v21 = vadd.f32 %v4872_v4, %v4538_v28  ;;  %v5211_v46 = vmul.f32 0.1, %v5145_v44 }
 0x4d1   : > { %v4345_v25 = vpop.f32.mrf.mxu1  ;;  %v7826_v59 = vpop.f32.mrf.mxu0 }
 0x4d2   : > { %6379 = vst [vmem:[%s10701_s28 + $0x48] sm:$0xff] %v6254_v15   ;;  %v5146_v61 = vadd.f32 %v10667_v31, %v5073_v21  ;;  %v5277_v26 = vmax.f32 %v5145_v44, %v5211_v46  ;;  %v4540_v7 = vadd.f32 %v4345_v25, %v10301_v32 }
 0x4d3   : > { %v7696_v17 = vpop.f32.mrf.mxu1  ;;  %v4877_v43 = vpop.f32.mrf.mxu0 }
 0x4d4   : > { %v5212_v22 = vmul.f32 0.1, %v5146_v61  ;;  %v5074_v57 = vadd.f32 %v4877_v43, %v4539_v18 }
 0x4d5   : > { %v4350_v39 = vpop.f32.mrf.mxu1  ;;  %v7829_v63 = vpop.f32.mrf.mxu0 }
 0x4d6   : > { %v5278_v5 = vmax.f32 %v5146_v61, %v5212_v22  ;;  %v5147_v23 = vadd.f32 %v10667_v31, %v5074_v57  ;;  %v4541_v9 = vadd.f32 %v4350_v39, %v10309_v14 }
 0x4d7   : > { %v7699_v37 = vpop.f32.mrf.mxu1  ;;  %v4880_v12 = vpop.f32.mrf.mxu0 }
 0x4d8   : > { %v6259_v54 = vpack.c.bf16 %v5278_v5, %v5277_v26  ;;  %v5075_v41 = vadd.f32 %v4880_v12, %v4540_v7  ;;  %v5213_v2 = vmul.f32 0.1, %v5147_v23 }
 0x4d9   : > { %v4353_v29 = vpop.f32.mrf.mxu1  ;;  %v7830_v36 = vpop.f32.mrf.mxu0 }
 0x4da   : > { %6380 = vst [vmem:[%s10701_s28 + $0x50] sm:$0xff] %v6259_v54   ;;  %v5148_v30 = vadd.f32 %v10667_v31, %v5075_v41  ;;  %v5279_v1 = vmax.f32 %v5147_v23, %v5213_v2  ;;  %v4542_v34 = vadd.f32 %v4353_v29, %v10318_v48 }
 0x4db   : > { %v7700_v35 = vpop.f32.mrf.mxu1  ;;  %v4885_v27 = vpop.f32.mrf.mxu0 }
 0x4dc   : > { %v5214_v52 = vmul.f32 0.1, %v5148_v30  ;;  %v5076_v32 = vadd.f32 %v4885_v27, %v4541_v9 }
 0x4dd   : > { %v4358_v6 = vpop.f32.mrf.mxu1  ;;  %v7833_v55 = vpop.f32.mrf.mxu0 }
 0x4de   : > { %v5280_v0 = vmax.f32 %v5148_v30, %v5214_v52  ;;  %v5149_v24 = vadd.f32 %v10667_v31, %v5076_v32  ;;  %v4543_v15 = vadd.f32 %v4358_v6, %v10326_v11 }
 0x4df   : > { %v7703_v28 = vpop.f32.mrf.mxu1  ;;  %v4888_v53 = vpop.f32.mrf.mxu0 }
 0x4e0   : > { %v6264_v44 = vpack.c.bf16 %v5280_v0, %v5279_v1  ;;  %v5077_v14 = vadd.f32 %v4888_v53, %v4542_v34  ;;  %v5215_v21 = vmul.f32 0.1, %v5149_v24 }
 0x4e1   : > { %v4361_v50 = vpop.f32.mrf.mxu1  ;;  %v7834_v4 = vpop.f32.mrf.mxu0 }
 0x4e2   : > { %6381 = vst [vmem:[%s10701_s28 + $0x58] sm:$0xff] %v6264_v44   ;;  %v5150_v25 = vadd.f32 %v10667_v31, %v5077_v14  ;;  %v5281_v43 = vmax.f32 %v5149_v24, %v5215_v21  ;;  %v4544_v22 = vadd.f32 %v4361_v50, %v10335_v42 }
 0x4e3   : > { %v7704_v59 = vpop.f32.mrf.mxu1  ;;  %v4893_v18 = vpop.f32.mrf.mxu0 }
 0x4e4   : > { %v5216_v46 = vmul.f32 0.1, %v5150_v25  ;;  %v5078_v48 = vadd.f32 %v4893_v18, %v4543_v15 }
 0x4e5   : > { %v4366_v61 = vpop.f32.mrf.mxu1  ;;  %v7837_v17 = vpop.f32.mrf.mxu0 }
 0x4e6   : > { %v5282_v57 = vmax.f32 %v5150_v25, %v5216_v46  ;;  %v5151_v39 = vadd.f32 %v10667_v31, %v5078_v48  ;;  %v4545_v37 = vadd.f32 %v4366_v61, %v10343_v62 }
 0x4e7   : > { %v7707_v63 = vpop.f32.mrf.mxu1  ;;  %v4896_v26 = vpop.f32.mrf.mxu0 }
 0x4e8   : > { %v6269_v7 = vpack.c.bf16 %v5282_v57, %v5281_v43  ;;  %v5079_v11 = vadd.f32 %v4896_v26, %v4544_v22  ;;  %v5217_v12 = vmul.f32 0.1, %v5151_v39 }
 0x4e9   : > { %v4369_v5 = vpop.f32.mrf.mxu1  ;;  %v7838_v23 = vpop.f32.mrf.mxu0 }
 0x4ea   : > { %6382 = vst [vmem:[%s10701_s28 + $0x60] sm:$0xff] %v6269_v7   ;;  %v5152_v54 = vadd.f32 %v10667_v31, %v5079_v11  ;;  %v5283_v30 = vmax.f32 %v5151_v39, %v5217_v12  ;;  %v4546_v35 = vadd.f32 %v4369_v5, %v10352_v19 }
 0x4eb   : > { %v7708_v41 = vpop.f32.mrf.mxu1  ;;  %v4901_v29 = vpop.f32.mrf.mxu0 }
 0x4ec   : > { %v5218_v36 = vmul.f32 0.1, %v5152_v54  ;;  %v5080_v42 = vadd.f32 %v4901_v29, %v4545_v37 }
 0x4ed   : > { %v4374_v9 = vpop.f32.mrf.mxu1  ;;  %v7841_v2 = vpop.f32.mrf.mxu0 }
 0x4ee   : > { %v5284_v27 = vmax.f32 %v5152_v54, %v5218_v36  ;;  %v5153_v52 = vadd.f32 %v10667_v31, %v5080_v42  ;;  %v4547_v0 = vadd.f32 %v4374_v9, %v10360_v47 }
 0x4ef   : > { %v7711_v32 = vpop.f32.mrf.mxu1  ;;  %v4904_v6 = vpop.f32.mrf.mxu0 }
 0x4f0   : > { %v6274_v55 = vpack.c.bf16 %v5284_v27, %v5283_v30  ;;  %v5081_v62 = vadd.f32 %v4904_v6, %v4546_v35  ;;  %v5219_v24 = vmul.f32 0.1, %v5153_v52 }
 0x4f1   : > { %v4377_v1 = vpop.f32.mrf.mxu1  ;;  %v7842_v34 = vpop.f32.mrf.mxu0 }
 0x4f2   : > { %6383 = vst [vmem:[%s10701_s28 + $0x68] sm:$0xff] %v6274_v55   ;;  %v5154_v28 = vadd.f32 %v10667_v31, %v5081_v62  ;;  %v5285_v15 = vmax.f32 %v5153_v52, %v5219_v24  ;;  %v4548_v21 = vadd.f32 %v4377_v1, %v10369_v33 }
 0x4f3   : > { %v7712_v53 = vpop.f32.mrf.mxu1  ;;  %v4909_v44 = vpop.f32.mrf.mxu0 }
 0x4f4   : > { %v5220_v14 = vmul.f32 0.1, %v5154_v28  ;;  %v5082_v19 = vadd.f32 %v4909_v44, %v4547_v0 }
 0x4f5   : > { %v4382_v50 = vpop.f32.mrf.mxu1  ;;  %v7845_v4 = vpop.f32.mrf.mxu0 }
 0x4f6   : > { %v5286_v25 = vmax.f32 %v5154_v28, %v5220_v14  ;;  %v5155_v59 = vadd.f32 %v10667_v31, %v5082_v19  ;;  %v4549_v43 = vadd.f32 %v4382_v50, %v10377_v45 }
 0x4f7   : > { %v7715_v18 = vpop.f32.mrf.mxu1  ;;  %v4912_v46 = vpop.f32.mrf.mxu0 }
 0x4f8   : > { %v6279_v48 = vpack.c.bf16 %v5286_v25, %v5285_v15  ;;  %v5083_v47 = vadd.f32 %v4912_v46, %v4548_v21  ;;  %v5221_v22 = vmul.f32 0.1, %v5155_v59 }
 0x4f9   : > { %v4385_v61 = vpop.f32.mrf.mxu1  ;;  %v7846_v17 = vpop.f32.mrf.mxu0 }
 0x4fa   : > { %6384 = vst [vmem:[%s10701_s28 + $0x70] sm:$0xff] %v6279_v48   ;;  %v5156_v57 = vadd.f32 %v10667_v31, %v5083_v47  ;;  %v5287_v5 = vmax.f32 %v5155_v59, %v5221_v22  ;;  %v4550_v23 = vadd.f32 %v4385_v61, %v10386_v10 }
 0x4fb   : > { %v7716_v39 = vpop.f32.mrf.mxu1  ;;  %v4917_v63 = vpop.f32.mrf.mxu0 }
 0x4fc   : > { %v5222_v26 = vmul.f32 0.1, %v5156_v57  ;;  %v5084_v33 = vadd.f32 %v4917_v63, %v4549_v43  ;;  %v11524_v39 = vld [vmem:[#allocation120_spill] sm:$0xff] }
 0x4fd   : > { %v4390_v7 = vpop.f32.mrf.mxu1  ;;  %v7849_v11 = vpop.f32.mrf.mxu0 }
 0x4fe   : > { %v5288_v37 = vmax.f32 %v5156_v57, %v5222_v26  ;;  %v5157_v12 = vadd.f32 %v10667_v31, %v5084_v33  ;;  %v4551_v9 = vadd.f32 %v4390_v7, %v10394_v38 }
 0x4ff   : > { %v7719_v54 = vpop.f32.mrf.mxu1  ;;  %v4920_v41 = vpop.f32.mrf.mxu0 }
 0x500   : > { %v6284_v29 = vpack.c.bf16 %v5288_v37, %v5287_v5  ;;  %v5085_v45 = vadd.f32 %v4920_v41, %v4550_v23  ;;  %v5223_v2 = vmul.f32 0.1, %v5157_v12  ;;  %v11525_v54 = vld [vmem:[#allocation111_spill] sm:$0xff] }
 0x501   : > { %v4393_v36 = vpop.f32.mrf.mxu1  ;;  %v7850_v42 = vpop.f32.mrf.mxu0 }
 0x502   : > { %6385 = vst [vmem:[%s10701_s28 + $0x78] sm:$0xff] %v6284_v29   ;;  %v5158_v30 = vadd.f32 %v10667_v31, %v5085_v45  ;;  %v5289_v55 = vmax.f32 %v5157_v12, %v5223_v2  ;;  %v4552_v62 = vadd.f32 %v4393_v36, %v10403_v16 }
 0x503   : > { %v7720_v35 = vpop.f32.mrf.mxu1  ;;  %v4925_v27 = vpop.f32.mrf.mxu0 }
 0x504   : > { %v5224_v52 = vmul.f32 0.1, %v5158_v30  ;;  %v5086_v10 = vadd.f32 %v4925_v27, %v4551_v9  ;;  %v11526_v27 = vld [vmem:[#allocation113_spill] sm:$0xff] }
 0x505   : > { %v4398_v32 = vpop.f32.mrf.mxu1  ;;  %v7853_v6 = vpop.f32.mrf.mxu0 }
 0x506   : > { %v5290_v1 = vmax.f32 %v5158_v30, %v5224_v52  ;;  %v5159_v34 = vadd.f32 %v10667_v31, %v5086_v10  ;;  %v4553_v14 = vadd.f32 %v4398_v32, %v10411_v3 }
 0x507   : > { %v7723_v0 = vpop.f32.mrf.mxu1  ;;  %v4928_v24 = vpop.f32.mrf.mxu0 }
 0x508   : > { %v6289_v28 = vpack.c.bf16 %v5290_v1, %v5289_v55  ;;  %v5087_v38 = vadd.f32 %v4928_v24, %v4552_v62  ;;  %v5225_v19 = vmul.f32 0.1, %v5159_v34 }
 0x509   : > { %v4401_v53 = vpop.f32.mrf.mxu1  ;;  %v7854_v44 = vpop.f32.mrf.mxu0 }
 0x50a   : > { %6386 = vst [vmem:[%s10701_s28 + $0x80] sm:$0xff] %v6289_v28   ;;  %v5160_v50 = vadd.f32 %v10667_v31, %v5087_v38  ;;  %v5291_v18 = vmax.f32 %v5159_v34, %v5225_v19  ;;  %v4554_v46 = vadd.f32 %v4401_v53, %v10420_v56  ;;  %v11527_v28 = vld [vmem:[#allocation124_spill] sm:$0xff] }
 0x50b   : > { %v7724_v4 = vpop.f32.mrf.mxu1  ;;  %v4933_v15 = vpop.f32.mrf.mxu0 }
 0x50c   : > { %v5226_v21 = vmul.f32 0.1, %v5160_v50  ;;  %v5088_v16 = vadd.f32 %v4933_v15, %v4553_v14 }
 0x50d   : > { %v4406_v25 = vpop.f32.mrf.mxu1  ;;  %v7857_v59 = vpop.f32.mrf.mxu0 }
 0x50e   : > { %v5292_v48 = vmax.f32 %v5160_v50, %v5226_v21  ;;  %v5161_v47 = vadd.f32 %v10667_v31, %v5088_v16  ;;  %v4555_v63 = vadd.f32 %v4406_v25, %v11524_v39  ;;  %v11528_v16 = vld [vmem:[#allocation116_spill] sm:$0xff] }
 0x50f   : > { %v7727_v61 = vpop.f32.mrf.mxu1  ;;  %v4936_v17 = vpop.f32.mrf.mxu0 }
 0x510   : > { %v6294_v43 = vpack.c.bf16 %v5292_v48, %v5291_v18  ;;  %v5089_v3 = vadd.f32 %v4936_v17, %v4554_v46  ;;  %v5227_v26 = vmul.f32 0.1, %v5161_v47 }
 0x511   : > { %v4409_v22 = vpop.f32.mrf.mxu1  ;;  %v7858_v57 = vpop.f32.mrf.mxu0 }
 0x512   : > { %6387 = vst [vmem:[%s10701_s28 + $0x88] sm:$0xff] %v6294_v43   ;;  %v5162_v33 = vadd.f32 %v10667_v31, %v5089_v3  ;;  %v5293_v12 = vmax.f32 %v5161_v47, %v5227_v26  ;;  %v4556_v41 = vadd.f32 %v4409_v22, %v11525_v54  ;;  %v11529_v22 = vld [vmem:[#allocation118_spill] sm:$0xff] }
 0x513   : > { %v7728_v7 = vpop.f32.mrf.mxu1  ;;  %v4941_v11 = vpop.f32.mrf.mxu0  ;;  %v10878_v54 = vld [vmem:[%s10942_s3] ss:$0 sm:$0xff] }
 0x514   : > { %v5228_v5 = vmul.f32 0.1, %v5162_v33  ;;  %v5090_v56 = vadd.f32 %v4941_v11, %v4555_v63 }
 0x515   : > { %v4414_v23 = vpop.f32.mrf.mxu1  ;;  %v7861_v37 = vpop.f32.mrf.mxu0 }
 0x516   : > { %v5294_v29 = vmax.f32 %v5162_v33, %v5228_v5  ;;  %v5163_v45 = vadd.f32 %v10667_v31, %v5090_v56  ;;  %v4557_v52 = vadd.f32 %v4414_v23, %v11526_v27  ;;  %v11530_v23 = vld [vmem:[#allocation121_spill] sm:$0xff] }
 0x517   : > { %v7731_v36 = vpop.f32.mrf.mxu1  ;;  %v4944_v42 = vpop.f32.mrf.mxu0 }
 0x518   : > { %v6299_v9 = vpack.c.bf16 %v5294_v29, %v5293_v12  ;;  %v5091_v2 = vadd.f32 %v4944_v42, %v4556_v41  ;;  %v5229_v10 = vmul.f32 0.1, %v5163_v45 }
 0x519   : > { %v4417_v30 = vpop.f32.mrf.mxu1  ;;  %v7862_v35 = vpop.f32.mrf.mxu0 }
 0x51a   : > { %6388 = vst [vmem:[%s10701_s28 + $0x90] sm:$0xff] %v6299_v9   ;;  %v5164_v32 = vadd.f32 %v10667_v31, %v5091_v2  ;;  %v5295_v24 = vmax.f32 %v5163_v45, %v5229_v10  ;;  %v4558_v38 = vadd.f32 %v4417_v30, %v11527_v28  ;;  %v11531_v30 = vld [vmem:[#allocation125_spill] sm:$0xff] }
 0x51b   : > { %v7732_v6 = vpop.f32.mrf.mxu1  ;;  %v4949_v55 = vpop.f32.mrf.mxu0 }
 0x51c   : > { %v5230_v62 = vmul.f32 0.1, %v5164_v32  ;;  %v5092_v1 = vadd.f32 %v4949_v55, %v4557_v52 }
 0x51d   : > { %v4422_v34 = vpop.f32.mrf.mxu1  ;;  %v7865_v0 = vpop.f32.mrf.mxu0 }
 0x51e   : > { %v5296_v53 = vmax.f32 %v5164_v32, %v5230_v62  ;;  %v5165_v44 = vadd.f32 %v10667_v31, %v5092_v1  ;;  %v4559_v25 = vadd.f32 %v4422_v34, %v11528_v16  ;;  %v11532_v34 = vld [vmem:[#allocation65_spill] sm:$0xff] }
 0x51f   : > { %v7735_v14 = vpop.f32.mrf.mxu1  ;;  %v4952_v19 = vpop.f32.mrf.mxu0 }
 0x520   : > { %v6304_v50 = vpack.c.bf16 %v5296_v53, %v5295_v24  ;;  %v5093_v4 = vadd.f32 %v4952_v19, %v4558_v38  ;;  %v5231_v59 = vmul.f32 0.1, %v5165_v44 }
 0x521   : > { %v4425_v15 = vpop.f32.mrf.mxu1  ;;  %v7866_v21 = vpop.f32.mrf.mxu0 }
 0x522   : > { %6389 = vst [vmem:[%s10701_s28 + $0x98] sm:$0xff] %v6304_v50   ;;  %v5166_v18 = vadd.f32 %v10667_v31, %v5093_v4  ;;  %v5297_v3 = vmax.f32 %v5165_v44, %v5231_v59  ;;  %v4560_v57 = vadd.f32 %v4425_v15, %v11529_v22  ;;  %v11533_v15 = vld [vmem:[#allocation105_spill] sm:$0xff] }
 0x523   : > { %v7736_v46 = vpop.f32.mrf.mxu1  ;;  %v4957_v48 = vpop.f32.mrf.mxu0 }
 0x524   : > { %v5232_v47 = vmul.f32 0.1, %v5166_v18  ;;  %v5094_v61 = vadd.f32 %v4957_v48, %v4559_v25 }
 0x525   : > { %v4430_v17 = vpop.f32.mrf.mxu1  ;;  %v7869_v43 = vpop.f32.mrf.mxu0 }
 0x526   : > { %v5298_v39 = vmax.f32 %v5166_v18, %v5232_v47  ;;  %v5167_v63 = vadd.f32 %v10667_v31, %v5094_v61  ;;  %v4561_v37 = vadd.f32 %v4430_v17, %v11530_v23  ;;  %v11534_v17 = vld [vmem:[#allocation108_spill] sm:$0xff] }
 0x527   : > { %v7739_v26 = vpop.f32.mrf.mxu1  ;;  %v4960_v33 = vpop.f32.mrf.mxu0 }
 0x528   : > { %v6309_v7 = vpack.c.bf16 %v5298_v39, %v5297_v3  ;;  %v5095_v11 = vadd.f32 %v4960_v33, %v4560_v57  ;;  %v5233_v12 = vmul.f32 0.1, %v5167_v63 }
 0x529   : > { %v4433_v5 = vpop.f32.mrf.mxu1  ;;  %v7870_v56 = vpop.f32.mrf.mxu0 }
 0x52a   : > { %6390 = vst [vmem:[%s10701_s28 + $0xa0] sm:$0xff] %v6309_v7   ;;  %v5168_v41 = vadd.f32 %v10878_v54, %v5095_v11  ;;  %v5299_v2 = vmax.f32 %v5167_v63, %v5233_v12  ;;  %v4562_v35 = vadd.f32 %v4433_v5, %v11531_v30  ;;  %v11535_v5 = vld [vmem:[#allocation66_spill] sm:$0xff] }
 0x52b   : > { %v7740_v29 = vpop.f32.mrf.mxu1  ;;  %v4965_v31 = vpop.f32.mrf.mxu0 }
 0x52c   : > { %v5234_v45 = vmul.f32 0.1, %v5168_v41  ;;  %v5096_v36 = vadd.f32 %v4965_v31, %v4561_v37 }
 0x52d   : > { %v4438_v42 = vpop.f32.mrf.mxu1  ;;  %v7873_v9 = vpop.f32.mrf.mxu0 }
 0x52e   : > { %v5300_v27 = vmax.f32 %v5168_v41, %v5234_v45  ;;  %v5169_v52 = vadd.f32 %v10878_v54, %v5096_v36  ;;  %v4563_v0 = vadd.f32 %v4438_v42, %v11532_v34  ;;  %v11536_v42 = vld [vmem:[#allocation112_spill] sm:$0xff] }
 0x52f   : > { %v7743_v10 = vpop.f32.mrf.mxu1  ;;  %v4968_v32 = vpop.f32.mrf.mxu0 }
 0x530   : > { %v6314_v6 = vpack.c.bf16 %v5300_v27, %v5299_v2  ;;  %v5097_v55 = vadd.f32 %v4968_v32, %v4562_v35  ;;  %v5235_v24 = vmul.f32 0.1, %v5169_v52 }
 0x531   : > { %v4441_v62 = vpop.f32.mrf.mxu1  ;;  %v7874_v1 = vpop.f32.mrf.mxu0 }
 0x532   : > { %6391 = vst [vmem:[%s10701_s28 + $0xa8] sm:$0xff] %v6314_v6   ;;  %v5170_v28 = vadd.f32 %v10878_v54, %v5097_v55  ;;  %v5301_v4 = vmax.f32 %v5169_v52, %v5235_v24  ;;  %v4564_v21 = vadd.f32 %v4441_v62, %v11533_v15  ;;  %v11537_v62 = vld [vmem:[#allocation67_spill] sm:$0xff] }
 0x533   : > { %v7744_v38 = vpop.f32.mrf.mxu1  ;;  %v4973_v53 = vpop.f32.mrf.mxu0 }
 0x534   : > { %v5236_v44 = vmul.f32 0.1, %v5170_v28  ;;  %v5098_v14 = vadd.f32 %v4973_v53, %v4563_v0 }
 0x535   : > { %v4446_v19 = vpop.f32.mrf.mxu1  ;;  %v7877_v50 = vpop.f32.mrf.mxu0 }
 0x536   : > { %v5302_v16 = vmax.f32 %v5170_v28, %v5236_v44  ;;  %v5171_v25 = vadd.f32 %v10878_v54, %v5098_v14  ;;  %v4565_v43 = vadd.f32 %v4446_v19, %v11534_v17  ;;  %v11538_v19 = vld [vmem:[#allocation114_spill] sm:$0xff] }
 0x537   : > { %v7747_v59 = vpop.f32.mrf.mxu1  ;;  %v4976_v18 = vpop.f32.mrf.mxu0 }
 0x538   : > { %v6319_v46 = vpack.c.bf16 %v5302_v16, %v5301_v4  ;;  %v5099_v48 = vadd.f32 %v4976_v18, %v4564_v21  ;;  %v5237_v3 = vmul.f32 0.1, %v5171_v25 }
 0x539   : > { %v4449_v47 = vpop.f32.mrf.mxu1  ;;  %v7878_v61 = vpop.f32.mrf.mxu0 }
 0x53a   : > { %6392 = vst [vmem:[%s10701_s28 + $0xb0] sm:$0xff] %v6319_v46   ;;  %v5172_v22 = vadd.f32 %v10878_v54, %v5099_v48  ;;  %v5303_v11 = vmax.f32 %v5171_v25, %v5237_v3  ;;  %v4566_v56 = vadd.f32 %v4449_v47, %v11535_v5  ;;  %v11539_v47 = vld [vmem:[#allocation117_spill] sm:$0xff] }
 0x53b   : > { %v7748_v57 = vpop.f32.mrf.mxu1  ;;  %v4981_v39 = vpop.f32.mrf.mxu0 }
 0x53c   : > { %v5238_v63 = vmul.f32 0.1, %v5172_v22  ;;  %v5100_v26 = vadd.f32 %v4981_v39, %v4565_v43 }
 0x53d   : > { %v4454_v33 = vpop.f32.mrf.mxu1  ;;  %v7881_v7 = vpop.f32.mrf.mxu0 }
 0x53e   : > { %v5304_v23 = vmax.f32 %v5172_v22, %v5238_v63  ;;  %v5173_v37 = vadd.f32 %v10878_v54, %v5100_v26  ;;  %v4567_v9 = vadd.f32 %v4454_v33, %v11536_v42  ;;  %v11540_v33 = vld [vmem:[#allocation69_spill] sm:$0xff] }
 0x53f   : > { %v7751_v12 = vpop.f32.mrf.mxu1  ;;  %v4984_v41 = vpop.f32.mrf.mxu0 }
 0x540   : > { %v6324_v29 = vpack.c.bf16 %v5304_v23, %v5303_v11  ;;  %v5101_v31 = vadd.f32 %v4984_v41, %v4566_v56  ;;  %v5239_v2 = vmul.f32 0.1, %v5173_v37 }
 0x541   : > { %v4457_v45 = vpop.f32.mrf.mxu1  ;;  %v7882_v36 = vpop.f32.mrf.mxu0 }
 0x542   : > { %6393 = vst [vmem:[%s10701_s28 + $0xb8] sm:$0xff] %v6324_v29   ;;  %v5174_v30 = vadd.f32 %v10878_v54, %v5101_v31  ;;  %v5305_v55 = vmax.f32 %v5173_v37, %v5239_v2  ;;  %v4568_v1 = vadd.f32 %v4457_v45, %v11537_v62 }
 0x543   : > { %v7752_v35 = vpop.f32.mrf.mxu1  ;;  %v4989_v27 = vpop.f32.mrf.mxu0 }
 0x544   : > { %v5240_v52 = vmul.f32 0.1, %v5174_v30  ;;  %v5102_v10 = vadd.f32 %v4989_v27, %v4567_v9 }
 0x545   : > { %v4462_v32 = vpop.f32.mrf.mxu1  ;;  %v7885_v6 = vpop.f32.mrf.mxu0 }
 0x546   : > { %v5306_v34 = vmax.f32 %v5174_v30, %v5240_v52  ;;  %v5175_v0 = vadd.f32 %v10878_v54, %v5102_v10  ;;  %v4569_v50 = vadd.f32 %v4462_v32, %v11538_v19  ;;  %v11541_v10 = vld [vmem:[#allocation119_spill] sm:$0xff] }
 0x547   : > { %v7755_v24 = vpop.f32.mrf.mxu1  ;;  %v4992_v28 = vpop.f32.mrf.mxu0 }
 0x548   : > { %v6329_v38 = vpack.c.bf16 %v5306_v34, %v5305_v55  ;;  %v5103_v53 = vadd.f32 %v4992_v28, %v4568_v1  ;;  %v5241_v4 = vmul.f32 0.1, %v5175_v0 }
 0x549   : > { %v4465_v44 = vpop.f32.mrf.mxu1  ;;  %v7886_v14 = vpop.f32.mrf.mxu0 }
 0x54a   : > { %6394 = vst [vmem:[%s10701_s28 + $0xc0] sm:$0xff] %v6329_v38   ;;  %v5176_v15 = vadd.f32 %v10878_v54, %v5103_v53  ;;  %v5307_v48 = vmax.f32 %v5175_v0, %v5241_v4  ;;  %v4570_v61 = vadd.f32 %v4465_v44, %v11539_v47 }
 0x54b   : > { %v7756_v21 = vpop.f32.mrf.mxu1  ;;  %v4997_v16 = vpop.f32.mrf.mxu0 }
 0x54c   : > { %v5242_v25 = vmul.f32 0.1, %v5176_v15  ;;  %v5104_v59 = vadd.f32 %v4997_v16, %v4569_v50  ;;  %v11542_v16 = vld [vmem:[#allocation122_spill] sm:$0xff] }
 0x54d   : > { %v4470_v18 = vpop.f32.mrf.mxu1  ;;  %v7889_v46 = vpop.f32.mrf.mxu0 }
 0x54e   : > { %v5308_v17 = vmax.f32 %v5176_v15, %v5242_v25  ;;  %v5177_v43 = vadd.f32 %v10878_v54, %v5104_v59  ;;  %v4571_v7 = vadd.f32 %v4470_v18, %v11540_v33 }
 0x54f   : > { %v7759_v3 = vpop.f32.mrf.mxu1  ;;  %v5000_v22 = vpop.f32.mrf.mxu0 }
 0x550   : > { %v6334_v57 = vpack.c.bf16 %v5308_v17, %v5307_v48  ;;  %v5105_v39 = vadd.f32 %v5000_v22, %v4570_v61  ;;  %v5243_v11 = vmul.f32 0.1, %v5177_v43 }
 0x551   : > { %v4473_v63 = vpop.f32.mrf.mxu1  ;;  %v7890_v26 = vpop.f32.mrf.mxu0 }
 0x552   : > { %6395 = vst [vmem:[%s10701_s28 + $0xc8] sm:$0xff] %v6334_v57   ;;  %v5178_v5 = vadd.f32 %v10878_v54, %v5105_v39  ;;  %v5309_v31 = vmax.f32 %v5177_v43, %v5243_v11  ;;  %v4572_v45 = vadd.f32 %v4473_v63, %v10573_v60 }
 0x553   : > { %v7760_v56 = vpop.f32.mrf.mxu1  ;;  %v5005_v23 = vpop.f32.mrf.mxu0 }
 0x554   : > { %v5244_v37 = vmul.f32 0.1, %v5178_v5  ;;  %v5106_v12 = vadd.f32 %v5005_v23, %v4571_v7 }
 0x555   : > { %v4478_v41 = vpop.f32.mrf.mxu1  ;;  %v7893_v29 = vpop.f32.mrf.mxu0 }
 0x556   : > { %v5310_v36 = vmax.f32 %v5178_v5, %v5244_v37  ;;  %v5179_v42 = vadd.f32 %v10878_v54, %v5106_v12  ;;  %v4573_v32 = vadd.f32 %v4478_v41, %v11541_v10 }
 0x557   : > { %v7763_v9 = vpop.f32.mrf.mxu1  ;;  %v5008_v2 = vpop.f32.mrf.mxu0 }
 0x558   : > { %v6339_v30 = vpack.c.bf16 %v5310_v36, %v5309_v31  ;;  %v5107_v35 = vadd.f32 %v5008_v2, %v4572_v45  ;;  %v5245_v6 = vmul.f32 0.1, %v5179_v42 }
 0x559   : > { %v4481_v27 = vpop.f32.mrf.mxu1  ;;  %v7894_v52 = vpop.f32.mrf.mxu0 }
 0x55a   : > { %6396 = vst [vmem:[%s10701_s28 + $0xd0] sm:$0xff] %v6339_v30   ;;  %v5180_v55 = vadd.f32 %v10878_v54, %v5107_v35  ;;  %v5311_v28 = vmax.f32 %v5179_v42, %v5245_v6  ;;  %v4574_v38 = vadd.f32 %v4481_v27, %v10590_v49 }
 0x55b   : > { %v7764_v62 = vpop.f32.mrf.mxu1  ;;  %v5013_v1 = vpop.f32.mrf.mxu0 }
 0x55c   : > { %v5246_v34 = vmul.f32 0.1, %v5180_v55  ;;  %v5108_v60 = vadd.f32 %v5013_v1, %v4573_v32 }
 0x55d   : > { %v4486_v0 = vpop.f32.mrf.mxu1  ;;  %v7897_v24 = vpop.f32.mrf.mxu0 }
 0x55e   : > { %v5312_v53 = vmax.f32 %v5180_v55, %v5246_v34  ;;  %v5181_v44 = vadd.f32 %v10878_v54, %v5108_v60  ;;  %v4575_v25 = vadd.f32 %v4486_v0, %v11542_v16 }
 0x55f   : > { %v7767_v14 = vpop.f32.mrf.mxu1  ;;  %v5016_v19 = vpop.f32.mrf.mxu0 }
 0x560   : > { %v6344_v50 = vpack.c.bf16 %v5312_v53, %v5311_v28  ;;  %v5109_v4 = vadd.f32 %v5016_v19, %v4574_v38  ;;  %v5247_v59 = vmul.f32 0.1, %v5181_v44 }
 0x561   : > { %v4489_v15 = vpop.f32.mrf.mxu1  ;;  %v7898_v21 = vpop.f32.mrf.mxu0 }
 0x562   : > { %6397 = vst [vmem:[%s10701_s28 + $0xd8] sm:$0xff] %v6344_v50   ;;  %v5182_v18 = vadd.f32 %v10878_v54, %v5109_v4  ;;  %v5313_v43 = vmax.f32 %v5181_v44, %v5247_v59  ;;  %v4576_v3 = vadd.f32 %v4489_v15, %v10607_v40 }
 0x563   : > { %v7768_v46 = vpop.f32.mrf.mxu1  ;;  %v5021_v48 = vpop.f32.mrf.mxu0 }
 0x564   : > { %v5248_v47 = vmul.f32 0.1, %v5182_v18  ;;  %v5110_v49 = vadd.f32 %v5021_v48, %v4575_v25  ;;  %v11543_v48 = vld [vmem:[#allocation72_spill] sm:$0xff] }
 0x565   : > { %v4494_v61 = vpop.f32.mrf.mxu1  ;;  %v7901_v17 = vpop.f32.mrf.mxu0 }
 0x566   : > { %v5314_v22 = vmax.f32 %v5182_v18, %v5248_v47  ;;  %v5183_v57 = vadd.f32 %v10878_v54, %v5110_v49  ;;  %v4577_v5 = vadd.f32 %v4494_v61, %v10615_v13 }
 0x567   : > { %v7771_v39 = vpop.f32.mrf.mxu1  ;;  %v5024_v63 = vpop.f32.mrf.mxu0 }
 0x568   : > { %v6349_v26 = vpack.c.bf16 %v5314_v22, %v5313_v43  ;;  %v5111_v33 = vadd.f32 %v5024_v63, %v4576_v3  ;;  %v5249_v56 = vmul.f32 0.1, %v5183_v57 }
 0x569   : > { %v4497_v7 = vpop.f32.mrf.mxu1  ;;  %v7902_v11 = vpop.f32.mrf.mxu0 }
 0x56a   : > { %6398 = vst [vmem:[%s10701_s28 + $0xe0] sm:$0xff] %v6349_v26   ;;  %v5184_v23 = vadd.f32 %v10878_v54, %v5111_v33  ;;  %v5315_v45 = vmax.f32 %v5183_v57, %v5249_v56  ;;  %v4578_v36 = vadd.f32 %v4497_v7, %v10624_v20 }
 0x56b   : > { %v7772_v37 = vpop.f32.mrf.mxu1  ;;  %v5029_v12 = vpop.f32.mrf.mxu0 }
 0x56c   : > { %v5250_v41 = vmul.f32 0.1, %v5184_v23  ;;  %v5112_v40 = vadd.f32 %v5029_v12, %v4577_v5 }
 0x56d   : > { %v4502_v29 = vpop.f32.mrf.mxu1  ;;  %v7905_v31 = vpop.f32.mrf.mxu0 }
 0x56e   : > { %v5316_v42 = vmax.f32 %v5184_v23, %v5250_v41  ;;  %v5185_v9 = vadd.f32 %v10878_v54, %v5112_v40  ;;  %v4579_v10 = vadd.f32 %v4502_v29, %v10632_v8 }
 0x56f   : > { %v7775_v2 = vpop.f32.mrf.mxu1  ;;  %v5032_v30 = vpop.f32.mrf.mxu0 }
 0x570   : > { %v6354_v35 = vpack.c.bf16 %v5316_v42, %v5315_v45  ;;  %v5113_v13 = vadd.f32 %v5032_v30, %v4578_v36  ;;  %v5251_v32 = vmul.f32 0.1, %v5185_v9 }
 0x571   : > { %v4505_v27 = vpop.f32.mrf.mxu1  ;;  %v7906_v52 = vpop.f32.mrf.mxu0 }
 0x572   : > { %6399 = vst [vmem:[%s10701_s28 + $0xe8] sm:$0xff] %v6354_v35   ;;  %v5186_v6 = vadd.f32 %v10878_v54, %v5113_v13  ;;  %v5317_v0 = vmax.f32 %v5185_v9, %v5251_v32  ;;  %v4580_v24 = vadd.f32 %v4505_v27, %v10641_v58 }
 0x573   : > { %v7776_v55 = vpop.f32.mrf.mxu1  ;;  %v5037_v62 = vpop.f32.mrf.mxu0 }
 0x574   : > { %v5252_v1 = vmul.f32 0.1, %v5186_v6  ;;  %v5114_v20 = vadd.f32 %v5037_v62, %v4579_v10 }
 0x575   : > { %v4510_v34 = vpop.f32.mrf.mxu1  ;;  %v7909_v60 = vpop.f32.mrf.mxu0 }
 0x576   : > { %v5318_v28 = vmax.f32 %v5186_v6, %v5252_v1  ;;  %v5187_v38 = vadd.f32 %v10878_v54, %v5114_v20  ;;  %v4581_v4 = vadd.f32 %v4510_v34, %v10649_v51 }
 0x577   : > { %v7779_v53 = vpop.f32.mrf.mxu1  ;;  %v5040_v44 = vpop.f32.mrf.mxu0 }
 0x578   : > { %v6359_v14 = vpack.c.bf16 %v5318_v28, %v5317_v0  ;;  %v5115_v8 = vadd.f32 %v5040_v44, %v4580_v24  ;;  %v5253_v15 = vmul.f32 0.1, %v5187_v38 }
 0x579   : > { %v4513_v19 = vpop.f32.mrf.mxu1  ;;  %v7910_v50 = vpop.f32.mrf.mxu0 }
 0x57a   : > { %6400 = vst [vmem:[%s10701_s28 + $0xf0] sm:$0xff] %v6359_v14   ;;  %v5188_v21 = vadd.f32 %v10878_v54, %v5115_v8  ;;  %v5319_v46 = vmax.f32 %v5187_v38, %v5253_v15  ;;  %v4582_v47 = vadd.f32 %v4513_v19, %v11543_v48 }
 0x57b   : > { %v7780_v16 = vpop.f32.mrf.mxu1  ;;  %v5045_v25 = vpop.f32.mrf.mxu0 }
 0x57c   : > { %v5254_v59 = vmul.f32 0.1, %v5188_v21  ;;  %v5116_v58 = vadd.f32 %v5045_v25, %v4581_v4 }
 0x57d   : > { %v7913_v18 = vpop.f32.mrf.mxu0 }
 0x57e   : > { %v5320_v49 = vmax.f32 %v5188_v21, %v5254_v59  ;;  %v5189_v61 = vadd.f32 %v10878_v54, %v5116_v58 }
 0x57f   : > { %v5048_v17 = vpop.f32.mrf.mxu0 }
 0x580   : > { %v6364_v43 = vpack.c.bf16 %v5320_v49, %v5319_v46  ;;  %v5117_v3 = vadd.f32 %v5048_v17, %v4582_v47  ;;  %v5255_v22 = vmul.f32 0.1, %v5189_v61 }
 0x581   : > { %v7914_v51 = vpop.f32.mrf.mxu0 }
 0x582   : > { %6401 = vst [vmem:[%s10701_s28 + $0xf8] sm:$0xff] %v6364_v43   ;;  %v5190_v57 = vadd.f32 %v10878_v54, %v5117_v3  ;;  %v5321_v63 = vmax.f32 %v5189_v61, %v5255_v22 }
 0x584   : > { %v5256_v39 = vmul.f32 0.1, %v5190_v57 }
 0x586   : > { %v5322_v26 = vmax.f32 %v5190_v57, %v5256_v39 }
 0x588   : > { %v6369_v33 = vpack.c.bf16 %v5322_v26, %v5321_v63 }
 0x58a   : > { %6402 = vst [vmem:[%s10701_s28 + $0x100] sm:$0xff] %v6369_v33  }
 0x58b PF: > { %s14_s15 = sadd.s32 1, %s8044_s15  }
 0x58c   : > { %p11_p6 = scmp.ge.s32.totalorder %s14_s15, 4  }
 0x58e   :  { %13 = sbr.rel (!%p11_p6) target bundleno = 1 (0x1), region = 77 }

</bundles_post_ra>
